<compile_context>
chip_gen: v7x
topology: tpu7x:2x2x1
jax: 0.10.0
libtpu: 0.0.40
codegen_flags: <defaults>
</compile_context>

<pallas_src>
import jax
import jax.numpy as jnp
import numpy as np
from jax.experimental import pallas as pl
from jax.experimental.pallas import tpu as pltpu

HIDDEN_DIM = 128        # matches `hidden_dim` in the PyTorch module
MAX_LENGTH = 16         # small max_length for the synthetic example
OUTPUT_SIZE = 16        # vocabulary size
LANE = 128
NEG_INF = -1e30         # softmax mask value for padded lanes


def _round_up(x, m):
    return ((x + m - 1) // m) * m


# ----------------------------------------------------------------------------
# Pallas kernel: fused T-step decoder (attention + GRU + readout), no grid
# ----------------------------------------------------------------------------
def _attn_decoder_kernel(
    emb_ref,       # (T, H)      bf16  gathered token embeddings (dropout = identity)
    hid0_ref,      # (1, H)      f32   initial hidden state
    enc_ref,       # (Lp, H)     bf16  encoder outputs, zero rows >= L
    attn_we_ref,   # (H, Lp)     bf16  attn weight, embedded half
    attn_b_ref,    # (1, Lp)     f32   attn bias, NEG_INF in padded lanes
    comb_we_ref,   # (H, H)      bf16  attn_combine, embedded half
    comb_b_ref,    # (1, H)      f32
    comb_wa_ref,   # (H, H)      bf16  attn_combine, attn_applied half
    wh_fused_ref,  # (H, Lp+3H)  bf16  [attn_wh | gru.w_hh] fused (512 lanes)
    b_hh_ref,      # (1, 3H)     f32
    w_ih_ref,      # (H, 3H)     bf16  GRU input weights  [r|z|n]
    b_ih_ref,      # (1, 3H)     f32
    out_w_ref,     # (H, Op)     bf16  readout weight, zero cols >= O
    out_b_ref,     # (1, Op)     f32   readout bias, NEG_INF in padded lanes
    out_seq_ref,   # (T, Op)     f32   softmax(out(h_t))
    hid_seq_ref,   # (T, H)      f32   h_t
    attn_seq_ref,  # (T, Lp)     f32   attention weights
):
    T, H = hid_seq_ref.shape
    Lp = attn_seq_ref.shape[1]
    f32, bf16 = jnp.float32, jnp.bfloat16

    # --- hoisted off the recurrence: embedding-side contributions (M=T dots) --
    emb = emb_ref[...]                                               # (T, H) bf16
    e_att = (jnp.dot(emb, attn_we_ref[...], preferred_element_type=f32)
             + attn_b_ref[...])                                      # (T, Lp)
    e_comb = (jnp.dot(emb, comb_we_ref[...], preferred_element_type=f32)
              + comb_b_ref[...])                                     # (T, H)

    # --- fully unrolled recurrence (T is static & small); h carried as value --
    h = hid0_ref[...]                                                # (1, H) f32
    for t in range(T):
        h_bf = h.astype(bf16)

        # single fused h-side dot: RHS is 512 lanes wide ([attn | r | z | n])
        hW = jnp.dot(h_bf, wh_fused_ref[...],
                     preferred_element_type=f32)                     # (1, Lp+3H)

        # attention weights: softmax over Lp lanes (padded lanes masked via bias)
        attn_logits = e_att[t:t + 1, :] + hW[:, :Lp]                 # (1, Lp)
        m = jnp.max(attn_logits, axis=1, keepdims=True)
        ex = jnp.exp(attn_logits - m)
        attn_w = ex * pl.reciprocal(jnp.sum(ex, axis=1, keepdims=True),
                                    approx=True)

        # attn_applied = attn_weights @ encoder_outputs
        attn_applied = jnp.dot(attn_w.astype(bf16), enc_ref[...],
                               preferred_element_type=f32)           # (1, H)

        # attn_combine + ReLU (concat-free; embedded half precomputed)
        x = (e_comb[t:t + 1, :]
             + jnp.dot(attn_applied.astype(bf16), comb_wa_ref[...],
                       preferred_element_type=f32))
        x = jnp.maximum(x, 0.0)

        # single GRU step (PyTorch gate ordering r, z, n); elementwise in f32
        gi = jnp.dot(x.astype(bf16), w_ih_ref[...],
                     preferred_element_type=f32) + b_ih_ref[...]     # (1, 3H)
        gh = hW[:, Lp:] + b_hh_ref[...]                              # (1, 3H)
        i_r, i_z, i_n = gi[:, 0:H], gi[:, H:2 * H], gi[:, 2 * H:3 * H]
        h_r, h_z, h_n = gh[:, 0:H], gh[:, H:2 * H], gh[:, 2 * H:3 * H]
        r = jax.nn.sigmoid(i_r + h_r)
        z = jax.nn.sigmoid(i_z + h_z)
        n = jnp.tanh(i_n + r * h_n)
        h = (1.0 - z) * n + z * h                                    # (1, H) f32

        hid_seq_ref[t:t + 1, :] = h
        attn_seq_ref[t:t + 1, :] = attn_w

    # --- readout hoisted off the recurrence: one M=T dot + exact softmax ------
    h_all = hid_seq_ref[...].astype(bf16)                            # (T, H)
    out_logits = (jnp.dot(h_all, out_w_ref[...], preferred_element_type=f32)
                  + out_b_ref[...])                                  # (T, Op)
    m2 = jnp.max(out_logits, axis=1, keepdims=True)
    ex2 = jnp.exp(out_logits - m2)
    out_seq_ref[...] = ex2 / jnp.sum(ex2, axis=1, keepdims=True)


# ----------------------------------------------------------------------------
# Wrapper: fused decode of a token sequence (single pallas_call, no grid)
# ----------------------------------------------------------------------------
@jax.jit
def attn_decoder_decode(params, tokens, hidden0, encoder_outputs):
    """Runs T chained decoder steps (identical per-step math to the module).

    Args:
      params: dict from init_params (bf16 matmul weights, padded lanes).
      tokens: (T,) int32 input token ids (one per decoder step).
      hidden0: (1, 1, H) initial hidden state.
      encoder_outputs: (L, H) float32.

    Returns:
      out_seq  (T, O)  softmax(out(h_t)) per step
      hid_seq  (T, H)  hidden state per step
      attn_seq (T, L)  attention weights per step
    """
    H = HIDDEN_DIM
    T = tokens.shape[0]
    L = encoder_outputs.shape[0]
    O = params["embedding"].shape[0]
    Lp = params["attn_b"].shape[1]
    Op = params["out_b"].shape[1]

    # Glue (once per sequence): embedding gather, encoder padding, hidden reshape.
    emb_tok = params["embedding"][tokens.astype(jnp.int32)]          # (T, H) bf16
    enc_pad = jnp.zeros((Lp, H), jnp.bfloat16)
    enc_pad = enc_pad.at[:L].set(encoder_outputs.astype(jnp.bfloat16))
    hid0 = hidden0.reshape(1, H).astype(jnp.float32)

    inputs = (
        emb_tok, hid0, enc_pad,
        params["attn_we"], params["attn_b"],
        params["comb_we"], params["comb_b"], params["comb_wa"],
        params["wh_fused"], params["b_hh"],
        params["w_ih"], params["b_ih"],
        params["out_w"], params["out_b"],
    )

    vmem = pl.BlockSpec(memory_space=pltpu.MemorySpace.VMEM)
    out_seq, hid_seq, attn_seq = pl.pallas_call(
        _attn_decoder_kernel,
        out_shape=(
            jax.ShapeDtypeStruct((T, Op), jnp.float32),
            jax.ShapeDtypeStruct((T, H), jnp.float32),
            jax.ShapeDtypeStruct((T, Lp), jnp.float32),
        ),
        in_specs=[vmem] * len(inputs),
        out_specs=(vmem, vmem, vmem),
    )(*inputs)

    return out_seq[:, :O], hid_seq, attn_seq[:, :L]


# ----------------------------------------------------------------------------
# Deterministic parameter init (shapes per AttnDecoderRNN.__init__),
# pre-transposed / split / fused / lane-padded / bf16 where fed to the MXU.
# ----------------------------------------------------------------------------
def init_params(key, output_size=OUTPUT_SIZE, max_length=MAX_LENGTH, H=HIDDEN_DIM):
    L_pad = _round_up(max_length, LANE)
    O_pad = _round_up(output_size, LANE)
    ks = jax.random.split(key, 11)
    s = 0.05
    bf = jnp.bfloat16

    def rnd(k, shape):
        return jax.random.normal(k, shape, jnp.float32) * s

    emb = rnd(ks[0], (output_size, H))
    attn_w = rnd(ks[1], (2 * H, max_length))     # Linear(2H, L), stored (in, out)
    attn_b = rnd(ks[2], (max_length,))
    comb_w = rnd(ks[3], (2 * H, H))              # Linear(2H, H), stored (in, out)
    comb_b = rnd(ks[4], (H,))
    w_ih = rnd(ks[5], (H, 3 * H))                # GRU, [r|z|n] columns
    w_hh = rnd(ks[6], (H, 3 * H))
    b_ih = rnd(ks[7], (3 * H,))
    b_hh = rnd(ks[8], (3 * H,))
    out_w = rnd(ks[9], (H, output_size))
    out_b = rnd(ks[10], (output_size,))

    attn_we = jnp.zeros((H, L_pad), jnp.float32).at[:, :max_length].set(attn_w[:H])
    attn_wh = jnp.zeros((H, L_pad), jnp.float32).at[:, :max_length].set(attn_w[H:])
    attn_b_p = jnp.full((1, L_pad), NEG_INF, jnp.float32).at[0, :max_length].set(attn_b)
    out_w_p = jnp.zeros((H, O_pad), jnp.float32).at[:, :output_size].set(out_w)
    out_b_p = jnp.full((1, O_pad), NEG_INF, jnp.float32).at[0, :output_size].set(out_b)

    # Fuse the two h-side weights so each step issues one h @ W dot.
    wh_fused = jnp.concatenate([attn_wh, w_hh], axis=1)      # (H, Lp + 3H) = (128, 512)

    return {
        "embedding": emb.astype(bf),               # (O, H) bf16
        "attn_we": attn_we.astype(bf),
        "attn_b": attn_b_p,
        "comb_we": comb_w[:H].astype(bf),
        "comb_b": comb_b.reshape(1, H),
        "comb_wa": comb_w[H:].astype(bf),
        "wh_fused": wh_fused.astype(bf),
        "b_hh": b_hh.reshape(1, 3 * H),
        "w_ih": w_ih.astype(bf),
        "b_ih": b_ih.reshape(1, 3 * H),
        "out_w": out_w_p.astype(bf),
        "out_b": out_b_p,
    }


# ----------------------------------------------------------------------------
# Pure-JAX reference (same per-step math, bf16 MXU operands, exact softmax)
# ----------------------------------------------------------------------------
def reference_decode(params, tokens, hidden0, encoder_outputs):
    H = HIDDEN_DIM
    f32, bf = jnp.float32, jnp.bfloat16
    L = encoder_outputs.shape[0]
    O = params["embedding"].shape[0]
    Lp = params["attn_b"].shape[1]
    attn_wh = params["wh_fused"][:, :Lp]
    w_hh = params["wh_fused"][:, Lp:]

    enc_pad = jnp.zeros((Lp, H), bf).at[:L].set(encoder_outputs.astype(bf))

    def dot(a, b):
        return jnp.dot(a.astype(bf), b, preferred_element_type=f32)

    h = hidden0.reshape(1, H).astype(f32)
    outs, hids, attns = [], [], []
    for t in range(tokens.shape[0]):
        e = params["embedding"][tokens[t]].reshape(1, H)
        logits = dot(e, params["attn_we"]) + dot(h, attn_wh) + params["attn_b"]
        aw = jax.nn.softmax(logits, axis=1)
        applied = dot(aw, enc_pad)
        x = dot(e, params["comb_we"]) + dot(applied, params["comb_wa"]) + params["comb_b"]
        x = jax.nn.relu(x)
        gi = dot(x, params["w_ih"]) + params["b_ih"]
        gh = dot(h, w_hh) + params["b_hh"]
        i_r, i_z, i_n = gi[:, :H], gi[:, H:2 * H], gi[:, 2 * H:]
        h_r, h_z, h_n = gh[:, :H], gh[:, H:2 * H], gh[:, 2 * H:]
        r = jax.nn.sigmoid(i_r + h_r)
        z = jax.nn.sigmoid(i_z + h_z)
        n = jnp.tanh(i_n + r * h_n)
        h = (1.0 - z) * n + z * h
        out = jax.nn.softmax(dot(h, params["out_w"]) + params["out_b"], axis=1)
        outs.append(out[:, :O])
        hids.append(h)
        attns.append(aw[:, :L])
    return (jnp.concatenate(outs, 0), jnp.concatenate(hids, 0),
            jnp.concatenate(attns, 0))


if __name__ == "__main__":
    key = jax.random.PRNGKey(0)
    pkey, hkey, ekey, tkey = jax.random.split(key, 4)

    params = init_params(pkey)
    T = 8                                                            # decode steps
    tokens = jax.random.randint(tkey, (T,), 0, OUTPUT_SIZE, jnp.int32)
    hidden0 = jax.random.normal(hkey, (1, 1, HIDDEN_DIM), jnp.float32) * 0.1
    encoder_outputs = jax.random.normal(
        ekey, (MAX_LENGTH, HIDDEN_DIM), jnp.float32) * 0.1

    out_seq, hid_seq, attn_seq = attn_decoder_decode(
        params, tokens, hidden0, encoder_outputs)
    jax.block_until_ready((out_seq, hid_seq, attn_seq))

    # sanity check vs. pure-JAX reference (approx reciprocal / bf16 tolerance)
    ref_out, ref_hid, ref_attn = reference_decode(
        params, tokens, hidden0, encoder_outputs)
    np.testing.assert_allclose(np.asarray(out_seq), np.asarray(ref_out),
                               rtol=2e-2, atol=5e-3)
    np.testing.assert_allclose(np.asarray(hid_seq), np.asarray(ref_hid),
                               rtol=2e-2, atol=5e-3)
    np.testing.assert_allclose(np.asarray(attn_seq), np.asarray(ref_attn),
                               rtol=2e-2, atol=5e-3)

    # probabilities over the real vocabulary / real encoder positions sum to ~1
    np.testing.assert_allclose(np.asarray(out_seq).sum(-1), 1.0, atol=1e-2)
    np.testing.assert_allclose(np.asarray(attn_seq).sum(-1), 1.0, atol=1e-2)

    assert out_seq.shape == (T, OUTPUT_SIZE)
    assert hid_seq.shape == (T, HIDDEN_DIM)
    assert attn_seq.shape == (T, MAX_LENGTH)
    final_hidden = hid_seq[-1].reshape(1, 1, HIDDEN_DIM)
    assert final_hidden.shape == (1, 1, HIDDEN_DIM)
    print("KERNEL_OK")
</pallas_src>

<mosaic_0001>
module attributes {stable_mosaic.version = 11 : i64} {
  func.func @_attn_decoder_kernel(%arg0: memref<8x128xbf16, #tpu.memory_space<vmem>>, %arg1: memref<1x128xf32, #tpu.memory_space<vmem>>, %arg2: memref<128x128xbf16, #tpu.memory_space<vmem>>, %arg3: memref<128x128xbf16, #tpu.memory_space<vmem>>, %arg4: memref<1x128xf32, #tpu.memory_space<vmem>>, %arg5: memref<128x128xbf16, #tpu.memory_space<vmem>>, %arg6: memref<1x128xf32, #tpu.memory_space<vmem>>, %arg7: memref<128x128xbf16, #tpu.memory_space<vmem>>, %arg8: memref<128x512xbf16, #tpu.memory_space<vmem>>, %arg9: memref<1x384xf32, #tpu.memory_space<vmem>>, %arg10: memref<128x384xbf16, #tpu.memory_space<vmem>>, %arg11: memref<1x384xf32, #tpu.memory_space<vmem>>, %arg12: memref<128x128xbf16, #tpu.memory_space<vmem>>, %arg13: memref<1x128xf32, #tpu.memory_space<vmem>>, %arg14: memref<8x128xf32, #tpu.memory_space<vmem>>, %arg15: memref<8x128xf32, #tpu.memory_space<vmem>>, %arg16: memref<8x128xf32, #tpu.memory_space<vmem>>) attributes {dimension_semantics = [], scalar_prefetch = 0 : i64, scratch_operands = 0 : i64, tpu.core_type = #tpu.core_type<tc>} {
    %c0 = arith.constant 0 : index
    %c0_0 = arith.constant 0 : index
    %0 = vector.load %arg0[%c0, %c0_0] : memref<8x128xbf16, #tpu.memory_space<vmem>>, vector<8x128xbf16>
    %c0_1 = arith.constant 0 : index
    %c0_2 = arith.constant 0 : index
    %1 = vector.load %arg3[%c0_1, %c0_2] : memref<128x128xbf16, #tpu.memory_space<vmem>>, vector<128x128xbf16>
    %cst = arith.constant dense<0.000000e+00> : vector<8x128xf32>
    %2 = tpu.matmul %0, %1, %cst {dimension_numbers = #tpu.dot_dimension_numbers<[1], [0], [0], [1], [0, 0, 1, 1], [], []>} : vector<8x128xbf16>, vector<128x128xbf16>, vector<8x128xf32> -> vector<8x128xf32>
    %c0_3 = arith.constant 0 : index
    %c0_4 = arith.constant 0 : index
    %3 = vector.load %arg4[%c0_3, %c0_4] : memref<1x128xf32, #tpu.memory_space<vmem>>, vector<1x128xf32>
    %4 = vector.broadcast %3 : vector<1x128xf32> to vector<8x128xf32>
    %5 = arith.addf %2, %4 : vector<8x128xf32>
    %c0_5 = arith.constant 0 : index
    %c0_6 = arith.constant 0 : index
    %6 = vector.load %arg5[%c0_5, %c0_6] : memref<128x128xbf16, #tpu.memory_space<vmem>>, vector<128x128xbf16>
    %cst_7 = arith.constant dense<0.000000e+00> : vector<8x128xf32>
    %7 = tpu.matmul %0, %6, %cst_7 {dimension_numbers = #tpu.dot_dimension_numbers<[1], [0], [0], [1], [0, 0, 1, 1], [], []>} : vector<8x128xbf16>, vector<128x128xbf16>, vector<8x128xf32> -> vector<8x128xf32>
    %c0_8 = arith.constant 0 : index
    %c0_9 = arith.constant 0 : index
    %8 = vector.load %arg6[%c0_8, %c0_9] : memref<1x128xf32, #tpu.memory_space<vmem>>, vector<1x128xf32>
    %9 = vector.broadcast %8 : vector<1x128xf32> to vector<8x128xf32>
    %10 = arith.addf %7, %9 : vector<8x128xf32>
    %c0_10 = arith.constant 0 : index
    %c0_11 = arith.constant 0 : index
    %11 = vector.load %arg1[%c0_10, %c0_11] : memref<1x128xf32, #tpu.memory_space<vmem>>, vector<1x128xf32>
    %12 = arith.truncf %11 : vector<1x128xf32> to vector<1x128xbf16>
    %c0_12 = arith.constant 0 : index
    %c0_13 = arith.constant 0 : index
    %13 = vector.load %arg8[%c0_12, %c0_13] : memref<128x512xbf16, #tpu.memory_space<vmem>>, vector<128x512xbf16>
    %cst_14 = arith.constant dense<0.000000e+00> : vector<1x512xf32>
    %14 = tpu.matmul %12, %13, %cst_14 {dimension_numbers = #tpu.dot_dimension_numbers<[1], [0], [0], [1], [0, 0, 1, 1], [], []>} : vector<1x128xbf16>, vector<128x512xbf16>, vector<1x512xf32> -> vector<1x512xf32>
    %15 = vector.extract_strided_slice %5 {offsets = [0, 0], sizes = [1, 128], strides = [1, 1]} : vector<8x128xf32> to vector<1x128xf32>
    %16 = vector.extract_strided_slice %14 {offsets = [0, 0], sizes = [1, 128], strides = [1, 1]} : vector<1x512xf32> to vector<1x128xf32>
    %17 = arith.addf %15, %16 : vector<1x128xf32>
    %cst_15 = arith.constant dense<0xFF800000> : vector<1xf32>
    %18 = vector.multi_reduction <maximumf>, %17, %cst_15 [1] : vector<1x128xf32> to vector<1xf32>
    %19 = vector.shape_cast %18 : vector<1xf32> to vector<1x1xf32>
    %20 = vector.broadcast %19 : vector<1x1xf32> to vector<1x128xf32>
    %21 = arith.subf %17, %20 : vector<1x128xf32>
    %22 = math.exp %21 : vector<1x128xf32>
    %cst_16 = arith.constant dense<0.000000e+00> : vector<1xf32>
    %23 = vector.multi_reduction <add>, %22, %cst_16 [1] : vector<1x128xf32> to vector<1xf32>
    %24 = vector.shape_cast %23 : vector<1xf32> to vector<1x1xf32>
    %25 = tpu.reciprocal %24 {approx = true} : vector<1x1xf32> -> vector<1x1xf32>
    %26 = vector.broadcast %25 : vector<1x1xf32> to vector<1x128xf32>
    %27 = arith.mulf %22, %26 : vector<1x128xf32>
    %28 = arith.truncf %27 : vector<1x128xf32> to vector<1x128xbf16>
    %c0_17 = arith.constant 0 : index
    %c0_18 = arith.constant 0 : index
    %29 = vector.load %arg2[%c0_17, %c0_18] : memref<128x128xbf16, #tpu.memory_space<vmem>>, vector<128x128xbf16>
    %cst_19 = arith.constant dense<0.000000e+00> : vector<1x128xf32>
    %30 = tpu.matmul %28, %29, %cst_19 {dimension_numbers = #tpu.dot_dimension_numbers<[1], [0], [0], [1], [0, 0, 1, 1], [], []>} : vector<1x128xbf16>, vector<128x128xbf16>, vector<1x128xf32> -> vector<1x128xf32>
    %31 = vector.extract_strided_slice %10 {offsets = [0, 0], sizes = [1, 128], strides = [1, 1]} : vector<8x128xf32> to vector<1x128xf32>
    %32 = arith.truncf %30 : vector<1x128xf32> to vector<1x128xbf16>
    %c0_20 = arith.constant 0 : index
    %c0_21 = arith.constant 0 : index
    %33 = vector.load %arg7[%c0_20, %c0_21] : memref<128x128xbf16, #tpu.memory_space<vmem>>, vector<128x128xbf16>
    %cst_22 = arith.constant dense<0.000000e+00> : vector<1x128xf32>
    %34 = tpu.matmul %32, %33, %cst_22 {dimension_numbers = #tpu.dot_dimension_numbers<[1], [0], [0], [1], [0, 0, 1, 1], [], []>} : vector<1x128xbf16>, vector<128x128xbf16>, vector<1x128xf32> -> vector<1x128xf32>
    %35 = arith.addf %31, %34 : vector<1x128xf32>
    %cst_23 = arith.constant 0.000000e+00 : f32
    %36 = vector.broadcast %cst_23 : f32 to vector<1x128xf32>
    %37 = arith.maximumf %35, %36 : vector<1x128xf32>
    %38 = arith.truncf %37 : vector<1x128xf32> to vector<1x128xbf16>
    %c0_24 = arith.constant 0 : index
    %c0_25 = arith.constant 0 : index
    %39 = vector.load %arg10[%c0_24, %c0_25] : memref<128x384xbf16, #tpu.memory_space<vmem>>, vector<128x384xbf16>
    %cst_26 = arith.constant dense<0.000000e+00> : vector<1x384xf32>
    %40 = tpu.matmul %38, %39, %cst_26 {dimension_numbers = #tpu.dot_dimension_numbers<[1], [0], [0], [1], [0, 0, 1, 1], [], []>} : vector<1x128xbf16>, vector<128x384xbf16>, vector<1x384xf32> -> vector<1x384xf32>
    %c0_27 = arith.constant 0 : index
    %c0_28 = arith.constant 0 : index
    %41 = vector.load %arg11[%c0_27, %c0_28] : memref<1x384xf32, #tpu.memory_space<vmem>>, vector<1x384xf32>
    %42 = arith.addf %40, %41 : vector<1x384xf32>
    %43 = vector.extract_strided_slice %14 {offsets = [0, 128], sizes = [1, 384], strides = [1, 1]} : vector<1x512xf32> to vector<1x384xf32>
    %c0_29 = arith.constant 0 : index
    %c0_30 = arith.constant 0 : index
    %44 = vector.load %arg9[%c0_29, %c0_30] : memref<1x384xf32, #tpu.memory_space<vmem>>, vector<1x384xf32>
    %45 = arith.addf %43, %44 : vector<1x384xf32>
    %46 = vector.extract_strided_slice %42 {offsets = [0, 0], sizes = [1, 128], strides = [1, 1]} : vector<1x384xf32> to vector<1x128xf32>
    %47 = vector.extract_strided_slice %42 {offsets = [0, 128], sizes = [1, 128], strides = [1, 1]} : vector<1x384xf32> to vector<1x128xf32>
    %48 = vector.extract_strided_slice %42 {offsets = [0, 256], sizes = [1, 128], strides = [1, 1]} : vector<1x384xf32> to vector<1x128xf32>
    %49 = vector.extract_strided_slice %45 {offsets = [0, 0], sizes = [1, 128], strides = [1, 1]} : vector<1x384xf32> to vector<1x128xf32>
    %50 = vector.extract_strided_slice %45 {offsets = [0, 128], sizes = [1, 128], strides = [1, 1]} : vector<1x384xf32> to vector<1x128xf32>
    %51 = vector.extract_strided_slice %45 {offsets = [0, 256], sizes = [1, 128], strides = [1, 1]} : vector<1x384xf32> to vector<1x128xf32>
    %52 = arith.addf %46, %49 : vector<1x128xf32>
    %53 = arith.negf %52 : vector<1x128xf32>
    %54 = math.exp %53 : vector<1x128xf32>
    %cst_31 = arith.constant 1.000000e+00 : f32
    %55 = vector.broadcast %cst_31 : f32 to vector<1x128xf32>
    %56 = arith.addf %55, %54 : vector<1x128xf32>
    %57 = arith.divf %55, %56 : vector<1x128xf32>
    %58 = arith.addf %47, %50 : vector<1x128xf32>
    %59 = arith.negf %58 : vector<1x128xf32>
    %60 = math.exp %59 : vector<1x128xf32>
    %cst_32 = arith.constant 1.000000e+00 : f32
    %61 = vector.broadcast %cst_32 : f32 to vector<1x128xf32>
    %62 = arith.addf %61, %60 : vector<1x128xf32>
    %63 = arith.divf %61, %62 : vector<1x128xf32>
    %64 = arith.mulf %57, %51 : vector<1x128xf32>
    %65 = arith.addf %48, %64 : vector<1x128xf32>
    %66 = math.tanh %65 : vector<1x128xf32>
    %cst_33 = arith.constant 1.000000e+00 : f32
    %67 = vector.broadcast %cst_33 : f32 to vector<1x128xf32>
    %68 = arith.subf %67, %63 : vector<1x128xf32>
    %69 = arith.mulf %68, %66 : vector<1x128xf32>
    %70 = arith.mulf %63, %11 : vector<1x128xf32>
    %71 = arith.addf %69, %70 : vector<1x128xf32>
    %c0_34 = arith.constant 0 : index
    %c0_35 = arith.constant 0 : index
    %72 = vector.load %arg15[%c0_34, %c0_35] : memref<8x128xf32, #tpu.memory_space<vmem>>, vector<1x128xf32>
    tpu.vector_store %arg15[%c0_34, %c0_35], %71 {strides = array<i32>} : memref<8x128xf32, #tpu.memory_space<vmem>>, vector<1x128xf32>,
    %c0_36 = arith.constant 0 : index
    %c0_37 = arith.constant 0 : index
    %73 = vector.load %arg16[%c0_36, %c0_37] : memref<8x128xf32, #tpu.memory_space<vmem>>, vector<1x128xf32>
    tpu.vector_store %arg16[%c0_36, %c0_37], %27 {strides = array<i32>} : memref<8x128xf32, #tpu.memory_space<vmem>>, vector<1x128xf32>,
    %74 = arith.truncf %71 : vector<1x128xf32> to vector<1x128xbf16>
    %c0_38 = arith.constant 0 : index
    %c0_39 = arith.constant 0 : index
    %75 = vector.load %arg8[%c0_38, %c0_39] : memref<128x512xbf16, #tpu.memory_space<vmem>>, vector<128x512xbf16>
    %cst_40 = arith.constant dense<0.000000e+00> : vector<1x512xf32>
    %76 = tpu.matmul %74, %75, %cst_40 {dimension_numbers = #tpu.dot_dimension_numbers<[1], [0], [0], [1], [0, 0, 1, 1], [], []>} : vector<1x128xbf16>, vector<128x512xbf16>, vector<1x512xf32> -> vector<1x512xf32>
    %77 = vector.extract_strided_slice %5 {offsets = [1, 0], sizes = [1, 128], strides = [1, 1]} : vector<8x128xf32> to vector<1x128xf32>
    %78 = vector.extract_strided_slice %76 {offsets = [0, 0], sizes = [1, 128], strides = [1, 1]} : vector<1x512xf32> to vector<1x128xf32>
    %79 = arith.addf %77, %78 : vector<1x128xf32>
    %cst_41 = arith.constant dense<0xFF800000> : vector<1xf32>
    %80 = vector.multi_reduction <maximumf>, %79, %cst_41 [1] : vector<1x128xf32> to vector<1xf32>
    %81 = vector.shape_cast %80 : vector<1xf32> to vector<1x1xf32>
    %82 = vector.broadcast %81 : vector<1x1xf32> to vector<1x128xf32>
    %83 = arith.subf %79, %82 : vector<1x128xf32>
    %84 = math.exp %83 : vector<1x128xf32>
    %cst_42 = arith.constant dense<0.000000e+00> : vector<1xf32>
    %85 = vector.multi_reduction <add>, %84, %cst_42 [1] : vector<1x128xf32> to vector<1xf32>
    %86 = vector.shape_cast %85 : vector<1xf32> to vector<1x1xf32>
    %87 = tpu.reciprocal %86 {approx = true} : vector<1x1xf32> -> vector<1x1xf32>
    %88 = vector.broadcast %87 : vector<1x1xf32> to vector<1x128xf32>
    %89 = arith.mulf %84, %88 : vector<1x128xf32>
    %90 = arith.truncf %89 : vector<1x128xf32> to vector<1x128xbf16>
    %c0_43 = arith.constant 0 : index
    %c0_44 = arith.constant 0 : index
    %91 = vector.load %arg2[%c0_43, %c0_44] : memref<128x128xbf16, #tpu.memory_space<vmem>>, vector<128x128xbf16>
    %cst_45 = arith.constant dense<0.000000e+00> : vector<1x128xf32>
    %92 = tpu.matmul %90, %91, %cst_45 {dimension_numbers = #tpu.dot_dimension_numbers<[1], [0], [0], [1], [0, 0, 1, 1], [], []>} : vector<1x128xbf16>, vector<128x128xbf16>, vector<1x128xf32> -> vector<1x128xf32>
    %93 = vector.extract_strided_slice %10 {offsets = [1, 0], sizes = [1, 128], strides = [1, 1]} : vector<8x128xf32> to vector<1x128xf32>
    %94 = arith.truncf %92 : vector<1x128xf32> to vector<1x128xbf16>
    %c0_46 = arith.constant 0 : index
    %c0_47 = arith.constant 0 : index
    %95 = vector.load %arg7[%c0_46, %c0_47] : memref<128x128xbf16, #tpu.memory_space<vmem>>, vector<128x128xbf16>
    %cst_48 = arith.constant dense<0.000000e+00> : vector<1x128xf32>
    %96 = tpu.matmul %94, %95, %cst_48 {dimension_numbers = #tpu.dot_dimension_numbers<[1], [0], [0], [1], [0, 0, 1, 1], [], []>} : vector<1x128xbf16>, vector<128x128xbf16>, vector<1x128xf32> -> vector<1x128xf32>
    %97 = arith.addf %93, %96 : vector<1x128xf32>
    %cst_49 = arith.constant 0.000000e+00 : f32
    %98 = vector.broadcast %cst_49 : f32 to vector<1x128xf32>
    %99 = arith.maximumf %97, %98 : vector<1x128xf32>
    %100 = arith.truncf %99 : vector<1x128xf32> to vector<1x128xbf16>
    %c0_50 = arith.constant 0 : index
    %c0_51 = arith.constant 0 : index
    %101 = vector.load %arg10[%c0_50, %c0_51] : memref<128x384xbf16, #tpu.memory_space<vmem>>, vector<128x384xbf16>
    %cst_52 = arith.constant dense<0.000000e+00> : vector<1x384xf32>
    %102 = tpu.matmul %100, %101, %cst_52 {dimension_numbers = #tpu.dot_dimension_numbers<[1], [0], [0], [1], [0, 0, 1, 1], [], []>} : vector<1x128xbf16>, vector<128x384xbf16>, vector<1x384xf32> -> vector<1x384xf32>
    %c0_53 = arith.constant 0 : index
    %c0_54 = arith.constant 0 : index
    %103 = vector.load %arg11[%c0_53, %c0_54] : memref<1x384xf32, #tpu.memory_space<vmem>>, vector<1x384xf32>
    %104 = arith.addf %102, %103 : vector<1x384xf32>
    %105 = vector.extract_strided_slice %76 {offsets = [0, 128], sizes = [1, 384], strides = [1, 1]} : vector<1x512xf32> to vector<1x384xf32>
    %c0_55 = arith.constant 0 : index
    %c0_56 = arith.constant 0 : index
    %106 = vector.load %arg9[%c0_55, %c0_56] : memref<1x384xf32, #tpu.memory_space<vmem>>, vector<1x384xf32>
    %107 = arith.addf %105, %106 : vector<1x384xf32>
    %108 = vector.extract_strided_slice %104 {offsets = [0, 0], sizes = [1, 128], strides = [1, 1]} : vector<1x384xf32> to vector<1x128xf32>
    %109 = vector.extract_strided_slice %104 {offsets = [0, 128], sizes = [1, 128], strides = [1, 1]} : vector<1x384xf32> to vector<1x128xf32>
    %110 = vector.extract_strided_slice %104 {offsets = [0, 256], sizes = [1, 128], strides = [1, 1]} : vector<1x384xf32> to vector<1x128xf32>
    %111 = vector.extract_strided_slice %107 {offsets = [0, 0], sizes = [1, 128], strides = [1, 1]} : vector<1x384xf32> to vector<1x128xf32>
    %112 = vector.extract_strided_slice %107 {offsets = [0, 128], sizes = [1, 128], strides = [1, 1]} : vector<1x384xf32> to vector<1x128xf32>
    %113 = vector.extract_strided_slice %107 {offsets = [0, 256], sizes = [1, 128], strides = [1, 1]} : vector<1x384xf32> to vector<1x128xf32>
    %114 = arith.addf %108, %111 : vector<1x128xf32>
    %115 = arith.negf %114 : vector<1x128xf32>
    %116 = math.exp %115 : vector<1x128xf32>
    %cst_57 = arith.constant 1.000000e+00 : f32
    %117 = vector.broadcast %cst_57 : f32 to vector<1x128xf32>
    %118 = arith.addf %117, %116 : vector<1x128xf32>
    %119 = arith.divf %117, %118 : vector<1x128xf32>
    %120 = arith.addf %109, %112 : vector<1x128xf32>
    %121 = arith.negf %120 : vector<1x128xf32>
    %122 = math.exp %121 : vector<1x128xf32>
    %cst_58 = arith.constant 1.000000e+00 : f32
    %123 = vector.broadcast %cst_58 : f32 to vector<1x128xf32>
    %124 = arith.addf %123, %122 : vector<1x128xf32>
    %125 = arith.divf %123, %124 : vector<1x128xf32>
    %126 = arith.mulf %119, %113 : vector<1x128xf32>
    %127 = arith.addf %110, %126 : vector<1x128xf32>
    %128 = math.tanh %127 : vector<1x128xf32>
    %cst_59 = arith.constant 1.000000e+00 : f32
    %129 = vector.broadcast %cst_59 : f32 to vector<1x128xf32>
    %130 = arith.subf %129, %125 : vector<1x128xf32>
    %131 = arith.mulf %130, %128 : vector<1x128xf32>
    %132 = arith.mulf %125, %71 : vector<1x128xf32>
    %133 = arith.addf %131, %132 : vector<1x128xf32>
    %c1 = arith.constant 1 : index
    %c0_60 = arith.constant 0 : index
    %134 = vector.load %arg15[%c1, %c0_60] : memref<8x128xf32, #tpu.memory_space<vmem>>, vector<1x128xf32>
    tpu.vector_store %arg15[%c1, %c0_60], %133 {strides = array<i32>} : memref<8x128xf32, #tpu.memory_space<vmem>>, vector<1x128xf32>,
    %c1_61 = arith.constant 1 : index
    %c0_62 = arith.constant 0 : index
    %135 = vector.load %arg16[%c1_61, %c0_62] : memref<8x128xf32, #tpu.memory_space<vmem>>, vector<1x128xf32>
    tpu.vector_store %arg16[%c1_61, %c0_62], %89 {strides = array<i32>} : memref<8x128xf32, #tpu.memory_space<vmem>>, vector<1x128xf32>,
    %136 = arith.truncf %133 : vector<1x128xf32> to vector<1x128xbf16>
    %c0_63 = arith.constant 0 : index
    %c0_64 = arith.constant 0 : index
    %137 = vector.load %arg8[%c0_63, %c0_64] : memref<128x512xbf16, #tpu.memory_space<vmem>>, vector<128x512xbf16>
    %cst_65 = arith.constant dense<0.000000e+00> : vector<1x512xf32>
    %138 = tpu.matmul %136, %137, %cst_65 {dimension_numbers = #tpu.dot_dimension_numbers<[1], [0], [0], [1], [0, 0, 1, 1], [], []>} : vector<1x128xbf16>, vector<128x512xbf16>, vector<1x512xf32> -> vector<1x512xf32>
    %139 = vector.extract_strided_slice %5 {offsets = [2, 0], sizes = [1, 128], strides = [1, 1]} : vector<8x128xf32> to vector<1x128xf32>
    %140 = vector.extract_strided_slice %138 {offsets = [0, 0], sizes = [1, 128], strides = [1, 1]} : vector<1x512xf32> to vector<1x128xf32>
    %141 = arith.addf %139, %140 : vector<1x128xf32>
    %cst_66 = arith.constant dense<0xFF800000> : vector<1xf32>
    %142 = vector.multi_reduction <maximumf>, %141, %cst_66 [1] : vector<1x128xf32> to vector<1xf32>
    %143 = vector.shape_cast %142 : vector<1xf32> to vector<1x1xf32>
    %144 = vector.broadcast %143 : vector<1x1xf32> to vector<1x128xf32>
    %145 = arith.subf %141, %144 : vector<1x128xf32>
    %146 = math.exp %145 : vector<1x128xf32>
    %cst_67 = arith.constant dense<0.000000e+00> : vector<1xf32>
    %147 = vector.multi_reduction <add>, %146, %cst_67 [1] : vector<1x128xf32> to vector<1xf32>
    %148 = vector.shape_cast %147 : vector<1xf32> to vector<1x1xf32>
    %149 = tpu.reciprocal %148 {approx = true} : vector<1x1xf32> -> vector<1x1xf32>
    %150 = vector.broadcast %149 : vector<1x1xf32> to vector<1x128xf32>
    %151 = arith.mulf %146, %150 : vector<1x128xf32>
    %152 = arith.truncf %151 : vector<1x128xf32> to vector<1x128xbf16>
    %c0_68 = arith.constant 0 : index
    %c0_69 = arith.constant 0 : index
    %153 = vector.load %arg2[%c0_68, %c0_69] : memref<128x128xbf16, #tpu.memory_space<vmem>>, vector<128x128xbf16>
    %cst_70 = arith.constant dense<0.000000e+00> : vector<1x128xf32>
    %154 = tpu.matmul %152, %153, %cst_70 {dimension_numbers = #tpu.dot_dimension_numbers<[1], [0], [0], [1], [0, 0, 1, 1], [], []>} : vector<1x128xbf16>, vector<128x128xbf16>, vector<1x128xf32> -> vector<1x128xf32>
    %155 = vector.extract_strided_slice %10 {offsets = [2, 0], sizes = [1, 128], strides = [1, 1]} : vector<8x128xf32> to vector<1x128xf32>
    %156 = arith.truncf %154 : vector<1x128xf32> to vector<1x128xbf16>
    %c0_71 = arith.constant 0 : index
    %c0_72 = arith.constant 0 : index
    %157 = vector.load %arg7[%c0_71, %c0_72] : memref<128x128xbf16, #tpu.memory_space<vmem>>, vector<128x128xbf16>
    %cst_73 = arith.constant dense<0.000000e+00> : vector<1x128xf32>
    %158 = tpu.matmul %156, %157, %cst_73 {dimension_numbers = #tpu.dot_dimension_numbers<[1], [0], [0], [1], [0, 0, 1, 1], [], []>} : vector<1x128xbf16>, vector<128x128xbf16>, vector<1x128xf32> -> vector<1x128xf32>
    %159 = arith.addf %155, %158 : vector<1x128xf32>
    %cst_74 = arith.constant 0.000000e+00 : f32
    %160 = vector.broadcast %cst_74 : f32 to vector<1x128xf32>
    %161 = arith.maximumf %159, %160 : vector<1x128xf32>
    %162 = arith.truncf %161 : vector<1x128xf32> to vector<1x128xbf16>
    %c0_75 = arith.constant 0 : index
    %c0_76 = arith.constant 0 : index
    %163 = vector.load %arg10[%c0_75, %c0_76] : memref<128x384xbf16, #tpu.memory_space<vmem>>, vector<128x384xbf16>
    %cst_77 = arith.constant dense<0.000000e+00> : vector<1x384xf32>
    %164 = tpu.matmul %162, %163, %cst_77 {dimension_numbers = #tpu.dot_dimension_numbers<[1], [0], [0], [1], [0, 0, 1, 1], [], []>} : vector<1x128xbf16>, vector<128x384xbf16>, vector<1x384xf32> -> vector<1x384xf32>
    %c0_78 = arith.constant 0 : index
    %c0_79 = arith.constant 0 : index
    %165 = vector.load %arg11[%c0_78, %c0_79] : memref<1x384xf32, #tpu.memory_space<vmem>>, vector<1x384xf32>
    %166 = arith.addf %164, %165 : vector<1x384xf32>
    %167 = vector.extract_strided_slice %138 {offsets = [0, 128], sizes = [1, 384], strides = [1, 1]} : vector<1x512xf32> to vector<1x384xf32>
    %c0_80 = arith.constant 0 : index
    %c0_81 = arith.constant 0 : index
    %168 = vector.load %arg9[%c0_80, %c0_81] : memref<1x384xf32, #tpu.memory_space<vmem>>, vector<1x384xf32>
    %169 = arith.addf %167, %168 : vector<1x384xf32>
    %170 = vector.extract_strided_slice %166 {offsets = [0, 0], sizes = [1, 128], strides = [1, 1]} : vector<1x384xf32> to vector<1x128xf32>
    %171 = vector.extract_strided_slice %166 {offsets = [0, 128], sizes = [1, 128], strides = [1, 1]} : vector<1x384xf32> to vector<1x128xf32>
    %172 = vector.extract_strided_slice %166 {offsets = [0, 256], sizes = [1, 128], strides = [1, 1]} : vector<1x384xf32> to vector<1x128xf32>
    %173 = vector.extract_strided_slice %169 {offsets = [0, 0], sizes = [1, 128], strides = [1, 1]} : vector<1x384xf32> to vector<1x128xf32>
    %174 = vector.extract_strided_slice %169 {offsets = [0, 128], sizes = [1, 128], strides = [1, 1]} : vector<1x384xf32> to vector<1x128xf32>
    %175 = vector.extract_strided_slice %169 {offsets = [0, 256], sizes = [1, 128], strides = [1, 1]} : vector<1x384xf32> to vector<1x128xf32>
    %176 = arith.addf %170, %173 : vector<1x128xf32>
    %177 = arith.negf %176 : vector<1x128xf32>
    %178 = math.exp %177 : vector<1x128xf32>
    %cst_82 = arith.constant 1.000000e+00 : f32
    %179 = vector.broadcast %cst_82 : f32 to vector<1x128xf32>
    %180 = arith.addf %179, %178 : vector<1x128xf32>
    %181 = arith.divf %179, %180 : vector<1x128xf32>
    %182 = arith.addf %171, %174 : vector<1x128xf32>
    %183 = arith.negf %182 : vector<1x128xf32>
    %184 = math.exp %183 : vector<1x128xf32>
    %cst_83 = arith.constant 1.000000e+00 : f32
    %185 = vector.broadcast %cst_83 : f32 to vector<1x128xf32>
    %186 = arith.addf %185, %184 : vector<1x128xf32>
    %187 = arith.divf %185, %186 : vector<1x128xf32>
    %188 = arith.mulf %181, %175 : vector<1x128xf32>
    %189 = arith.addf %172, %188 : vector<1x128xf32>
    %190 = math.tanh %189 : vector<1x128xf32>
    %cst_84 = arith.constant 1.000000e+00 : f32
    %191 = vector.broadcast %cst_84 : f32 to vector<1x128xf32>
    %192 = arith.subf %191, %187 : vector<1x128xf32>
    %193 = arith.mulf %192, %190 : vector<1x128xf32>
    %194 = arith.mulf %187, %133 : vector<1x128xf32>
    %195 = arith.addf %193, %194 : vector<1x128xf32>
    %c2 = arith.constant 2 : index
    %c0_85 = arith.constant 0 : index
    %196 = vector.load %arg15[%c2, %c0_85] : memref<8x128xf32, #tpu.memory_space<vmem>>, vector<1x128xf32>
    tpu.vector_store %arg15[%c2, %c0_85], %195 {strides = array<i32>} : memref<8x128xf32, #tpu.memory_space<vmem>>, vector<1x128xf32>,
    %c2_86 = arith.constant 2 : index
    %c0_87 = arith.constant 0 : index
    %197 = vector.load %arg16[%c2_86, %c0_87] : memref<8x128xf32, #tpu.memory_space<vmem>>, vector<1x128xf32>
    tpu.vector_store %arg16[%c2_86, %c0_87], %151 {strides = array<i32>} : memref<8x128xf32, #tpu.memory_space<vmem>>, vector<1x128xf32>,
    %198 = arith.truncf %195 : vector<1x128xf32> to vector<1x128xbf16>
    %c0_88 = arith.constant 0 : index
    %c0_89 = arith.constant 0 : index
    %199 = vector.load %arg8[%c0_88, %c0_89] : memref<128x512xbf16, #tpu.memory_space<vmem>>, vector<128x512xbf16>
    %cst_90 = arith.constant dense<0.000000e+00> : vector<1x512xf32>
    %200 = tpu.matmul %198, %199, %cst_90 {dimension_numbers = #tpu.dot_dimension_numbers<[1], [0], [0], [1], [0, 0, 1, 1], [], []>} : vector<1x128xbf16>, vector<128x512xbf16>, vector<1x512xf32> -> vector<1x512xf32>
    %201 = vector.extract_strided_slice %5 {offsets = [3, 0], sizes = [1, 128], strides = [1, 1]} : vector<8x128xf32> to vector<1x128xf32>
    %202 = vector.extract_strided_slice %200 {offsets = [0, 0], sizes = [1, 128], strides = [1, 1]} : vector<1x512xf32> to vector<1x128xf32>
    %203 = arith.addf %201, %202 : vector<1x128xf32>
    %cst_91 = arith.constant dense<0xFF800000> : vector<1xf32>
    %204 = vector.multi_reduction <maximumf>, %203, %cst_91 [1] : vector<1x128xf32> to vector<1xf32>
    %205 = vector.shape_cast %204 : vector<1xf32> to vector<1x1xf32>
    %206 = vector.broadcast %205 : vector<1x1xf32> to vector<1x128xf32>
    %207 = arith.subf %203, %206 : vector<1x128xf32>
    %208 = math.exp %207 : vector<1x128xf32>
    %cst_92 = arith.constant dense<0.000000e+00> : vector<1xf32>
    %209 = vector.multi_reduction <add>, %208, %cst_92 [1] : vector<1x128xf32> to vector<1xf32>
    %210 = vector.shape_cast %209 : vector<1xf32> to vector<1x1xf32>
    %211 = tpu.reciprocal %210 {approx = true} : vector<1x1xf32> -> vector<1x1xf32>
    %212 = vector.broadcast %211 : vector<1x1xf32> to vector<1x128xf32>
    %213 = arith.mulf %208, %212 : vector<1x128xf32>
    %214 = arith.truncf %213 : vector<1x128xf32> to vector<1x128xbf16>
    %c0_93 = arith.constant 0 : index
    %c0_94 = arith.constant 0 : index
    %215 = vector.load %arg2[%c0_93, %c0_94] : memref<128x128xbf16, #tpu.memory_space<vmem>>, vector<128x128xbf16>
    %cst_95 = arith.constant dense<0.000000e+00> : vector<1x128xf32>
    %216 = tpu.matmul %214, %215, %cst_95 {dimension_numbers = #tpu.dot_dimension_numbers<[1], [0], [0], [1], [0, 0, 1, 1], [], []>} : vector<1x128xbf16>, vector<128x128xbf16>, vector<1x128xf32> -> vector<1x128xf32>
    %217 = vector.extract_strided_slice %10 {offsets = [3, 0], sizes = [1, 128], strides = [1, 1]} : vector<8x128xf32> to vector<1x128xf32>
    %218 = arith.truncf %216 : vector<1x128xf32> to vector<1x128xbf16>
    %c0_96 = arith.constant 0 : index
    %c0_97 = arith.constant 0 : index
    %219 = vector.load %arg7[%c0_96, %c0_97] : memref<128x128xbf16, #tpu.memory_space<vmem>>, vector<128x128xbf16>
    %cst_98 = arith.constant dense<0.000000e+00> : vector<1x128xf32>
    %220 = tpu.matmul %218, %219, %cst_98 {dimension_numbers = #tpu.dot_dimension_numbers<[1], [0], [0], [1], [0, 0, 1, 1], [], []>} : vector<1x128xbf16>, vector<128x128xbf16>, vector<1x128xf32> -> vector<1x128xf32>
    %221 = arith.addf %217, %220 : vector<1x128xf32>
    %cst_99 = arith.constant 0.000000e+00 : f32
    %222 = vector.broadcast %cst_99 : f32 to vector<1x128xf32>
    %223 = arith.maximumf %221, %222 : vector<1x128xf32>
    %224 = arith.truncf %223 : vector<1x128xf32> to vector<1x128xbf16>
    %c0_100 = arith.constant 0 : index
    %c0_101 = arith.constant 0 : index
    %225 = vector.load %arg10[%c0_100, %c0_101] : memref<128x384xbf16, #tpu.memory_space<vmem>>, vector<128x384xbf16>
    %cst_102 = arith.constant dense<0.000000e+00> : vector<1x384xf32>
    %226 = tpu.matmul %224, %225, %cst_102 {dimension_numbers = #tpu.dot_dimension_numbers<[1], [0], [0], [1], [0, 0, 1, 1], [], []>} : vector<1x128xbf16>, vector<128x384xbf16>, vector<1x384xf32> -> vector<1x384xf32>
    %c0_103 = arith.constant 0 : index
    %c0_104 = arith.constant 0 : index
    %227 = vector.load %arg11[%c0_103, %c0_104] : memref<1x384xf32, #tpu.memory_space<vmem>>, vector<1x384xf32>
    %228 = arith.addf %226, %227 : vector<1x384xf32>
    %229 = vector.extract_strided_slice %200 {offsets = [0, 128], sizes = [1, 384], strides = [1, 1]} : vector<1x512xf32> to vector<1x384xf32>
    %c0_105 = arith.constant 0 : index
    %c0_106 = arith.constant 0 : index
    %230 = vector.load %arg9[%c0_105, %c0_106] : memref<1x384xf32, #tpu.memory_space<vmem>>, vector<1x384xf32>
    %231 = arith.addf %229, %230 : vector<1x384xf32>
    %232 = vector.extract_strided_slice %228 {offsets = [0, 0], sizes = [1, 128], strides = [1, 1]} : vector<1x384xf32> to vector<1x128xf32>
    %233 = vector.extract_strided_slice %228 {offsets = [0, 128], sizes = [1, 128], strides = [1, 1]} : vector<1x384xf32> to vector<1x128xf32>
    %234 = vector.extract_strided_slice %228 {offsets = [0, 256], sizes = [1, 128], strides = [1, 1]} : vector<1x384xf32> to vector<1x128xf32>
    %235 = vector.extract_strided_slice %231 {offsets = [0, 0], sizes = [1, 128], strides = [1, 1]} : vector<1x384xf32> to vector<1x128xf32>
    %236 = vector.extract_strided_slice %231 {offsets = [0, 128], sizes = [1, 128], strides = [1, 1]} : vector<1x384xf32> to vector<1x128xf32>
    %237 = vector.extract_strided_slice %231 {offsets = [0, 256], sizes = [1, 128], strides = [1, 1]} : vector<1x384xf32> to vector<1x128xf32>
    %238 = arith.addf %232, %235 : vector<1x128xf32>
    %239 = arith.negf %238 : vector<1x128xf32>
    %240 = math.exp %239 : vector<1x128xf32>
    %cst_107 = arith.constant 1.000000e+00 : f32
    %241 = vector.broadcast %cst_107 : f32 to vector<1x128xf32>
    %242 = arith.addf %241, %240 : vector<1x128xf32>
    %243 = arith.divf %241, %242 : vector<1x128xf32>
    %244 = arith.addf %233, %236 : vector<1x128xf32>
    %245 = arith.negf %244 : vector<1x128xf32>
    %246 = math.exp %245 : vector<1x128xf32>
    %cst_108 = arith.constant 1.000000e+00 : f32
    %247 = vector.broadcast %cst_108 : f32 to vector<1x128xf32>
    %248 = arith.addf %247, %246 : vector<1x128xf32>
    %249 = arith.divf %247, %248 : vector<1x128xf32>
    %250 = arith.mulf %243, %237 : vector<1x128xf32>
    %251 = arith.addf %234, %250 : vector<1x128xf32>
    %252 = math.tanh %251 : vector<1x128xf32>
    %cst_109 = arith.constant 1.000000e+00 : f32
    %253 = vector.broadcast %cst_109 : f32 to vector<1x128xf32>
    %254 = arith.subf %253, %249 : vector<1x128xf32>
    %255 = arith.mulf %254, %252 : vector<1x128xf32>
    %256 = arith.mulf %249, %195 : vector<1x128xf32>
    %257 = arith.addf %255, %256 : vector<1x128xf32>
    %c3 = arith.constant 3 : index
    %c0_110 = arith.constant 0 : index
    %258 = vector.load %arg15[%c3, %c0_110] : memref<8x128xf32, #tpu.memory_space<vmem>>, vector<1x128xf32>
    tpu.vector_store %arg15[%c3, %c0_110], %257 {strides = array<i32>} : memref<8x128xf32, #tpu.memory_space<vmem>>, vector<1x128xf32>,
    %c3_111 = arith.constant 3 : index
    %c0_112 = arith.constant 0 : index
    %259 = vector.load %arg16[%c3_111, %c0_112] : memref<8x128xf32, #tpu.memory_space<vmem>>, vector<1x128xf32>
    tpu.vector_store %arg16[%c3_111, %c0_112], %213 {strides = array<i32>} : memref<8x128xf32, #tpu.memory_space<vmem>>, vector<1x128xf32>,
    %260 = arith.truncf %257 : vector<1x128xf32> to vector<1x128xbf16>
    %c0_113 = arith.constant 0 : index
    %c0_114 = arith.constant 0 : index
    %261 = vector.load %arg8[%c0_113, %c0_114] : memref<128x512xbf16, #tpu.memory_space<vmem>>, vector<128x512xbf16>
    %cst_115 = arith.constant dense<0.000000e+00> : vector<1x512xf32>
    %262 = tpu.matmul %260, %261, %cst_115 {dimension_numbers = #tpu.dot_dimension_numbers<[1], [0], [0], [1], [0, 0, 1, 1], [], []>} : vector<1x128xbf16>, vector<128x512xbf16>, vector<1x512xf32> -> vector<1x512xf32>
    %263 = vector.extract_strided_slice %5 {offsets = [4, 0], sizes = [1, 128], strides = [1, 1]} : vector<8x128xf32> to vector<1x128xf32>
    %264 = vector.extract_strided_slice %262 {offsets = [0, 0], sizes = [1, 128], strides = [1, 1]} : vector<1x512xf32> to vector<1x128xf32>
    %265 = arith.addf %263, %264 : vector<1x128xf32>
    %cst_116 = arith.constant dense<0xFF800000> : vector<1xf32>
    %266 = vector.multi_reduction <maximumf>, %265, %cst_116 [1] : vector<1x128xf32> to vector<1xf32>
    %267 = vector.shape_cast %266 : vector<1xf32> to vector<1x1xf32>
    %268 = vector.broadcast %267 : vector<1x1xf32> to vector<1x128xf32>
    %269 = arith.subf %265, %268 : vector<1x128xf32>
    %270 = math.exp %269 : vector<1x128xf32>
    %cst_117 = arith.constant dense<0.000000e+00> : vector<1xf32>
    %271 = vector.multi_reduction <add>, %270, %cst_117 [1] : vector<1x128xf32> to vector<1xf32>
    %272 = vector.shape_cast %271 : vector<1xf32> to vector<1x1xf32>
    %273 = tpu.reciprocal %272 {approx = true} : vector<1x1xf32> -> vector<1x1xf32>
    %274 = vector.broadcast %273 : vector<1x1xf32> to vector<1x128xf32>
    %275 = arith.mulf %270, %274 : vector<1x128xf32>
    %276 = arith.truncf %275 : vector<1x128xf32> to vector<1x128xbf16>
    %c0_118 = arith.constant 0 : index
    %c0_119 = arith.constant 0 : index
    %277 = vector.load %arg2[%c0_118, %c0_119] : memref<128x128xbf16, #tpu.memory_space<vmem>>, vector<128x128xbf16>
    %cst_120 = arith.constant dense<0.000000e+00> : vector<1x128xf32>
    %278 = tpu.matmul %276, %277, %cst_120 {dimension_numbers = #tpu.dot_dimension_numbers<[1], [0], [0], [1], [0, 0, 1, 1], [], []>} : vector<1x128xbf16>, vector<128x128xbf16>, vector<1x128xf32> -> vector<1x128xf32>
    %279 = vector.extract_strided_slice %10 {offsets = [4, 0], sizes = [1, 128], strides = [1, 1]} : vector<8x128xf32> to vector<1x128xf32>
    %280 = arith.truncf %278 : vector<1x128xf32> to vector<1x128xbf16>
    %c0_121 = arith.constant 0 : index
    %c0_122 = arith.constant 0 : index
    %281 = vector.load %arg7[%c0_121, %c0_122] : memref<128x128xbf16, #tpu.memory_space<vmem>>, vector<128x128xbf16>
    %cst_123 = arith.constant dense<0.000000e+00> : vector<1x128xf32>
    %282 = tpu.matmul %280, %281, %cst_123 {dimension_numbers = #tpu.dot_dimension_numbers<[1], [0], [0], [1], [0, 0, 1, 1], [], []>} : vector<1x128xbf16>, vector<128x128xbf16>, vector<1x128xf32> -> vector<1x128xf32>
    %283 = arith.addf %279, %282 : vector<1x128xf32>
    %cst_124 = arith.constant 0.000000e+00 : f32
    %284 = vector.broadcast %cst_124 : f32 to vector<1x128xf32>
    %285 = arith.maximumf %283, %284 : vector<1x128xf32>
    %286 = arith.truncf %285 : vector<1x128xf32> to vector<1x128xbf16>
    %c0_125 = arith.constant 0 : index
    %c0_126 = arith.constant 0 : index
    %287 = vector.load %arg10[%c0_125, %c0_126] : memref<128x384xbf16, #tpu.memory_space<vmem>>, vector<128x384xbf16>
    %cst_127 = arith.constant dense<0.000000e+00> : vector<1x384xf32>
    %288 = tpu.matmul %286, %287, %cst_127 {dimension_numbers = #tpu.dot_dimension_numbers<[1], [0], [0], [1], [0, 0, 1, 1], [], []>} : vector<1x128xbf16>, vector<128x384xbf16>, vector<1x384xf32> -> vector<1x384xf32>
    %c0_128 = arith.constant 0 : index
    %c0_129 = arith.constant 0 : index
    %289 = vector.load %arg11[%c0_128, %c0_129] : memref<1x384xf32, #tpu.memory_space<vmem>>, vector<1x384xf32>
    %290 = arith.addf %288, %289 : vector<1x384xf32>
    %291 = vector.extract_strided_slice %262 {offsets = [0, 128], sizes = [1, 384], strides = [1, 1]} : vector<1x512xf32> to vector<1x384xf32>
    %c0_130 = arith.constant 0 : index
    %c0_131 = arith.constant 0 : index
    %292 = vector.load %arg9[%c0_130, %c0_131] : memref<1x384xf32, #tpu.memory_space<vmem>>, vector<1x384xf32>
    %293 = arith.addf %291, %292 : vector<1x384xf32>
    %294 = vector.extract_strided_slice %290 {offsets = [0, 0], sizes = [1, 128], strides = [1, 1]} : vector<1x384xf32> to vector<1x128xf32>
    %295 = vector.extract_strided_slice %290 {offsets = [0, 128], sizes = [1, 128], strides = [1, 1]} : vector<1x384xf32> to vector<1x128xf32>
    %296 = vector.extract_strided_slice %290 {offsets = [0, 256], sizes = [1, 128], strides = [1, 1]} : vector<1x384xf32> to vector<1x128xf32>
    %297 = vector.extract_strided_slice %293 {offsets = [0, 0], sizes = [1, 128], strides = [1, 1]} : vector<1x384xf32> to vector<1x128xf32>
    %298 = vector.extract_strided_slice %293 {offsets = [0, 128], sizes = [1, 128], strides = [1, 1]} : vector<1x384xf32> to vector<1x128xf32>
    %299 = vector.extract_strided_slice %293 {offsets = [0, 256], sizes = [1, 128], strides = [1, 1]} : vector<1x384xf32> to vector<1x128xf32>
    %300 = arith.addf %294, %297 : vector<1x128xf32>
    %301 = arith.negf %300 : vector<1x128xf32>
    %302 = math.exp %301 : vector<1x128xf32>
    %cst_132 = arith.constant 1.000000e+00 : f32
    %303 = vector.broadcast %cst_132 : f32 to vector<1x128xf32>
    %304 = arith.addf %303, %302 : vector<1x128xf32>
    %305 = arith.divf %303, %304 : vector<1x128xf32>
    %306 = arith.addf %295, %298 : vector<1x128xf32>
    %307 = arith.negf %306 : vector<1x128xf32>
    %308 = math.exp %307 : vector<1x128xf32>
    %cst_133 = arith.constant 1.000000e+00 : f32
    %309 = vector.broadcast %cst_133 : f32 to vector<1x128xf32>
    %310 = arith.addf %309, %308 : vector<1x128xf32>
    %311 = arith.divf %309, %310 : vector<1x128xf32>
    %312 = arith.mulf %305, %299 : vector<1x128xf32>
    %313 = arith.addf %296, %312 : vector<1x128xf32>
    %314 = math.tanh %313 : vector<1x128xf32>
    %cst_134 = arith.constant 1.000000e+00 : f32
    %315 = vector.broadcast %cst_134 : f32 to vector<1x128xf32>
    %316 = arith.subf %315, %311 : vector<1x128xf32>
    %317 = arith.mulf %316, %314 : vector<1x128xf32>
    %318 = arith.mulf %311, %257 : vector<1x128xf32>
    %319 = arith.addf %317, %318 : vector<1x128xf32>
    %c4 = arith.constant 4 : index
    %c0_135 = arith.constant 0 : index
    %320 = vector.load %arg15[%c4, %c0_135] : memref<8x128xf32, #tpu.memory_space<vmem>>, vector<1x128xf32>
    tpu.vector_store %arg15[%c4, %c0_135], %319 {strides = array<i32>} : memref<8x128xf32, #tpu.memory_space<vmem>>, vector<1x128xf32>,
    %c4_136 = arith.constant 4 : index
    %c0_137 = arith.constant 0 : index
    %321 = vector.load %arg16[%c4_136, %c0_137] : memref<8x128xf32, #tpu.memory_space<vmem>>, vector<1x128xf32>
    tpu.vector_store %arg16[%c4_136, %c0_137], %275 {strides = array<i32>} : memref<8x128xf32, #tpu.memory_space<vmem>>, vector<1x128xf32>,
    %322 = arith.truncf %319 : vector<1x128xf32> to vector<1x128xbf16>
    %c0_138 = arith.constant 0 : index
    %c0_139 = arith.constant 0 : index
    %323 = vector.load %arg8[%c0_138, %c0_139] : memref<128x512xbf16, #tpu.memory_space<vmem>>, vector<128x512xbf16>
    %cst_140 = arith.constant dense<0.000000e+00> : vector<1x512xf32>
    %324 = tpu.matmul %322, %323, %cst_140 {dimension_numbers = #tpu.dot_dimension_numbers<[1], [0], [0], [1], [0, 0, 1, 1], [], []>} : vector<1x128xbf16>, vector<128x512xbf16>, vector<1x512xf32> -> vector<1x512xf32>
    %325 = vector.extract_strided_slice %5 {offsets = [5, 0], sizes = [1, 128], strides = [1, 1]} : vector<8x128xf32> to vector<1x128xf32>
    %326 = vector.extract_strided_slice %324 {offsets = [0, 0], sizes = [1, 128], strides = [1, 1]} : vector<1x512xf32> to vector<1x128xf32>
    %327 = arith.addf %325, %326 : vector<1x128xf32>
    %cst_141 = arith.constant dense<0xFF800000> : vector<1xf32>
    %328 = vector.multi_reduction <maximumf>, %327, %cst_141 [1] : vector<1x128xf32> to vector<1xf32>
    %329 = vector.shape_cast %328 : vector<1xf32> to vector<1x1xf32>
    %330 = vector.broadcast %329 : vector<1x1xf32> to vector<1x128xf32>
    %331 = arith.subf %327, %330 : vector<1x128xf32>
    %332 = math.exp %331 : vector<1x128xf32>
    %cst_142 = arith.constant dense<0.000000e+00> : vector<1xf32>
    %333 = vector.multi_reduction <add>, %332, %cst_142 [1] : vector<1x128xf32> to vector<1xf32>
    %334 = vector.shape_cast %333 : vector<1xf32> to vector<1x1xf32>
    %335 = tpu.reciprocal %334 {approx = true} : vector<1x1xf32> -> vector<1x1xf32>
    %336 = vector.broadcast %335 : vector<1x1xf32> to vector<1x128xf32>
    %337 = arith.mulf %332, %336 : vector<1x128xf32>
    %338 = arith.truncf %337 : vector<1x128xf32> to vector<1x128xbf16>
    %c0_143 = arith.constant 0 : index
    %c0_144 = arith.constant 0 : index
    %339 = vector.load %arg2[%c0_143, %c0_144] : memref<128x128xbf16, #tpu.memory_space<vmem>>, vector<128x128xbf16>
    %cst_145 = arith.constant dense<0.000000e+00> : vector<1x128xf32>
    %340 = tpu.matmul %338, %339, %cst_145 {dimension_numbers = #tpu.dot_dimension_numbers<[1], [0], [0], [1], [0, 0, 1, 1], [], []>} : vector<1x128xbf16>, vector<128x128xbf16>, vector<1x128xf32> -> vector<1x128xf32>
    %341 = vector.extract_strided_slice %10 {offsets = [5, 0], sizes = [1, 128], strides = [1, 1]} : vector<8x128xf32> to vector<1x128xf32>
    %342 = arith.truncf %340 : vector<1x128xf32> to vector<1x128xbf16>
    %c0_146 = arith.constant 0 : index
    %c0_147 = arith.constant 0 : index
    %343 = vector.load %arg7[%c0_146, %c0_147] : memref<128x128xbf16, #tpu.memory_space<vmem>>, vector<128x128xbf16>
    %cst_148 = arith.constant dense<0.000000e+00> : vector<1x128xf32>
    %344 = tpu.matmul %342, %343, %cst_148 {dimension_numbers = #tpu.dot_dimension_numbers<[1], [0], [0], [1], [0, 0, 1, 1], [], []>} : vector<1x128xbf16>, vector<128x128xbf16>, vector<1x128xf32> -> vector<1x128xf32>
    %345 = arith.addf %341, %344 : vector<1x128xf32>
    %cst_149 = arith.constant 0.000000e+00 : f32
    %346 = vector.broadcast %cst_149 : f32 to vector<1x128xf32>
    %347 = arith.maximumf %345, %346 : vector<1x128xf32>
    %348 = arith.truncf %347 : vector<1x128xf32> to vector<1x128xbf16>
    %c0_150 = arith.constant 0 : index
    %c0_151 = arith.constant 0 : index
    %349 = vector.load %arg10[%c0_150, %c0_151] : memref<128x384xbf16, #tpu.memory_space<vmem>>, vector<128x384xbf16>
    %cst_152 = arith.constant dense<0.000000e+00> : vector<1x384xf32>
    %350 = tpu.matmul %348, %349, %cst_152 {dimension_numbers = #tpu.dot_dimension_numbers<[1], [0], [0], [1], [0, 0, 1, 1], [], []>} : vector<1x128xbf16>, vector<128x384xbf16>, vector<1x384xf32> -> vector<1x384xf32>
    %c0_153 = arith.constant 0 : index
    %c0_154 = arith.constant 0 : index
    %351 = vector.load %arg11[%c0_153, %c0_154] : memref<1x384xf32, #tpu.memory_space<vmem>>, vector<1x384xf32>
    %352 = arith.addf %350, %351 : vector<1x384xf32>
    %353 = vector.extract_strided_slice %324 {offsets = [0, 128], sizes = [1, 384], strides = [1, 1]} : vector<1x512xf32> to vector<1x384xf32>
    %c0_155 = arith.constant 0 : index
    %c0_156 = arith.constant 0 : index
    %354 = vector.load %arg9[%c0_155, %c0_156] : memref<1x384xf32, #tpu.memory_space<vmem>>, vector<1x384xf32>
    %355 = arith.addf %353, %354 : vector<1x384xf32>
    %356 = vector.extract_strided_slice %352 {offsets = [0, 0], sizes = [1, 128], strides = [1, 1]} : vector<1x384xf32> to vector<1x128xf32>
    %357 = vector.extract_strided_slice %352 {offsets = [0, 128], sizes = [1, 128], strides = [1, 1]} : vector<1x384xf32> to vector<1x128xf32>
    %358 = vector.extract_strided_slice %352 {offsets = [0, 256], sizes = [1, 128], strides = [1, 1]} : vector<1x384xf32> to vector<1x128xf32>
    %359 = vector.extract_strided_slice %355 {offsets = [0, 0], sizes = [1, 128], strides = [1, 1]} : vector<1x384xf32> to vector<1x128xf32>
    %360 = vector.extract_strided_slice %355 {offsets = [0, 128], sizes = [1, 128], strides = [1, 1]} : vector<1x384xf32> to vector<1x128xf32>
    %361 = vector.extract_strided_slice %355 {offsets = [0, 256], sizes = [1, 128], strides = [1, 1]} : vector<1x384xf32> to vector<1x128xf32>
    %362 = arith.addf %356, %359 : vector<1x128xf32>
    %363 = arith.negf %362 : vector<1x128xf32>
    %364 = math.exp %363 : vector<1x128xf32>
    %cst_157 = arith.constant 1.000000e+00 : f32
    %365 = vector.broadcast %cst_157 : f32 to vector<1x128xf32>
    %366 = arith.addf %365, %364 : vector<1x128xf32>
    %367 = arith.divf %365, %366 : vector<1x128xf32>
    %368 = arith.addf %357, %360 : vector<1x128xf32>
    %369 = arith.negf %368 : vector<1x128xf32>
    %370 = math.exp %369 : vector<1x128xf32>
    %cst_158 = arith.constant 1.000000e+00 : f32
    %371 = vector.broadcast %cst_158 : f32 to vector<1x128xf32>
    %372 = arith.addf %371, %370 : vector<1x128xf32>
    %373 = arith.divf %371, %372 : vector<1x128xf32>
    %374 = arith.mulf %367, %361 : vector<1x128xf32>
    %375 = arith.addf %358, %374 : vector<1x128xf32>
    %376 = math.tanh %375 : vector<1x128xf32>
    %cst_159 = arith.constant 1.000000e+00 : f32
    %377 = vector.broadcast %cst_159 : f32 to vector<1x128xf32>
    %378 = arith.subf %377, %373 : vector<1x128xf32>
    %379 = arith.mulf %378, %376 : vector<1x128xf32>
    %380 = arith.mulf %373, %319 : vector<1x128xf32>
    %381 = arith.addf %379, %380 : vector<1x128xf32>
    %c5 = arith.constant 5 : index
    %c0_160 = arith.constant 0 : index
    %382 = vector.load %arg15[%c5, %c0_160] : memref<8x128xf32, #tpu.memory_space<vmem>>, vector<1x128xf32>
    tpu.vector_store %arg15[%c5, %c0_160], %381 {strides = array<i32>} : memref<8x128xf32, #tpu.memory_space<vmem>>, vector<1x128xf32>,
    %c5_161 = arith.constant 5 : index
    %c0_162 = arith.constant 0 : index
    %383 = vector.load %arg16[%c5_161, %c0_162] : memref<8x128xf32, #tpu.memory_space<vmem>>, vector<1x128xf32>
    tpu.vector_store %arg16[%c5_161, %c0_162], %337 {strides = array<i32>} : memref<8x128xf32, #tpu.memory_space<vmem>>, vector<1x128xf32>,
    %384 = arith.truncf %381 : vector<1x128xf32> to vector<1x128xbf16>
    %c0_163 = arith.constant 0 : index
    %c0_164 = arith.constant 0 : index
    %385 = vector.load %arg8[%c0_163, %c0_164] : memref<128x512xbf16, #tpu.memory_space<vmem>>, vector<128x512xbf16>
    %cst_165 = arith.constant dense<0.000000e+00> : vector<1x512xf32>
    %386 = tpu.matmul %384, %385, %cst_165 {dimension_numbers = #tpu.dot_dimension_numbers<[1], [0], [0], [1], [0, 0, 1, 1], [], []>} : vector<1x128xbf16>, vector<128x512xbf16>, vector<1x512xf32> -> vector<1x512xf32>
    %387 = vector.extract_strided_slice %5 {offsets = [6, 0], sizes = [1, 128], strides = [1, 1]} : vector<8x128xf32> to vector<1x128xf32>
    %388 = vector.extract_strided_slice %386 {offsets = [0, 0], sizes = [1, 128], strides = [1, 1]} : vector<1x512xf32> to vector<1x128xf32>
    %389 = arith.addf %387, %388 : vector<1x128xf32>
    %cst_166 = arith.constant dense<0xFF800000> : vector<1xf32>
    %390 = vector.multi_reduction <maximumf>, %389, %cst_166 [1] : vector<1x128xf32> to vector<1xf32>
    %391 = vector.shape_cast %390 : vector<1xf32> to vector<1x1xf32>
    %392 = vector.broadcast %391 : vector<1x1xf32> to vector<1x128xf32>
    %393 = arith.subf %389, %392 : vector<1x128xf32>
    %394 = math.exp %393 : vector<1x128xf32>
    %cst_167 = arith.constant dense<0.000000e+00> : vector<1xf32>
    %395 = vector.multi_reduction <add>, %394, %cst_167 [1] : vector<1x128xf32> to vector<1xf32>
    %396 = vector.shape_cast %395 : vector<1xf32> to vector<1x1xf32>
    %397 = tpu.reciprocal %396 {approx = true} : vector<1x1xf32> -> vector<1x1xf32>
    %398 = vector.broadcast %397 : vector<1x1xf32> to vector<1x128xf32>
    %399 = arith.mulf %394, %398 : vector<1x128xf32>
    %400 = arith.truncf %399 : vector<1x128xf32> to vector<1x128xbf16>
    %c0_168 = arith.constant 0 : index
    %c0_169 = arith.constant 0 : index
    %401 = vector.load %arg2[%c0_168, %c0_169] : memref<128x128xbf16, #tpu.memory_space<vmem>>, vector<128x128xbf16>
    %cst_170 = arith.constant dense<0.000000e+00> : vector<1x128xf32>
    %402 = tpu.matmul %400, %401, %cst_170 {dimension_numbers = #tpu.dot_dimension_numbers<[1], [0], [0], [1], [0, 0, 1, 1], [], []>} : vector<1x128xbf16>, vector<128x128xbf16>, vector<1x128xf32> -> vector<1x128xf32>
    %403 = vector.extract_strided_slice %10 {offsets = [6, 0], sizes = [1, 128], strides = [1, 1]} : vector<8x128xf32> to vector<1x128xf32>
    %404 = arith.truncf %402 : vector<1x128xf32> to vector<1x128xbf16>
    %c0_171 = arith.constant 0 : index
    %c0_172 = arith.constant 0 : index
    %405 = vector.load %arg7[%c0_171, %c0_172] : memref<128x128xbf16, #tpu.memory_space<vmem>>, vector<128x128xbf16>
    %cst_173 = arith.constant dense<0.000000e+00> : vector<1x128xf32>
    %406 = tpu.matmul %404, %405, %cst_173 {dimension_numbers = #tpu.dot_dimension_numbers<[1], [0], [0], [1], [0, 0, 1, 1], [], []>} : vector<1x128xbf16>, vector<128x128xbf16>, vector<1x128xf32> -> vector<1x128xf32>
    %407 = arith.addf %403, %406 : vector<1x128xf32>
    %cst_174 = arith.constant 0.000000e+00 : f32
    %408 = vector.broadcast %cst_174 : f32 to vector<1x128xf32>
    %409 = arith.maximumf %407, %408 : vector<1x128xf32>
    %410 = arith.truncf %409 : vector<1x128xf32> to vector<1x128xbf16>
    %c0_175 = arith.constant 0 : index
    %c0_176 = arith.constant 0 : index
    %411 = vector.load %arg10[%c0_175, %c0_176] : memref<128x384xbf16, #tpu.memory_space<vmem>>, vector<128x384xbf16>
    %cst_177 = arith.constant dense<0.000000e+00> : vector<1x384xf32>
    %412 = tpu.matmul %410, %411, %cst_177 {dimension_numbers = #tpu.dot_dimension_numbers<[1], [0], [0], [1], [0, 0, 1, 1], [], []>} : vector<1x128xbf16>, vector<128x384xbf16>, vector<1x384xf32> -> vector<1x384xf32>
    %c0_178 = arith.constant 0 : index
    %c0_179 = arith.constant 0 : index
    %413 = vector.load %arg11[%c0_178, %c0_179] : memref<1x384xf32, #tpu.memory_space<vmem>>, vector<1x384xf32>
    %414 = arith.addf %412, %413 : vector<1x384xf32>
    %415 = vector.extract_strided_slice %386 {offsets = [0, 128], sizes = [1, 384], strides = [1, 1]} : vector<1x512xf32> to vector<1x384xf32>
    %c0_180 = arith.constant 0 : index
    %c0_181 = arith.constant 0 : index
    %416 = vector.load %arg9[%c0_180, %c0_181] : memref<1x384xf32, #tpu.memory_space<vmem>>, vector<1x384xf32>
    %417 = arith.addf %415, %416 : vector<1x384xf32>
    %418 = vector.extract_strided_slice %414 {offsets = [0, 0], sizes = [1, 128], strides = [1, 1]} : vector<1x384xf32> to vector<1x128xf32>
    %419 = vector.extract_strided_slice %414 {offsets = [0, 128], sizes = [1, 128], strides = [1, 1]} : vector<1x384xf32> to vector<1x128xf32>
    %420 = vector.extract_strided_slice %414 {offsets = [0, 256], sizes = [1, 128], strides = [1, 1]} : vector<1x384xf32> to vector<1x128xf32>
    %421 = vector.extract_strided_slice %417 {offsets = [0, 0], sizes = [1, 128], strides = [1, 1]} : vector<1x384xf32> to vector<1x128xf32>
    %422 = vector.extract_strided_slice %417 {offsets = [0, 128], sizes = [1, 128], strides = [1, 1]} : vector<1x384xf32> to vector<1x128xf32>
    %423 = vector.extract_strided_slice %417 {offsets = [0, 256], sizes = [1, 128], strides = [1, 1]} : vector<1x384xf32> to vector<1x128xf32>
    %424 = arith.addf %418, %421 : vector<1x128xf32>
    %425 = arith.negf %424 : vector<1x128xf32>
    %426 = math.exp %425 : vector<1x128xf32>
    %cst_182 = arith.constant 1.000000e+00 : f32
    %427 = vector.broadcast %cst_182 : f32 to vector<1x128xf32>
    %428 = arith.addf %427, %426 : vector<1x128xf32>
    %429 = arith.divf %427, %428 : vector<1x128xf32>
    %430 = arith.addf %419, %422 : vector<1x128xf32>
    %431 = arith.negf %430 : vector<1x128xf32>
    %432 = math.exp %431 : vector<1x128xf32>
    %cst_183 = arith.constant 1.000000e+00 : f32
    %433 = vector.broadcast %cst_183 : f32 to vector<1x128xf32>
    %434 = arith.addf %433, %432 : vector<1x128xf32>
    %435 = arith.divf %433, %434 : vector<1x128xf32>
    %436 = arith.mulf %429, %423 : vector<1x128xf32>
    %437 = arith.addf %420, %436 : vector<1x128xf32>
    %438 = math.tanh %437 : vector<1x128xf32>
    %cst_184 = arith.constant 1.000000e+00 : f32
    %439 = vector.broadcast %cst_184 : f32 to vector<1x128xf32>
    %440 = arith.subf %439, %435 : vector<1x128xf32>
    %441 = arith.mulf %440, %438 : vector<1x128xf32>
    %442 = arith.mulf %435, %381 : vector<1x128xf32>
    %443 = arith.addf %441, %442 : vector<1x128xf32>
    %c6 = arith.constant 6 : index
    %c0_185 = arith.constant 0 : index
    %444 = vector.load %arg15[%c6, %c0_185] : memref<8x128xf32, #tpu.memory_space<vmem>>, vector<1x128xf32>
    tpu.vector_store %arg15[%c6, %c0_185], %443 {strides = array<i32>} : memref<8x128xf32, #tpu.memory_space<vmem>>, vector<1x128xf32>,
    %c6_186 = arith.constant 6 : index
    %c0_187 = arith.constant 0 : index
    %445 = vector.load %arg16[%c6_186, %c0_187] : memref<8x128xf32, #tpu.memory_space<vmem>>, vector<1x128xf32>
    tpu.vector_store %arg16[%c6_186, %c0_187], %399 {strides = array<i32>} : memref<8x128xf32, #tpu.memory_space<vmem>>, vector<1x128xf32>,
    %446 = arith.truncf %443 : vector<1x128xf32> to vector<1x128xbf16>
    %c0_188 = arith.constant 0 : index
    %c0_189 = arith.constant 0 : index
    %447 = vector.load %arg8[%c0_188, %c0_189] : memref<128x512xbf16, #tpu.memory_space<vmem>>, vector<128x512xbf16>
    %cst_190 = arith.constant dense<0.000000e+00> : vector<1x512xf32>
    %448 = tpu.matmul %446, %447, %cst_190 {dimension_numbers = #tpu.dot_dimension_numbers<[1], [0], [0], [1], [0, 0, 1, 1], [], []>} : vector<1x128xbf16>, vector<128x512xbf16>, vector<1x512xf32> -> vector<1x512xf32>
    %449 = vector.extract_strided_slice %5 {offsets = [7, 0], sizes = [1, 128], strides = [1, 1]} : vector<8x128xf32> to vector<1x128xf32>
    %450 = vector.extract_strided_slice %448 {offsets = [0, 0], sizes = [1, 128], strides = [1, 1]} : vector<1x512xf32> to vector<1x128xf32>
    %451 = arith.addf %449, %450 : vector<1x128xf32>
    %cst_191 = arith.constant dense<0xFF800000> : vector<1xf32>
    %452 = vector.multi_reduction <maximumf>, %451, %cst_191 [1] : vector<1x128xf32> to vector<1xf32>
    %453 = vector.shape_cast %452 : vector<1xf32> to vector<1x1xf32>
    %454 = vector.broadcast %453 : vector<1x1xf32> to vector<1x128xf32>
    %455 = arith.subf %451, %454 : vector<1x128xf32>
    %456 = math.exp %455 : vector<1x128xf32>
    %cst_192 = arith.constant dense<0.000000e+00> : vector<1xf32>
    %457 = vector.multi_reduction <add>, %456, %cst_192 [1] : vector<1x128xf32> to vector<1xf32>
    %458 = vector.shape_cast %457 : vector<1xf32> to vector<1x1xf32>
    %459 = tpu.reciprocal %458 {approx = true} : vector<1x1xf32> -> vector<1x1xf32>
    %460 = vector.broadcast %459 : vector<1x1xf32> to vector<1x128xf32>
    %461 = arith.mulf %456, %460 : vector<1x128xf32>
    %462 = arith.truncf %461 : vector<1x128xf32> to vector<1x128xbf16>
    %c0_193 = arith.constant 0 : index
    %c0_194 = arith.constant 0 : index
    %463 = vector.load %arg2[%c0_193, %c0_194] : memref<128x128xbf16, #tpu.memory_space<vmem>>, vector<128x128xbf16>
    %cst_195 = arith.constant dense<0.000000e+00> : vector<1x128xf32>
    %464 = tpu.matmul %462, %463, %cst_195 {dimension_numbers = #tpu.dot_dimension_numbers<[1], [0], [0], [1], [0, 0, 1, 1], [], []>} : vector<1x128xbf16>, vector<128x128xbf16>, vector<1x128xf32> -> vector<1x128xf32>
    %465 = vector.extract_strided_slice %10 {offsets = [7, 0], sizes = [1, 128], strides = [1, 1]} : vector<8x128xf32> to vector<1x128xf32>
    %466 = arith.truncf %464 : vector<1x128xf32> to vector<1x128xbf16>
    %c0_196 = arith.constant 0 : index
    %c0_197 = arith.constant 0 : index
    %467 = vector.load %arg7[%c0_196, %c0_197] : memref<128x128xbf16, #tpu.memory_space<vmem>>, vector<128x128xbf16>
    %cst_198 = arith.constant dense<0.000000e+00> : vector<1x128xf32>
    %468 = tpu.matmul %466, %467, %cst_198 {dimension_numbers = #tpu.dot_dimension_numbers<[1], [0], [0], [1], [0, 0, 1, 1], [], []>} : vector<1x128xbf16>, vector<128x128xbf16>, vector<1x128xf32> -> vector<1x128xf32>
    %469 = arith.addf %465, %468 : vector<1x128xf32>
    %cst_199 = arith.constant 0.000000e+00 : f32
    %470 = vector.broadcast %cst_199 : f32 to vector<1x128xf32>
    %471 = arith.maximumf %469, %470 : vector<1x128xf32>
    %472 = arith.truncf %471 : vector<1x128xf32> to vector<1x128xbf16>
    %c0_200 = arith.constant 0 : index
    %c0_201 = arith.constant 0 : index
    %473 = vector.load %arg10[%c0_200, %c0_201] : memref<128x384xbf16, #tpu.memory_space<vmem>>, vector<128x384xbf16>
    %cst_202 = arith.constant dense<0.000000e+00> : vector<1x384xf32>
    %474 = tpu.matmul %472, %473, %cst_202 {dimension_numbers = #tpu.dot_dimension_numbers<[1], [0], [0], [1], [0, 0, 1, 1], [], []>} : vector<1x128xbf16>, vector<128x384xbf16>, vector<1x384xf32> -> vector<1x384xf32>
    %c0_203 = arith.constant 0 : index
    %c0_204 = arith.constant 0 : index
    %475 = vector.load %arg11[%c0_203, %c0_204] : memref<1x384xf32, #tpu.memory_space<vmem>>, vector<1x384xf32>
    %476 = arith.addf %474, %475 : vector<1x384xf32>
    %477 = vector.extract_strided_slice %448 {offsets = [0, 128], sizes = [1, 384], strides = [1, 1]} : vector<1x512xf32> to vector<1x384xf32>
    %c0_205 = arith.constant 0 : index
    %c0_206 = arith.constant 0 : index
    %478 = vector.load %arg9[%c0_205, %c0_206] : memref<1x384xf32, #tpu.memory_space<vmem>>, vector<1x384xf32>
    %479 = arith.addf %477, %478 : vector<1x384xf32>
    %480 = vector.extract_strided_slice %476 {offsets = [0, 0], sizes = [1, 128], strides = [1, 1]} : vector<1x384xf32> to vector<1x128xf32>
    %481 = vector.extract_strided_slice %476 {offsets = [0, 128], sizes = [1, 128], strides = [1, 1]} : vector<1x384xf32> to vector<1x128xf32>
    %482 = vector.extract_strided_slice %476 {offsets = [0, 256], sizes = [1, 128], strides = [1, 1]} : vector<1x384xf32> to vector<1x128xf32>
    %483 = vector.extract_strided_slice %479 {offsets = [0, 0], sizes = [1, 128], strides = [1, 1]} : vector<1x384xf32> to vector<1x128xf32>
    %484 = vector.extract_strided_slice %479 {offsets = [0, 128], sizes = [1, 128], strides = [1, 1]} : vector<1x384xf32> to vector<1x128xf32>
    %485 = vector.extract_strided_slice %479 {offsets = [0, 256], sizes = [1, 128], strides = [1, 1]} : vector<1x384xf32> to vector<1x128xf32>
    %486 = arith.addf %480, %483 : vector<1x128xf32>
    %487 = arith.negf %486 : vector<1x128xf32>
    %488 = math.exp %487 : vector<1x128xf32>
    %cst_207 = arith.constant 1.000000e+00 : f32
    %489 = vector.broadcast %cst_207 : f32 to vector<1x128xf32>
    %490 = arith.addf %489, %488 : vector<1x128xf32>
    %491 = arith.divf %489, %490 : vector<1x128xf32>
    %492 = arith.addf %481, %484 : vector<1x128xf32>
    %493 = arith.negf %492 : vector<1x128xf32>
    %494 = math.exp %493 : vector<1x128xf32>
    %cst_208 = arith.constant 1.000000e+00 : f32
    %495 = vector.broadcast %cst_208 : f32 to vector<1x128xf32>
    %496 = arith.addf %495, %494 : vector<1x128xf32>
    %497 = arith.divf %495, %496 : vector<1x128xf32>
    %498 = arith.mulf %491, %485 : vector<1x128xf32>
    %499 = arith.addf %482, %498 : vector<1x128xf32>
    %500 = math.tanh %499 : vector<1x128xf32>
    %cst_209 = arith.constant 1.000000e+00 : f32
    %501 = vector.broadcast %cst_209 : f32 to vector<1x128xf32>
    %502 = arith.subf %501, %497 : vector<1x128xf32>
    %503 = arith.mulf %502, %500 : vector<1x128xf32>
    %504 = arith.mulf %497, %443 : vector<1x128xf32>
    %505 = arith.addf %503, %504 : vector<1x128xf32>
    %c7 = arith.constant 7 : index
    %c0_210 = arith.constant 0 : index
    %506 = vector.load %arg15[%c7, %c0_210] : memref<8x128xf32, #tpu.memory_space<vmem>>, vector<1x128xf32>
    tpu.vector_store %arg15[%c7, %c0_210], %505 {strides = array<i32>} : memref<8x128xf32, #tpu.memory_space<vmem>>, vector<1x128xf32>,
    %c7_211 = arith.constant 7 : index
    %c0_212 = arith.constant 0 : index
    %507 = vector.load %arg16[%c7_211, %c0_212] : memref<8x128xf32, #tpu.memory_space<vmem>>, vector<1x128xf32>
    tpu.vector_store %arg16[%c7_211, %c0_212], %461 {strides = array<i32>} : memref<8x128xf32, #tpu.memory_space<vmem>>, vector<1x128xf32>,
    %c0_213 = arith.constant 0 : index
    %c0_214 = arith.constant 0 : index
    %508 = vector.load %arg15[%c0_213, %c0_214] : memref<8x128xf32, #tpu.memory_space<vmem>>, vector<8x128xf32>
    %509 = arith.truncf %508 : vector<8x128xf32> to vector<8x128xbf16>
    %c0_215 = arith.constant 0 : index
    %c0_216 = arith.constant 0 : index
    %510 = vector.load %arg12[%c0_215, %c0_216] : memref<128x128xbf16, #tpu.memory_space<vmem>>, vector<128x128xbf16>
    %cst_217 = arith.constant dense<0.000000e+00> : vector<8x128xf32>
    %511 = tpu.matmul %509, %510, %cst_217 {dimension_numbers = #tpu.dot_dimension_numbers<[1], [0], [0], [1], [0, 0, 1, 1], [], []>} : vector<8x128xbf16>, vector<128x128xbf16>, vector<8x128xf32> -> vector<8x128xf32>
    %c0_218 = arith.constant 0 : index
    %c0_219 = arith.constant 0 : index
    %512 = vector.load %arg13[%c0_218, %c0_219] : memref<1x128xf32, #tpu.memory_space<vmem>>, vector<1x128xf32>
    %513 = vector.broadcast %512 : vector<1x128xf32> to vector<8x128xf32>
    %514 = arith.addf %511, %513 : vector<8x128xf32>
    %cst_220 = arith.constant dense<0xFF800000> : vector<8xf32>
    %515 = vector.multi_reduction <maximumf>, %514, %cst_220 [1] : vector<8x128xf32> to vector<8xf32>
    %516 = vector.shape_cast %515 : vector<8xf32> to vector<8x1xf32>
    %517 = vector.broadcast %516 : vector<8x1xf32> to vector<8x128xf32>
    %518 = arith.subf %514, %517 : vector<8x128xf32>
    %519 = math.exp %518 : vector<8x128xf32>
    %cst_221 = arith.constant dense<0.000000e+00> : vector<8xf32>
    %520 = vector.multi_reduction <add>, %519, %cst_221 [1] : vector<8x128xf32> to vector<8xf32>
    %521 = vector.shape_cast %520 : vector<8xf32> to vector<8x1xf32>
    %522 = vector.broadcast %521 : vector<8x1xf32> to vector<8x128xf32>
    %523 = arith.divf %519, %522 : vector<8x128xf32>
    %c0_222 = arith.constant 0 : index
    %c0_223 = arith.constant 0 : index
    %524 = vector.load %arg14[%c0_222, %c0_223] : memref<8x128xf32, #tpu.memory_space<vmem>>, vector<8x128xf32>
    tpu.vector_store %arg14[%c0_222, %c0_223], %523 {strides = array<i32>} : memref<8x128xf32, #tpu.memory_space<vmem>>, vector<8x128xf32>,
    return
  }
}

</mosaic_0001>

<bundles_post_ra>
// kernel: attn_decoder_decode.1
= control target key start
LH: loop header
LB: loop body
LE: loop exit
PB: predicated region body
PF: predicated region fallthrough
CT: control target
= control target key end

     0   :  { %s10994_s0 = inlined_call_operand.vmem [shape: bf16[8,128], index: 0, kind: input, shape index: {}]   ;;  %s10995_s1 = inlined_call_operand.vmem [shape: f32[1,128], index: 1, kind: input, shape index: {}]   ;;  %s10996_s2 = inlined_call_operand.vmem [shape: bf16[128,128], index: 2, kind: input, shape index: {}]   ;;  %s10997_s3 = inlined_call_operand.vmem [shape: bf16[128,128], index: 3, kind: input, shape index: {}]   ;;  %s10998_s4 = inlined_call_operand.hbm [shape: f32[1,128], index: 4, kind: input, shape index: {}]   ;;  %s10999_s5 = inlined_call_operand.vmem [shape: bf16[128,128], index: 5, kind: input, shape index: {}]   ;;  %s11000_s6 = inlined_call_operand.vmem [shape: f32[1,128], index: 6, kind: input, shape index: {}]   ;;  %s11001_s7 = inlined_call_operand.hbm [shape: bf16[128,128], index: 7, kind: input, shape index: {}]   ;;  %s11002_s8 = inlined_call_operand.hbm [shape: bf16[128,512], index: 8, kind: input, shape index: {}]   ;;  %s11003_s9 = inlined_call_operand.vmem [shape: f32[1,384], index: 9, kind: input, shape index: {}]   ;;  %s11004_s10 = inlined_call_operand.hbm [shape: bf16[128,384], index: 10, kind: input, shape index: {}]   ;;  %s11005_s11 = inlined_call_operand.vmem [shape: f32[1,384], index: 11, kind: input, shape index: {}]   ;;  %s11006_s12 = inlined_call_operand.hbm [shape: bf16[128,128], index: 12, kind: input, shape index: {}]   ;;  %s11007_s13 = inlined_call_operand.vmem [shape: f32[1,128], index: 13, kind: input, shape index: {}]   ;;  %s11008_s14 = inlined_call_operand.hbm [shape: f32[8,128], index: 14, kind: output, shape index: {0}]   ;;  %s11009_s15 = inlined_call_operand.hbm [shape: f32[8,128], index: 15, kind: output, shape index: {1}]   ;;  %s11010_s16 = inlined_call_operand.hbm [shape: f32[8,128], index: 16, kind: output, shape index: {2}]  }
   0x1   :  { %11035 = sst [smem:[#allocation26_spill]] %s10994_s0 }
   0x2   :  { %22 = vsyncpa [#allocation3], 0 }
   0x3   :  { %23 = vsyncpa [#allocation6], 0 }
   0x4   :  { %24 = vsyncpa [#allocation9], 0 }
   0x5   :  { %25 = vsyncpa [#allocation4], 0 }
   0x6   :  { %26 = vsyncpa [#allocation13], 0  ;;  %s9267_s21 = smov [#allocation5]   ;;  %s9081_s25 = scalar_lea.hbm %s11001_s7, 1024 }
   0x7   :  { %s54_s22 = sshll.u32 %s9267_s21, 4  ;;  %p9082_p0 = scmp.ne.s32.totalorder %s11001_s7, %s9081_s25  ;;  %s55_s22 = int_to_ptr.vmem [resolvable:$true] %s54_s22 }
   0x8   :  { %p9085_p1 = scmp.lt.u32.totalorder %s9081_s25, %s11001_s7 }
   0xa   :  { %p9087_p2 = pnand %p9085_p1, %p9082_p0 }
   0xc   :  { %9090 = shalt.err (!%p9087_p2)
}
   0xd   :  { %s9091_s30 = scalar_lea.vmem %s55_s22, 1024  ;;  %p9096_p4 = scmp.lt.s32.totalorder %s55_s22, %s55_s22 }
   0xe   :  { %p9092_p3 = scmp.ne.s32.totalorder %s55_s22, %s9091_s30  ;;  %p9097_p5 = scmp.lt.s32.totalorder %s9091_s30, %s9091_s30 }
  0x10   :  { %p9098_p6 = por %p9097_p5, %p9096_p4 }
  0x12   :  { %p9099_p7 = pnand %p9098_p6, %p9092_p3 }
  0x14   :  { %9102 = shalt.err (!%p9099_p7)
}
  0x15   :  { %s11012_s0 = smov 64   ;;  %s11013_s17 = smov 4  }
  0x16   :  { %60 = dma.hbm_to_vmem [thread:$0]  %s11001_s7, 1024, %s55_s22, [#allocation6], %s11012_s0, %s11012_s0, %s11013_s17  }
  0x17   :  { %s9270_s20 = smov [#allocation8]   ;;  %s9103_s25 = scalar_lea.hbm %s11004_s10, 3072 }
  0x18   :  { %s80_s21 = sshll.u32 %s9270_s20, 4  ;;  %p9104_p8 = scmp.ne.s32.totalorder %s11004_s10, %s9103_s25  ;;  %s81_s21 = int_to_ptr.vmem [resolvable:$true] %s80_s21 }
  0x19   :  { %p9107_p9 = scmp.lt.u32.totalorder %s9103_s25, %s11004_s10 }
  0x1b   :  { %p9109_p10 = pnand %p9107_p9, %p9104_p8 }
  0x1d   :  { %9112 = shalt.err (!%p9109_p10)
}
  0x1e   :  { %s9113_s30 = scalar_lea.vmem %s81_s21, 3072  ;;  %p9118_p12 = scmp.lt.s32.totalorder %s81_s21, %s81_s21 }
  0x1f   :  { %p9114_p11 = scmp.ne.s32.totalorder %s81_s21, %s9113_s30  ;;  %p9119_p13 = scmp.lt.s32.totalorder %s9113_s30, %s9113_s30 }
  0x21   :  { %p9120_p0 = por %p9119_p13, %p9118_p12 }
  0x23   :  { %p9121_p1 = pnand %p9120_p0, %p9114_p11 }
  0x25   :  { %9124 = shalt.err (!%p9121_p1)
}
  0x26   :  { %s9271_s7 = smov 192   ;;  %s9272_s22 = smov 12  }
  0x27   :  { %86 = dma.hbm_to_vmem [thread:$0]  %s11004_s10, 3072, %s81_s21, [#allocation9], %s9271_s7, %s9271_s7, %s9272_s22  }
  0x28   :  { %s9273_s20 = smov [#allocation2]   ;;  %s9274_s24 = smov [#allocation7]  }
  0x29   :  { %s41_s23 = sshll.u32 %s9273_s20, 4  ;;  %s66_s26 = sshll.u32 %s9274_s24, 4  ;;  %s42_s23 = int_to_ptr.vmem [resolvable:$true] %s41_s23  ;;  %s9396_s26 = int_to_ptr.vmem [resolvable:$true] %s66_s26 }
  0x2a   :  { %s9125_s28 = scalar_lea.hbm %s10998_s4, 16 }
  0x2b   :  { %p9126_p2 = scmp.ne.s32.totalorder %s10998_s4, %s9125_s28  ;;  %p9129_p3 = scmp.lt.u32.totalorder %s9125_s28, %s10998_s4 }
  0x2d   :  { %p9131_p4 = pnand %p9129_p3, %p9126_p2 }
  0x2f   :  { %9134 = shalt.err (!%p9131_p4)
}
  0x30   :  { %s9135_s10 = scalar_lea.vmem %s42_s23, 16  ;;  %s9139_s21 = scalar_lea.vmem %s42_s23, 32 }
  0x31   :  { %p9136_p5 = scmp.ne.s32.totalorder %s42_s23, %s9135_s10  ;;  %p9140_p6 = scmp.lt.s32.totalorder %s42_s23, %s42_s23 }
  0x32   :  { %p9141_p7 = scmp.lt.s32.totalorder %s9139_s21, %s9135_s10 }
  0x34   :  { %p9142_p8 = por %p9141_p7, %p9140_p6 }
  0x36   :  { %p9143_p9 = pnand %p9142_p8, %p9136_p5 }
  0x38   :  { %9146 = shalt.err (!%p9143_p9)
}
  0x39   :  { %44 = dma.hbm_to_vmem [thread:$0]  %s10998_s4, 16, %s42_s23, [#allocation3]  }
  0x3a   :  { %s9147_s20 = scalar_lea.hbm %s11002_s8, 4096 }
  0x3b   :  { %p9148_p10 = scmp.ne.s32.totalorder %s11002_s8, %s9147_s20  ;;  %p9151_p11 = scmp.lt.u32.totalorder %s9147_s20, %s11002_s8 }
  0x3d   :  { %p9153_p12 = pnand %p9151_p11, %p9148_p10 }
  0x3f   :  { %9156 = shalt.err (!%p9153_p12)
}
  0x40   :  { %s9157_s27 = scalar_lea.vmem %s9396_s26, 4096  ;;  %p9162_p0 = scmp.lt.s32.totalorder %s9396_s26, %s9396_s26 }
  0x41   :  { %p9158_p13 = scmp.ne.s32.totalorder %s9396_s26, %s9157_s27  ;;  %p9163_p1 = scmp.lt.s32.totalorder %s9157_s27, %s9157_s27 }
  0x43   :  { %p9164_p2 = por %p9163_p1, %p9162_p0 }
  0x45   :  { %p9165_p3 = pnand %p9164_p2, %p9158_p13 }
  0x47   :  { %9168 = shalt.err (!%p9165_p3)
}
  0x48   :  { %s9275_s4 = smov 256   ;;  %s9276_s23 = smov 16  }
  0x49   :  { %72 = dma.hbm_to_vmem [thread:$0]  %s11002_s8, 4096, %s9396_s26, [#allocation6], %s9275_s4, %s9275_s4, %s9276_s23  }
  0x4a   :  { %s9277_s30 = smov [#allocation10]   ;;  %s9169_s22 = scalar_lea.hbm %s11006_s12, 1024 }
  0x4b   :  { %s94_s10 = sshll.u32 %s9277_s30, 4  ;;  %p9170_p4 = scmp.ne.s32.totalorder %s11006_s12, %s9169_s22  ;;  %s95_s10 = int_to_ptr.vmem [resolvable:$true] %s94_s10 }
  0x4c   :  { %p9173_p5 = scmp.lt.u32.totalorder %s9169_s22, %s11006_s12 }
  0x4e   :  { %p9175_p6 = pnand %p9173_p5, %p9170_p4 }
  0x50   :  { %9178 = shalt.err (!%p9175_p6)
}
  0x51   :  { %s9179_s17 = scalar_lea.vmem %s95_s10, 1024  ;;  %p9184_p8 = scmp.lt.s32.totalorder %s95_s10, %s95_s10 }
  0x52   :  { %p9180_p7 = scmp.ne.s32.totalorder %s95_s10, %s9179_s17  ;;  %p9185_p9 = scmp.lt.s32.totalorder %s9179_s17, %s9179_s17 }
  0x54   :  { %p9186_p10 = por %p9185_p9, %p9184_p8 }
  0x56   :  { %p9187_p11 = pnand %p9186_p10, %p9180_p7 }
  0x58   :  { %9190 = shalt.err (!%p9187_p11)
}
  0x59   :  { %s11036_s8 = smov 4   ;;  %s11037_s26 = smov 64  }
  0x5a   :  { %100 = dma.hbm_to_vmem [thread:$0]  %s11006_s12, 1024, %s95_s10, [#allocation9], %s11037_s26, %s11037_s26, %s11036_s8  }
  0x5b   :  { %9257 = dma.done.wait [#allocation3], 16  }
  0x5c   :  { %9258 = vsyncadd [#allocation3], 4294967280 }
  0x5d   :  { %9259 = dma.done.wait [#allocation6], 5120  }
  0x5e   :  { %9260 = vsyncadd [#allocation6], 4294962176 }
  0x5f   :  { %9261 = dma.done.wait [#allocation9], 4096  }
  0x60   :  { %9262 = vsyncadd [#allocation9], 4294963200  ;;  %v11016_v0 = vmov 0.0   ;;  %vm9279_vm0 = vmmov 0   ;;  %v8443_v1 = vld [vmem:[%s10997_s3] sm:$0xff]   ;;  %v8444_v2 = vld [vmem:[%s10997_s3 + $0x8] sm:$0xff]  }
  0x61   :  { %7886 = vmatprep.subr.bf16.mxu0 %v11016_v0  ;;  %7902 = vmatprep.mubr.msk.bf16.mxu0 %vm9279_vm0, %v11016_v0  ;;  %v8445_v3 = vld [vmem:[%s10997_s3 + $0x10] sm:$0xff]   ;;  %v8446_v4 = vld [vmem:[%s10997_s3 + $0x18] sm:$0xff]   ;;  %v8447_v5 = vld [vmem:[%s10997_s3 + $0x20] sm:$0xff]   ;;  %s11038_s24 = sld [smem:[#allocation26_spill]]  ;;  %v11014_v15 = vmov 0   ;;  %vm619_vm1 = vcmask 1040384  }
  0x62   :  { %7906 = vmatprep.subr.bf16.mxu1 %v11016_v0  ;;  %7922 = vmatprep.mubr.msk.bf16.mxu1 %vm9279_vm0, %v11016_v0  ;;  %v8448_v6 = vld [vmem:[%s10997_s3 + $0x28] sm:$0xff]   ;;  %v8449_v7 = vld [vmem:[%s10997_s3 + $0x30] sm:$0xff]   ;;  %v8450_v8 = vld [vmem:[%s10997_s3 + $0x38] sm:$0xff]   ;;  %vm1424_vm2 = vcmask 1041409   ;;  %vm2240_vm3 = vcmask 1042434   ;;  %vm3054_vm4 = vcmask 1043459  }
  0x63   :  { %7887 = vmatpush3.bf16.msra.mxu0 %v8443_v1  ;;  %v8453_v9 = vld [vmem:[#allocation7 + $0x4] ss:$16 sps:$4 sm:$0xff]   ;;  %v8451_v11 = vld [vmem:[#allocation7] ss:$16 sps:$4 sm:$0xff]   ;;  %v342_v27 = vld [vmem:[%s10995_s1] sm:$0x1] }
  0x64   :  { %7888 = vmatprep.subr.bf16.mxu0 %v11016_v0  ;;  %v8456_v12 = vld [vmem:[#allocation7 + $0x24] ss:$16 sps:$4 sm:$0xff]   ;;  %v8454_v13 = vld [vmem:[#allocation7 + $0x20] ss:$16 sps:$4 sm:$0xff]   ;;  %v9486_v28 = vpack.c.bf16 %v342_v27, %v342_v27  ;;  %v7024_v33 = vld [vmem:[#allocation2] ss:$0 sm:$0xff] }
  0x65   :  { %v8459_v14 = vld [vmem:[#allocation7 + $0x44] ss:$16 sps:$4 sm:$0xff]   ;;  %v8457_v16 = vld [vmem:[#allocation7 + $0x40] ss:$16 sps:$4 sm:$0xff]   ;;  %v9564_v62 = vld [vmem:[#allocation7 + $0xc] ss:$16 sps:$4 sm:$0xff]  }
  0x66   :  { %v8462_v17 = vld [vmem:[#allocation7 + $0x64] ss:$16 sps:$4 sm:$0xff]   ;;  %v8460_v18 = vld [vmem:[#allocation7 + $0x60] ss:$16 sps:$4 sm:$0xff]   ;;  %v9566_v63 = vld [vmem:[#allocation7 + $0x8] ss:$16 sps:$4 sm:$0xff]  }
  0x67   :  { %7889 = vmatpush3.bf16.msra.mxu0 %v8444_v2  ;;  %v119_v10 = vld [vmem:[%s11038_s24] sm:$0xf]  ;;  %v8465_v19 = vld [vmem:[#allocation7 + $0x84] ss:$16 sps:$4 sm:$0xff]   ;;  %vm3872_vm5 = vcmask 1044484   ;;  %vm4686_vm6 = vcmask 1045509  }
  0x68   :  { %7890 = vmatprep.subr.bf16.mxu0 %v11016_v0  ;;  %v8463_v20 = vld [vmem:[#allocation7 + $0x80] ss:$16 sps:$4 sm:$0xff]   ;;  %v8468_v21 = vld [vmem:[#allocation7 + $0xa4] ss:$16 sps:$4 sm:$0xff]   ;;  %v9569_v1 = vld [vmem:[#allocation7 + $0x2c] ss:$16 sps:$4 sm:$0xff]  }
  0x69   :  { %v8466_v22 = vld [vmem:[#allocation7 + $0xa0] ss:$16 sps:$4 sm:$0xff]   ;;  %v8471_v23 = vld [vmem:[#allocation7 + $0xc4] ss:$16 sps:$4 sm:$0xff]   ;;  %vm5504_vm7 = vcmask 1046534   ;;  %vm6318_vm8 = vcmask 1047559  }
  0x6a   :  { %v8469_v24 = vld [vmem:[#allocation7 + $0xc0] ss:$16 sps:$4 sm:$0xff]   ;;  %v8474_v25 = vld [vmem:[#allocation7 + $0xe4] ss:$16 sps:$4 sm:$0xff]   ;;  %s9281_s0 = smov [#allocation12]  }
  0x6b   :  { %7891 = vmatpush3.bf16.msra.mxu0 %v8445_v3  ;;  %v8472_v26 = vld [vmem:[#allocation7 + $0xe0] ss:$16 sps:$4 sm:$0xff]   ;;  %v8476_v42 = vld [vmem:[%s10996_s2 + $0x8] sm:$0xff]   ;;  %v8478_v44 = vld [vmem:[%s10996_s2 + $0x18] sm:$0xff]   ;;  %s6996_s17 = sshll.u32 %s9281_s0, 4  ;;  %s6997_s17 = int_to_ptr.vmem [resolvable:$true] %s6996_s17 }
  0x6c   :  { %7892 = vmatprep.subr.bf16.mxu0 %v11016_v0  ;;  %v8475_v41 = vld [vmem:[%s10996_s2] sm:$0xff]   ;;  %v8477_v43 = vld [vmem:[%s10996_s2 + $0x10] sm:$0xff]   ;;  %v8480_v51 = vld [vmem:[%s10996_s2 + $0x28] sm:$0xff]   ;;  %s9191_s8 = scalar_lea.vmem %s6997_s17, 128  ;;  %p9196_p13 = scmp.lt.s32.totalorder %s6997_s17, %s6997_s17 }
  0x6d   :  { %v8479_v50 = vld [vmem:[%s10996_s2 + $0x20] sm:$0xff]   ;;  %v8481_v52 = vld [vmem:[%s10996_s2 + $0x30] sm:$0xff]   ;;  %v8482_v53 = vld [vmem:[%s10996_s2 + $0x38] sm:$0xff]   ;;  %p9192_p12 = scmp.ne.s32.totalorder %s6997_s17, %s9191_s8  ;;  %p9197_p0 = scmp.lt.s32.totalorder %s9191_s8, %s9191_s8 }
  0x6e   :  { %v8483_v54 = vld [vmem:[%s10999_s5] sm:$0xff]   ;;  %v8484_v55 = vld [vmem:[%s10999_s5 + $0x8] sm:$0xff]   ;;  %v8485_v56 = vld [vmem:[%s10999_s5 + $0x10] sm:$0xff]  }
  0x6f   :  { %7893 = vmatpush3.bf16.msra.mxu0 %v8446_v4  ;;  %7907 = vmatpush3.bf16.msra.mxu1 %v8483_v54  ;;  %v8486_v57 = vld [vmem:[%s10999_s5 + $0x18] sm:$0xff]   ;;  %v8487_v58 = vld [vmem:[%s10999_s5 + $0x20] sm:$0xff]   ;;  %v8488_v59 = vld [vmem:[%s10999_s5 + $0x28] sm:$0xff]   ;;  %p9198_p1 = por %p9197_p0, %p9196_p13 }
  0x70   :  { %7894 = vmatprep.subr.bf16.mxu0 %v11016_v0  ;;  %7908 = vmatprep.subr.bf16.mxu1 %v11016_v0  ;;  %v8489_v60 = vld [vmem:[%s10999_s5 + $0x30] sm:$0xff]   ;;  %v8490_v61 = vld [vmem:[%s10999_s5 + $0x38] sm:$0xff]   ;;  %v9063_v2 = vld [vmem:[%s11038_s24] sm:$0xf] }
  0x71   :  { %v9575_v3 = vld [vmem:[#allocation7 + $0x28] ss:$16 sps:$4 sm:$0xff]   ;;  %v9579_v4 = vld [vmem:[#allocation7 + $0x4c] ss:$16 sps:$4 sm:$0xff]   ;;  %p9199_p2 = pnand %p9198_p1, %p9192_p12 }
  0x72   :  { %v8526_v54 = vld [vmem:[#allocation8 + $0x8] ss:$12 sps:$4 sm:$0xff]  }
  0x73   :  { %7895 = vmatpush3.bf16.msra.mxu0 %v8447_v5  ;;  %7909 = vmatpush3.bf16.msra.mxu1 %v8484_v55  ;;  %v9582_v5 = vld [vmem:[#allocation7 + $0x48] ss:$16 sps:$4 sm:$0xff]  }
  0x74   :  { %7896 = vmatprep.subr.bf16.mxu0 %v11016_v0  ;;  %7910 = vmatprep.subr.bf16.mxu1 %v11016_v0 }
  0x77   :  { %7897 = vmatpush3.bf16.msra.mxu0 %v8448_v6  ;;  %7911 = vmatpush3.bf16.msra.mxu1 %v8485_v56  ;;  %v9585_v6 = vld [vmem:[#allocation7 + $0x6c] ss:$16 sps:$4 sm:$0xff]  }
  0x78   :  { %7898 = vmatprep.subr.bf16.mxu0 %v11016_v0  ;;  %7912 = vmatprep.subr.bf16.mxu1 %v11016_v0 }
  0x7b   :  { %7899 = vmatpush3.bf16.msra.mxu0 %v8449_v7  ;;  %7913 = vmatpush3.bf16.msra.mxu1 %v8486_v57  ;;  %v9588_v7 = vld [vmem:[#allocation7 + $0x68] ss:$16 sps:$4 sm:$0xff]  }
  0x7c   :  { %7900 = vmatprep.subr.bf16.mxu0 %v11016_v0  ;;  %7914 = vmatprep.subr.bf16.mxu1 %v11016_v0 }
  0x7f   :  { %7901 = vmatpush3.bf16.msra.mxu0 %v8450_v8  ;;  %7915 = vmatpush3.bf16.msra.mxu1 %v8487_v58  ;;  %v9591_v8 = vld [vmem:[#allocation7 + $0x8c] ss:$16 sps:$4 sm:$0xff]  }
  0x80   :  { %536 = vmatprep.subr.bf16.mxu0 %v8453_v9  ;;  %7916 = vmatprep.subr.bf16.mxu1 %v11016_v0  ;;  %v9594_v9 = vld [vmem:[#allocation7 + $0x88] ss:$16 sps:$4 sm:$0xff]  }
  0x82   :  { %7903 = vmatmul.mubr.bf16.vlgmr.msra.gmra.mrb[0].mxu0 %v119_v10  ;;  %v9597_v10 = vld [vmem:[#allocation7 + $0xac] ss:$16 sps:$4 sm:$0xff]  }
  0x83   :  { %537 = vmatpush1.bf16.msra.mxu0 %v8451_v11  ;;  %568 = vmatprep.mubr.bf16.mxu0 %v11014_v15  ;;  %v9600_v11 = vld [vmem:[#allocation7 + $0xa8] ss:$16 sps:$4 sm:$0xff]  }
  0x84   :  { %538 = vmatprep.subr.bf16.mxu0 %v8456_v12  ;;  %7917 = vmatpush3.bf16.msra.mxu1 %v8488_v59  ;;  %v9603_v12 = vld [vmem:[#allocation7 + $0xcc] ss:$16 sps:$4 sm:$0xff]  }
  0x85   :  { %7918 = vmatprep.subr.bf16.mxu1 %v11016_v0  ;;  %v8530_v59 = vld [vmem:[#allocation8 + $0x20] ss:$12 sps:$4 sm:$0xff]  }
  0x87   :  { %539 = vmatpush1.bf16.msra.mxu0 %v8454_v13  ;;  %v9606_v13 = vld [vmem:[#allocation7 + $0xc8] ss:$16 sps:$4 sm:$0xff]  }
  0x88   :  { %540 = vmatprep.subr.bf16.mxu0 %v8459_v14  ;;  %7919 = vmatpush3.bf16.msra.mxu1 %v8489_v60  ;;  %v9609_v14 = vld [vmem:[#allocation7 + $0xec] ss:$16 sps:$4 sm:$0xff]   ;;  %v8534_v60 = vld [vmem:[#allocation8 + $0x38] ss:$12 sps:$4 sm:$0xff]  }
  0x89   :  { %7920 = vmatprep.subr.bf16.mxu1 %v11016_v0 }
  0x8b   :  { %541 = vmatpush1.bf16.msra.mxu0 %v8457_v16  ;;  %v9612_v16 = vld [vmem:[#allocation7 + $0xe8] ss:$16 sps:$4 sm:$0xff]  }
  0x8c   :  { %542 = vmatprep.subr.bf16.mxu0 %v8462_v17  ;;  %7921 = vmatpush3.bf16.msra.mxu1 %v8490_v61  ;;  %v8515_v17 = vld [vmem:[#allocation5] sm:$0xff]   ;;  %v8538_v61 = vld [vmem:[#allocation8 + $0x50] ss:$12 sps:$4 sm:$0xff]  }
  0x8d   :  { %577 = vmatprep.subr.bf16.mxu1 %v9564_v62 }
  0x8f   :  { %543 = vmatpush1.bf16.msra.mxu0 %v8460_v18  ;;  %7923 = vmatmul.mubr.bf16.vlgmr.msra.gmra.mrb[0].mxu1 %v9063_v2  ;;  %v8516_v18 = vld [vmem:[#allocation5 + $0x8] sm:$0xff]  }
  0x90   :  { %544 = vmatprep.subr.bf16.mxu0 %v8465_v19  ;;  %578 = vmatpush1.bf16.msra.mxu1 %v9566_v63  ;;  %v8517_v19 = vld [vmem:[#allocation5 + $0x10] sm:$0xff]  }
  0x91   :  { %609 = vmatprep.mubr.bf16.mxu1 %v11014_v15  ;;  %579 = vmatprep.subr.bf16.mxu1 %v9569_v1  ;;  %v8542_v2 = vld [vmem:[#allocation8 + $0x68] ss:$12 sps:$4 sm:$0xff]  }
  0x93   :  { %545 = vmatpush1.bf16.msra.mxu0 %v8463_v20  ;;  %v8518_v20 = vld [vmem:[#allocation5 + $0x18] sm:$0xff]  }
  0x94   :  { %546 = vmatprep.subr.bf16.mxu0 %v8468_v21  ;;  %580 = vmatpush1.bf16.msra.mxu1 %v9575_v3  ;;  %v8519_v21 = vld [vmem:[#allocation5 + $0x20] sm:$0xff]  }
  0x95   :  { %581 = vmatprep.subr.bf16.mxu1 %v9579_v4 }
  0x97   :  { %547 = vmatpush1.bf16.msra.mxu0 %v8466_v22  ;;  %v8520_v22 = vld [vmem:[#allocation5 + $0x28] sm:$0xff]  }
  0x98   :  { %548 = vmatprep.subr.bf16.mxu0 %v8471_v23  ;;  %582 = vmatpush1.bf16.msra.mxu1 %v9582_v5  ;;  %v8521_v23 = vld [vmem:[#allocation5 + $0x30] sm:$0xff]  }
  0x99   :  { %583 = vmatprep.subr.bf16.mxu1 %v9585_v6 }
  0x9b   :  { %549 = vmatpush1.bf16.msra.mxu0 %v8469_v24 }
  0x9c   :  { %550 = vmatprep.subr.bf16.mxu0 %v8474_v25  ;;  %584 = vmatpush1.bf16.msra.mxu1 %v9588_v7 }
  0x9d   :  { %585 = vmatprep.subr.bf16.mxu1 %v9591_v8 }
  0x9f   :  { %551 = vmatpush1.bf16.msra.mxu0 %v8472_v26 }
  0xa0   :  { %7926 = vmatprep.subr.bf16.mxu0 %v11016_v0  ;;  %586 = vmatpush1.bf16.msra.mxu1 %v9594_v9 }
  0xa1   :  { %587 = vmatprep.subr.bf16.mxu1 %v9597_v10 }
  0xa2   :  { %569 = vmatmul.mubr.bf16.vlgmr.msra.gmra.mrb[4].mxu0 %v9486_v28 }
  0xa3   :  { %7942 = vmatprep.mubr.msk.bf16.mxu0 %vm9279_vm0, %v11016_v0  ;;  %7927 = vmatpush3.bf16.msra.mxu0 %v8475_v41  ;;  %v9659_v41 = vld [vmem:[#allocation8 + $0x7c] ss:$12 sps:$4 sm:$0xff]  }
  0xa4   :  { %7928 = vmatprep.subr.bf16.mxu0 %v11016_v0  ;;  %588 = vmatpush1.bf16.msra.mxu1 %v9600_v11 }
  0xa5   :  { %589 = vmatprep.subr.bf16.mxu1 %v9603_v12 }
  0xa7   :  { %7929 = vmatpush3.bf16.msra.mxu0 %v8476_v42  ;;  %v9662_v42 = vld [vmem:[#allocation8 + $0x78] ss:$12 sps:$4 sm:$0xff]  }
  0xa8   :  { %7930 = vmatprep.subr.bf16.mxu0 %v11016_v0  ;;  %590 = vmatpush1.bf16.msra.mxu1 %v9606_v13 }
  0xa9   :  { %591 = vmatprep.subr.bf16.mxu1 %v9609_v14 }
  0xab   :  { %7931 = vmatpush3.bf16.msra.mxu0 %v8477_v43  ;;  %v9665_v43 = vld [vmem:[#allocation8 + $0x94] ss:$12 sps:$4 sm:$0xff]  }
  0xac   :  { %7932 = vmatprep.subr.bf16.mxu0 %v11016_v0  ;;  %592 = vmatpush1.bf16.msra.mxu1 %v9612_v16 }
  0xad   :  { %7946 = vmatprep.subr.bf16.mxu1 %v11016_v0 }
  0xaf   :  { %7933 = vmatpush3.bf16.msra.mxu0 %v8478_v44  ;;  %610 = vmatmul.mubr.bf16.vlgmr.msra.gmra.mrb[4].mxu1 %v9486_v28  ;;  %v8522_v28 = vld [vmem:[#allocation5 + $0x38] sm:$0xff]  }
  0xb0   :  { %7934 = vmatprep.subr.bf16.mxu0 %v11016_v0  ;;  %7947 = vmatpush3.bf16.msra.mxu1 %v8515_v17  ;;  %v9668_v44 = vld [vmem:[#allocation8 + $0x90] ss:$12 sps:$4 sm:$0xff]   ;;  %v8546_v17 = vld [vmem:[#allocation8 + $0x80] ss:$12 sps:$4 sm:$0xff]  }
  0xb1   :  { %7962 = vmatprep.mubr.msk.bf16.mxu1 %vm9279_vm0, %v11016_v0  ;;  %7948 = vmatprep.subr.bf16.mxu1 %v11016_v0 }
  0xb3   :  { %7935 = vmatpush3.bf16.msra.mxu0 %v8479_v50 }
  0xb4   :  { %7936 = vmatprep.subr.bf16.mxu0 %v11016_v0  ;;  %7949 = vmatpush3.bf16.msra.mxu1 %v8516_v18  ;;  %v8550_v18 = vld [vmem:[#allocation8 + $0x98] ss:$12 sps:$4 sm:$0xff]  }
  0xb5   :  { %7950 = vmatprep.subr.bf16.mxu1 %v11016_v0 }
  0xb7   :  { %7937 = vmatpush3.bf16.msra.mxu0 %v8480_v51 }
  0xb8   :  { %7938 = vmatprep.subr.bf16.mxu0 %v11016_v0  ;;  %7951 = vmatpush3.bf16.msra.mxu1 %v8517_v19  ;;  %v9684_v19 = vld [vmem:[#allocation8 + $0xac] ss:$12 sps:$4 sm:$0xff]  }
  0xb9   :  { %7952 = vmatprep.subr.bf16.mxu1 %v11016_v0 }
  0xbb   :  { %7939 = vmatpush3.bf16.msra.mxu0 %v8481_v52 }
  0xbc   :  { %7940 = vmatprep.subr.bf16.mxu0 %v11016_v0  ;;  %7953 = vmatpush3.bf16.msra.mxu1 %v8518_v20  ;;  %v9687_v20 = vld [vmem:[#allocation8 + $0xa8] ss:$12 sps:$4 sm:$0xff]  }
  0xbd   :  { %7954 = vmatprep.subr.bf16.mxu1 %v11016_v0 }
  0xbf   :  { %7941 = vmatpush3.bf16.msra.mxu0 %v8482_v53 }
  0xc0   :  { %7955 = vmatpush3.bf16.msra.mxu1 %v8519_v21  ;;  %v8554_v21 = vld [vmem:[#allocation8 + $0xb0] ss:$12 sps:$4 sm:$0xff]  }
  0xc1   :  { %7956 = vmatprep.subr.bf16.mxu1 %v11016_v0 }
  0xc4   :  { %7957 = vmatpush3.bf16.msra.mxu1 %v8520_v22  ;;  %v9064_v22 = vld [vmem:[#allocation7 + $0x4] ss:$16 sps:$4 sm:$0xff]  }
  0xc5   :  { %7958 = vmatprep.subr.bf16.mxu1 %v11016_v0 }
  0xc8   :  { %7959 = vmatpush3.bf16.msra.mxu1 %v8521_v23  ;;  %v7033_v23 = vld [vmem:[%s11000_s6] ss:$0 sm:$0xff] }
  0xc9   :  { %7960 = vmatprep.subr.bf16.mxu1 %v11016_v0 }
  0xcc   :  { %7961 = vmatpush3.bf16.msra.mxu1 %v8522_v28 }
  0xcd   :  { %7966 = vmatprep.subr.bf16.mxu1 %v11016_v0 }
 0x155   :  { %v225_v29 = vpop.f32.mrb[0].mxu0 }
 0x156   :  { %v7904_v30 = vpop.f32.mrb[1].mxu0  ;;  %v9492_v34 = vadd.f32 %v7024_v33, %v225_v29  ;;  %v9630_v29 = vld [vmem:[#allocation8] ss:$12 sps:$4 sm:$0xff]  }
 0x157   :  { %v228_v31 = vpop.f32.mrb[2].mxu0  ;;  %v9632_v30 = vld [vmem:[#allocation8 + $0x4] ss:$12 sps:$4 sm:$0xff]   ;;  %v9641_v33 = vld [vmem:[#allocation8 + $0x34] ss:$12 sps:$4 sm:$0xff]  }
 0x158   :  { %v7905_v32 = vpop.f32.mrb[3].mxu0  ;;  %v9634_v31 = vld [vmem:[#allocation8 + $0x1c] ss:$12 sps:$4 sm:$0xff]   ;;  %1021 = vmatprep.subr.bf16.mxu0 %v9632_v30 }
 0x159   :  { %v9638_v32 = vld [vmem:[#allocation8 + $0x18] ss:$12 sps:$4 sm:$0xff]  }
 0x175   :  { %v570_v35 = vpop.f32.mrb[4].mxu0 }
 0x176   :  { %v618_v36 = vadd.f32 %v570_v35, %v9492_v34  ;;  %v9495_v37 = vpop.f32.mrb[5].mxu0  ;;  %v9644_v35 = vld [vmem:[#allocation8 + $0x30] ss:$12 sps:$4 sm:$0xff]  }
 0x177   :  { %v574_v38 = vpop.f32.mrb[6].mxu0 }
 0x178   :  { %v575_v39 = vpop.f32.mrb[7].mxu0  ;;  %v620_v40 = vsel %vm619_vm1, %v618_v36, -inf  ;;  %v9650_v38 = vld [vmem:[#allocation8 + $0x48] ss:$12 sps:$4 sm:$0xff]  }
 0x179   :  { %621 = vmax.xlane.f32.xlu0 %v620_v40  ;;  %v9653_v39 = vld [vmem:[#allocation8 + $0x64] ss:$12 sps:$4 sm:$0xff]   ;;  %v9656_v40 = vld [vmem:[#allocation8 + $0x60] ss:$12 sps:$4 sm:$0xff]  }
 0x206   :  { %v622_v45 = vpop.xlane.xlu0 %621 }
 0x207   :  { %v623_v46 = vsub.f32 %v618_v36, %v622_v45  ;;  %v9647_v36 = vld [vmem:[#allocation8 + $0x4c] ss:$12 sps:$4 sm:$0xff]   ;;  %v336_v45 = vpop.f32.mrb[0].mxu1 }
 0x209   :  { %v624_v47 = vmul.f32 1.442695, %v623_v46  ;;  %v7924_v46 = vpop.f32.mrb[1].mxu1 }
 0x20b   :  { %8947 = vpow2.f32 %v624_v47  ;;  %v339_v47 = vpop.f32.mrb[2].mxu1 }
 0x215   :  { %v9514_v48 = vpop.eup %8947 }
 0x216   :  { %v626_v49 = vsel %vm619_vm1, %v9514_v48, 0.0 }
 0x217   :  { %627 = vadd.xlane.f32.xlu0 %v626_v49 }
 0x2a4   :  { %v628_v24 = vpop.xlane.xlu0 %627 }
 0x2a5   :  { %8949 = vrcp.f32 %v628_v24  ;;  %v9695_v24 = vadd.f32 %v7033_v23, %v336_v45  ;;  %v9067_v45 = vld [vmem:[#allocation7 + $0x20] ss:$16 sps:$4 sm:$0xff]  }
 0x2af   :  { %v8950_v25 = vpop.eup %8949 }
 0x2b0   :  { %v630_v26 = vmul.f32 %v8950_v25, %v9514_v48  ;;  %v7925_v48 = vpop.f32.mrb[3].mxu1 }
 0x2b1   :  { %v9672_v49 = vpop.f32.mrb[4].mxu1 }
 0x2b2   :  { %v631_v27 = vpack.c.bf16 %v630_v26, %v630_v26  ;;  %1144 = vst [vmem:[#allocation14] sm:$0x1] %v630_v26  ;;  %v9674_v50 = vpop.f32.mrb[5].mxu1 }
 0x2b3   :  { %v615_v51 = vpop.f32.mrb[6].mxu1 }
 0x2b4   :  { %7943 = vmatmul.mubr.bf16.vlgmr.msra.gmra.mrb[8].mxu0 %v631_v27  ;;  %v616_v52 = vpop.f32.mrb[7].mxu1  ;;  %v9065_v51 = vld [vmem:[#allocation7] ss:$16 sps:$4 sm:$0xff]  }
 0x2b5   :  { %1053 = vmatprep.mubr.bf16.mxu0 %v11014_v15  ;;  %1022 = vmatpush1.bf16.msra.mxu0 %v9630_v29  ;;  %v9068_v52 = vld [vmem:[#allocation7 + $0x44] ss:$16 sps:$4 sm:$0xff]  }
 0x2b6   :  { %1023 = vmatprep.subr.bf16.mxu0 %v9634_v31 }
 0x2b9   :  { %1024 = vmatpush1.bf16.msra.mxu0 %v9638_v32 }
 0x2ba   :  { %1025 = vmatprep.subr.bf16.mxu0 %v9641_v33 }
 0x2bd   :  { %1026 = vmatpush1.bf16.msra.mxu0 %v9644_v35 }
 0x2be   :  { %1027 = vmatprep.subr.bf16.mxu0 %v9647_v36 }
 0x2c1   :  { %1028 = vmatpush1.bf16.msra.mxu0 %v9650_v38 }
 0x2c2   :  { %1029 = vmatprep.subr.bf16.mxu0 %v9653_v39 }
 0x2c5   :  { %1030 = vmatpush1.bf16.msra.mxu0 %v9656_v40 }
 0x2c6   :  { %1031 = vmatprep.subr.bf16.mxu0 %v9659_v41 }
 0x2c9   :  { %1032 = vmatpush1.bf16.msra.mxu0 %v9662_v42 }
 0x2ca   :  { %1033 = vmatprep.subr.bf16.mxu0 %v9665_v43 }
 0x2cd   :  { %1034 = vmatpush1.bf16.msra.mxu0 %v9668_v44 }
 0x2ce   :  { %1035 = vmatprep.subr.bf16.mxu0 %v9684_v19 }
 0x2d1   :  { %1036 = vmatpush1.bf16.msra.mxu0 %v9687_v20 }
 0x2d2   :  { %1338 = vmatprep.subr.bf16.mxu0 %v9064_v22 }
 0x387   :  { %v730_v53 = vpop.f32.mrb[8].mxu0 }
 0x388   :  { %v736_v55 = vpack.c.bf16 %v730_v53, %v730_v53  ;;  %v7944_v56 = vpop.f32.mrb[9].mxu0  ;;  %v9069_v53 = vld [vmem:[#allocation7 + $0x40] ss:$16 sps:$4 sm:$0xff]  }
 0x389   :  { %v733_v57 = vpop.f32.mrb[10].mxu0 }
 0x38a   :  { %v7945_v58 = vpop.f32.mrb[11].mxu0  ;;  %7963 = vmatmul.mubr.bf16.vlgmr.msra.gmra.mrb[8].mxu1 %v736_v55 }
 0x38b   :  { %7967 = vmatpush3.bf16.msra.mxu1 %v8526_v54  ;;  %7982 = vmatprep.mubr.msk.bf16.mxu1 %vm9279_vm0, %v11016_v0  ;;  %v9072_v54 = vld [vmem:[#allocation7 + $0x84] ss:$16 sps:$4 sm:$0xff]  }
 0x38c   :  { %7968 = vmatprep.subr.bf16.mxu1 %v11016_v0 }
 0x38f   :  { %7969 = vmatpush3.bf16.msra.mxu1 %v8530_v59 }
 0x390   :  { %7970 = vmatprep.subr.bf16.mxu1 %v11016_v0 }
 0x393   :  { %7971 = vmatpush3.bf16.msra.mxu1 %v8534_v60 }
 0x394   :  { %7972 = vmatprep.subr.bf16.mxu1 %v11016_v0 }
 0x397   :  { %7973 = vmatpush3.bf16.msra.mxu1 %v8538_v61 }
 0x398   :  { %7974 = vmatprep.subr.bf16.mxu1 %v11016_v0 }
 0x39b   :  { %7975 = vmatpush3.bf16.msra.mxu1 %v8542_v2 }
 0x39c   :  { %7976 = vmatprep.subr.bf16.mxu1 %v11016_v0 }
 0x39f   :  { %7977 = vmatpush3.bf16.msra.mxu1 %v8546_v17 }
 0x3a0   :  { %7978 = vmatprep.subr.bf16.mxu1 %v11016_v0 }
 0x3a3   :  { %7979 = vmatpush3.bf16.msra.mxu1 %v8550_v18 }
 0x3a4   :  { %7980 = vmatprep.subr.bf16.mxu1 %v11016_v0 }
 0x3a7   :  { %7981 = vmatpush3.bf16.msra.mxu1 %v8554_v21 }
 0x3a8   :  { %1379 = vmatprep.subr.bf16.mxu1 %v9564_v62  ;;  %v9066_v62 = vld [vmem:[#allocation7 + $0x24] ss:$16 sps:$4 sm:$0xff]  }
 0x45d   :  { %v835_v25 = vpop.f32.mrb[8].mxu1 }
 0x45e   :  { %v841_v26 = vadd.f32 %v835_v25, %v9695_v24  ;;  %v7964_v27 = vpop.f32.mrb[9].mxu1 }
 0x45f   :  { %v838_v28 = vpop.f32.mrb[10].mxu1 }
 0x460   :  { %v842_v46 = vmax.f32 %v841_v26, 0.0  ;;  %v7965_v47 = vpop.f32.mrb[11].mxu1 }
 0x462   :  { %v843_v48 = vpack.c.bf16 %v842_v46, %v842_v46 }
 0x464   :  { %1054 = vmatmul.mubr.bf16.vlgmr.msra.gmra.mrb[12].mxu0 %v843_v48  ;;  %7983 = vmatmul.mubr.bf16.vlgmr.msra.gmra.mrb[12].mxu1 %v843_v48 }
 0x465   :  { %1339 = vmatpush1.bf16.msra.mxu0 %v9065_v51  ;;  %1380 = vmatpush1.bf16.msra.mxu1 %v9566_v63  ;;  %v9070_v63 = vld [vmem:[#allocation7 + $0x64] ss:$16 sps:$4 sm:$0xff]  }
 0x466   :  { %1340 = vmatprep.subr.bf16.mxu0 %v9066_v62  ;;  %1381 = vmatprep.subr.bf16.mxu1 %v9569_v1  ;;  %v9071_v1 = vld [vmem:[#allocation7 + $0x60] ss:$16 sps:$4 sm:$0xff]  }
 0x467   :  { %1370 = vmatprep.mubr.bf16.mxu0 %v11014_v15  ;;  %1411 = vmatprep.mubr.bf16.mxu1 %v11014_v15 }
 0x469   :  { %1341 = vmatpush1.bf16.msra.mxu0 %v9067_v45  ;;  %1382 = vmatpush1.bf16.msra.mxu1 %v9575_v3  ;;  %v9073_v3 = vld [vmem:[#allocation7 + $0x80] ss:$16 sps:$4 sm:$0xff]  }
 0x46a   :  { %1342 = vmatprep.subr.bf16.mxu0 %v9068_v52  ;;  %1383 = vmatprep.subr.bf16.mxu1 %v9579_v4  ;;  %v9074_v4 = vld [vmem:[#allocation7 + $0xa4] ss:$16 sps:$4 sm:$0xff]  }
 0x46d   :  { %1343 = vmatpush1.bf16.msra.mxu0 %v9069_v53  ;;  %1384 = vmatpush1.bf16.msra.mxu1 %v9582_v5  ;;  %v9075_v5 = vld [vmem:[#allocation7 + $0xa0] ss:$16 sps:$4 sm:$0xff]  }
 0x46e   :  { %1344 = vmatprep.subr.bf16.mxu0 %v9070_v63  ;;  %1385 = vmatprep.subr.bf16.mxu1 %v9585_v6  ;;  %v9076_v6 = vld [vmem:[#allocation7 + $0xc4] ss:$16 sps:$4 sm:$0xff]  }
 0x471   :  { %1345 = vmatpush1.bf16.msra.mxu0 %v9071_v1  ;;  %1386 = vmatpush1.bf16.msra.mxu1 %v9588_v7  ;;  %v9077_v7 = vld [vmem:[#allocation7 + $0xc0] ss:$16 sps:$4 sm:$0xff]  }
 0x472   :  { %1346 = vmatprep.subr.bf16.mxu0 %v9072_v54  ;;  %1387 = vmatprep.subr.bf16.mxu1 %v9591_v8  ;;  %v9078_v8 = vld [vmem:[#allocation7 + $0xe4] ss:$16 sps:$4 sm:$0xff]  }
 0x475   :  { %1347 = vmatpush1.bf16.msra.mxu0 %v9073_v3  ;;  %1388 = vmatpush1.bf16.msra.mxu1 %v9594_v9  ;;  %v9079_v9 = vld [vmem:[#allocation7 + $0xe0] ss:$16 sps:$4 sm:$0xff]  }
 0x476   :  { %1348 = vmatprep.subr.bf16.mxu0 %v9074_v4  ;;  %1389 = vmatprep.subr.bf16.mxu1 %v9597_v10  ;;  %v1006_v10 = vlaneseq }
 0x479   :  { %1349 = vmatpush1.bf16.msra.mxu0 %v9075_v5  ;;  %1390 = vmatpush1.bf16.msra.mxu1 %v9600_v11  ;;  %v1007_v11 = vshrl.u32 %v1006_v10, 7 }
 0x47a   :  { %1350 = vmatprep.subr.bf16.mxu0 %v9076_v6  ;;  %1391 = vmatprep.subr.bf16.mxu1 %v9603_v12  ;;  %v1102_v12 = vld [vmem:[%s11003_s9] sm:$0x7] }
 0x47b   :  { %v9717_v55 = vsub.s32 0, %v1007_v11 }
 0x47d   :  { %1351 = vmatpush1.bf16.msra.mxu0 %v9077_v7  ;;  %1392 = vmatpush1.bf16.msra.mxu1 %v9606_v13  ;;  %11039 = vst [vmem:[#allocation20_spill] sm:$0xff] %v9717_v55  ;;  %v9722_v13 = vsub.s32 1, %v1007_v11 }
 0x47e   :  { %1352 = vmatprep.subr.bf16.mxu0 %v9078_v8  ;;  %1393 = vmatprep.subr.bf16.mxu1 %v9609_v14  ;;  %v876_v14 = vld [vmem:[%s11005_s11] sm:$0x7] }
 0x47f   :  { %11040 = vst [vmem:[#allocation21_spill] sm:$0xff] %v9722_v13  ;;  %v1009_v56 = vrot.slane %v876_v14, %v9717_v55  ;;  %v1111_v57 = vrot.slane %v1102_v12, %v9722_v13  ;;  %v1013_v58 = vrot.slane %v876_v14, %v9722_v13 }
 0x481   :  { %1353 = vmatpush1.bf16.msra.mxu0 %v9079_v9  ;;  %1394 = vmatpush1.bf16.msra.mxu1 %v9612_v16  ;;  %v1107_v16 = vrot.slane %v1102_v12, %v9717_v55  ;;  %v1120_v21 = vadd.f32 %v1111_v57, %v9672_v49  ;;  %v9080_v9 = vld [vmem:[%s10995_s1] sm:$0x1] }
 0x482   :  { %7986 = vmatprep.subr.bf16.mxu0 %v11016_v0  ;;  %8006 = vmatprep.subr.bf16.mxu1 %v11016_v0 }
 0x483   :  { %v1119_v61 = vadd.f32 %v1107_v16, %v9495_v37  ;;  %v9733_v37 = vsub.s32 2, %v1007_v11 }
 0x485   :  { %v1115_v52 = vrot.slane %v1102_v12, %v9733_v37  ;;  %v1017_v49 = vrot.slane %v876_v14, %v9733_v37 }
 0x487   :  { %v1121_v63 = vadd.f32 %v1115_v52, %v9674_v50  ;;  %v8564_v52 = vld [vmem:[#allocation5 + $0x8] sm:$0xff]  }
 0x537   :  { %v1055_v59 = vpop.f32.mrb[12].mxu0  ;;  %v1096_v60 = vpop.f32.mrb[12].mxu1 }
 0x538   :  { %v1056_v2 = vadd.f32 %v1055_v59, %v1009_v56  ;;  %v1057_v17 = vpop.f32.mrb[13].mxu0  ;;  %v7984_v18 = vpop.f32.mrb[13].mxu1  ;;  %v1097_v54 = vadd.f32 %v1096_v60, %v1017_v49  ;;  %v8565_v49 = vld [vmem:[#allocation5 + $0x10] sm:$0xff]  }
 0x539   :  { %v1058_v22 = vadd.f32 %v1057_v17, %v1013_v58  ;;  %v1059_v23 = vpop.f32.mrb[14].mxu0  ;;  %v1099_v25 = vpop.f32.mrb[14].mxu1  ;;  %v8555_v18 = vld [vmem:[%s10996_s2] sm:$0xff]  }
 0x53a   :  { %v1122_v26 = vadd.f32 %v1119_v61, %v1056_v2  ;;  %v1060_v27 = vpop.f32.mrb[15].mxu0  ;;  %v7985_v28 = vpop.f32.mrb[15].mxu1  ;;  %v8558_v23 = vld [vmem:[%s10996_s2 + $0x18] sm:$0xff]  }
 0x53b   :  { %v1129_v46 = vadd.f32 %v1120_v21, %v1058_v22  ;;  %v8556_v21 = vld [vmem:[%s10996_s2 + $0x8] sm:$0xff]   ;;  %v8557_v22 = vld [vmem:[%s10996_s2 + $0x10] sm:$0xff]  }
 0x53c   :  { %v7114_v47 = vmul.f32 -1.442695, %v1122_v26 }
 0x53d   :  { %v7115_v48 = vmul.f32 -1.442695, %v1129_v46 }
 0x53e   :  { %8951 = vpow2.f32 %v7114_v47  ;;  %v8559_v47 = vld [vmem:[%s10996_s2 + $0x20] sm:$0xff]  }
 0x53f   :  { %8953 = vpow2.f32 %v7115_v48  ;;  %v8560_v48 = vld [vmem:[%s10996_s2 + $0x28] sm:$0xff]  }
 0x548   :  { %v8952_v51 = vpop.eup %8951 }
 0x549   :  { %v1126_v62 = vadd.f32 1.0, %v8952_v51  ;;  %v8954_v45 = vpop.eup %8953  ;;  %v8561_v51 = vld [vmem:[%s10996_s2 + $0x30] sm:$0xff]  }
 0x54a   :  { %v1133_v53 = vadd.f32 1.0, %v8954_v45  ;;  %v8563_v45 = vld [vmem:[#allocation5] sm:$0xff]  }
 0x54b   :  { %8955 = vrcp.f32 %v1126_v62  ;;  %v8562_v62 = vld [vmem:[%s10996_s2 + $0x38] sm:$0xff]  }
 0x54c   :  { %8957 = vrcp.f32 %v1133_v53  ;;  %v8566_v53 = vld [vmem:[#allocation5 + $0x18] sm:$0xff]  }
 0x555   :  { %v8956_v1 = vpop.eup %8955 }
 0x556   :  { %v1136_v3 = vmul.f32 %v8956_v1, %v1121_v63  ;;  %v8958_v5 = vpop.eup %8957  ;;  %v8567_v63 = vld [vmem:[#allocation5 + $0x20] sm:$0xff]   ;;  %v8568_v1 = vld [vmem:[#allocation5 + $0x28] sm:$0xff]  }
 0x557   :  { %v1139_v6 = vsub.f32 1.0, %v8958_v5  ;;  %v1141_v10 = vmul.f32 %v9080_v9, %v8958_v5 }
 0x558   :  { %v1137_v4 = vadd.f32 %v1136_v3, %v1097_v54 }
 0x55a   :  { %8959 = vtanh.f32 %v1137_v4 }
 0x564   :  { %v8960_v7 = vpop.eup %8959 }
 0x565   :  { %v1140_v8 = vmul.f32 %v8960_v7, %v1139_v6 }
 0x567   :  { %v9741_v11 = vadd.f32 %v1141_v10, %v1140_v8 }
 0x569   :  { %1143 = vst [vmem:[#allocation12] sm:$0x1] %v9741_v11  ;;  %v1145_v50 = vpack.c.bf16 %v9741_v11, %v9741_v11 }
 0x56b   :  { %1371 = vmatmul.mubr.bf16.vlgmr.msra.gmra.mrb[16].mxu0 %v1145_v50  ;;  %1412 = vmatmul.mubr.bf16.vlgmr.msra.gmra.mrb[16].mxu1 %v1145_v50 }
 0x56c   :  { %8002 = vmatprep.mubr.msk.bf16.mxu0 %vm9279_vm0, %v11016_v0  ;;  %8022 = vmatprep.mubr.msk.bf16.mxu1 %vm9279_vm0, %v11016_v0 }
 0x56d   :  { %7987 = vmatpush3.bf16.msra.mxu0 %v8555_v18  ;;  %8007 = vmatpush3.bf16.msra.mxu1 %v8563_v45  ;;  %v9841_v18 = vld [vmem:[#allocation7 + $0x2c] ss:$16 sps:$4 sm:$0xff]   ;;  %v9879_v45 = vld [vmem:[#allocation7 + $0x80] ss:$16 sps:$4 sm:$0xff]  }
 0x56e   :  { %7988 = vmatprep.subr.bf16.mxu0 %v11016_v0  ;;  %8008 = vmatprep.subr.bf16.mxu1 %v11016_v0 }
 0x571   :  { %7989 = vmatpush3.bf16.msra.mxu0 %v8556_v21  ;;  %8009 = vmatpush3.bf16.msra.mxu1 %v8564_v52  ;;  %v9843_v21 = vld [vmem:[#allocation7 + $0x20] ss:$16 sps:$4 sm:$0xff]   ;;  %v9881_v52 = vld [vmem:[#allocation7 + $0x88] ss:$16 sps:$4 sm:$0xff]  }
 0x572   :  { %7990 = vmatprep.subr.bf16.mxu0 %v11016_v0  ;;  %8010 = vmatprep.subr.bf16.mxu1 %v11016_v0 }
 0x575   :  { %7991 = vmatpush3.bf16.msra.mxu0 %v8557_v22  ;;  %8011 = vmatpush3.bf16.msra.mxu1 %v8565_v49  ;;  %v9845_v22 = vld [vmem:[#allocation7 + $0x28] ss:$16 sps:$4 sm:$0xff]   ;;  %v9885_v49 = vld [vmem:[#allocation7 + $0xa4] ss:$16 sps:$4 sm:$0xff]  }
 0x576   :  { %7992 = vmatprep.subr.bf16.mxu0 %v11016_v0  ;;  %8012 = vmatprep.subr.bf16.mxu1 %v11016_v0 }
 0x579   :  { %7993 = vmatpush3.bf16.msra.mxu0 %v8558_v23  ;;  %8013 = vmatpush3.bf16.msra.mxu1 %v8566_v53  ;;  %v9851_v23 = vld [vmem:[#allocation7 + $0x44] ss:$16 sps:$4 sm:$0xff]   ;;  %v9887_v53 = vld [vmem:[#allocation7 + $0xac] ss:$16 sps:$4 sm:$0xff]  }
 0x57a   :  { %7994 = vmatprep.subr.bf16.mxu0 %v11016_v0  ;;  %8014 = vmatprep.subr.bf16.mxu1 %v11016_v0 }
 0x57d   :  { %7995 = vmatpush3.bf16.msra.mxu0 %v8559_v47  ;;  %8015 = vmatpush3.bf16.msra.mxu1 %v8567_v63  ;;  %v9867_v47 = vld [vmem:[#allocation7 + $0x60] ss:$16 sps:$4 sm:$0xff]  }
 0x57e   :  { %7996 = vmatprep.subr.bf16.mxu0 %v11016_v0  ;;  %8016 = vmatprep.subr.bf16.mxu1 %v11016_v0  ;;  %v9891_v63 = vld [vmem:[#allocation7 + $0xa0] ss:$16 sps:$4 sm:$0xff]  }
 0x581   :  { %7997 = vmatpush3.bf16.msra.mxu0 %v8560_v48  ;;  %8017 = vmatpush3.bf16.msra.mxu1 %v8568_v1  ;;  %v9869_v48 = vld [vmem:[#allocation7 + $0x68] ss:$16 sps:$4 sm:$0xff]  }
 0x582   :  { %7998 = vmatprep.subr.bf16.mxu0 %v11016_v0  ;;  %8018 = vmatprep.subr.bf16.mxu1 %v11016_v0  ;;  %v9893_v1 = vld [vmem:[#allocation7 + $0xa8] ss:$16 sps:$4 sm:$0xff]  }
 0x585   :  { %7999 = vmatpush3.bf16.msra.mxu0 %v8561_v51  ;;  %v9875_v51 = vld [vmem:[#allocation7 + $0x84] ss:$16 sps:$4 sm:$0xff]  }
 0x586   :  { %8000 = vmatprep.subr.bf16.mxu0 %v11016_v0 }
 0x589   :  { %8001 = vmatpush3.bf16.msra.mxu0 %v8562_v62  ;;  %v9877_v62 = vld [vmem:[#allocation7 + $0x8c] ss:$16 sps:$4 sm:$0xff]  }
 0x58a   :  { %1837 = vmatprep.subr.bf16.mxu0 %v9632_v30  ;;  %v8569_v30 = vld [vmem:[#allocation5 + $0x30] sm:$0xff]  }
 0x58b   :  { %8019 = vmatpush3.bf16.msra.mxu1 %v8569_v30  ;;  %v9897_v30 = vld [vmem:[#allocation7 + $0xc4] ss:$16 sps:$4 sm:$0xff]  }
 0x58c   :  { %8020 = vmatprep.subr.bf16.mxu1 %v11016_v0 }
 0x63e   :  { %v1372_v12 = vpop.f32.mrb[16].mxu0  ;;  %v9750_v14 = vpop.f32.mrb[16].mxu1 }
 0x63f   :  { %v1421_v16 = vrot.slane %v1372_v12, 7  ;;  %v9752_v56 = vpop.f32.mrb[17].mxu0  ;;  %v9754_v57 = vpop.f32.mrb[17].mxu1 }
 0x640   :  { %v1376_v58 = vpop.f32.mrb[18].mxu0  ;;  %v1417_v59 = vpop.f32.mrb[18].mxu1 }
 0x641   :  { %v1377_v60 = vpop.f32.mrb[19].mxu0  ;;  %v1418_v61 = vpop.f32.mrb[19].mxu1  ;;  %v1423_v2 = vadd.f32 %v1421_v16, %v9492_v34  ;;  %v9827_v59 = vld [vmem:[#allocation7 + $0x4] ss:$16 sps:$4 sm:$0xff]  }
 0x642   :  { %v9829_v60 = vld [vmem:[#allocation7 + $0xc] ss:$16 sps:$4 sm:$0xff]   ;;  %v9831_v61 = vld [vmem:[#allocation7] ss:$16 sps:$4 sm:$0xff]  }
 0x643   :  { %v1425_v17 = vsel %vm1424_vm2, %v1423_v2, -inf }
 0x644   :  { %1426 = vmax.xlane.f32.xlu1 %v1425_v17  ;;  %v9839_v17 = vld [vmem:[#allocation7 + $0x24] ss:$16 sps:$4 sm:$0xff]  }
 0x6d1   :  { %v1427_v25 = vpop.xlane.xlu1 %1426 }
 0x6d2   :  { %v1428_v26 = vsub.f32 %v1423_v2, %v1427_v25  ;;  %v9833_v2 = vld [vmem:[#allocation7 + $0x8] ss:$16 sps:$4 sm:$0xff]   ;;  %v9853_v25 = vld [vmem:[#allocation7 + $0x4c] ss:$16 sps:$4 sm:$0xff]  }
 0x6d4   :  { %v1429_v27 = vmul.f32 1.442695, %v1428_v26  ;;  %v9855_v26 = vld [vmem:[#allocation7 + $0x40] ss:$16 sps:$4 sm:$0xff]  }
 0x6d6   :  { %8961 = vpow2.f32 %v1429_v27  ;;  %v9857_v27 = vld [vmem:[#allocation7 + $0x48] ss:$16 sps:$4 sm:$0xff]  }
 0x6e0   :  { %v8962_v28 = vpop.eup %8961 }
 0x6e1   :  { %v1431_v46 = vsel %vm1424_vm2, %v8962_v28, 0.0 }
 0x6e2   :  { %1432 = vadd.xlane.f32.xlu1 %v1431_v46  ;;  %v9865_v46 = vld [vmem:[#allocation7 + $0x6c] ss:$16 sps:$4 sm:$0xff]  }
 0x76f   :  { %v1433_v54 = vpop.xlane.xlu1 %1432 }
 0x770   :  { %8963 = vrcp.f32 %v1433_v54  ;;  %v9899_v54 = vld [vmem:[#allocation7 + $0xcc] ss:$16 sps:$4 sm:$0xff]  }
 0x77a   :  { %v8964_v3 = vpop.eup %8963 }
 0x77b   :  { %v1435_v4 = vmul.f32 %v8964_v3, %v8962_v28  ;;  %v9863_v28 = vld [vmem:[#allocation7 + $0x64] ss:$16 sps:$4 sm:$0xff]   ;;  %v9903_v3 = vld [vmem:[#allocation7 + $0xc0] ss:$16 sps:$4 sm:$0xff]  }
 0x77d   :  { %v1436_v5 = vpack.c.bf16 %v1435_v4, %v1435_v4  ;;  %1960 = vst [vmem:[#allocation14] sm:$0x2] %v1435_v4  ;;  %v9905_v4 = vld [vmem:[#allocation7 + $0xc8] ss:$16 sps:$4 sm:$0xff]  }
 0x77f   :  { %v1454_v6 = vshrl.u32 %v1436_v5, 16  ;;  %v9909_v5 = vld [vmem:[#allocation7 + $0xe4] ss:$16 sps:$4 sm:$0xff]  }
 0x781   :  { %8003 = vmatmul.mubr.bf16.vlgmr.msra.gmra.mrb[20].mxu0 %v1454_v6  ;;  %v9911_v6 = vld [vmem:[#allocation7 + $0xec] ss:$16 sps:$4 sm:$0xff]  }
 0x782   :  { %1838 = vmatpush1.bf16.msra.mxu0 %v9630_v29  ;;  %1869 = vmatprep.mubr.bf16.mxu0 %v11014_v15  ;;  %v8570_v29 = vld [vmem:[#allocation5 + $0x38] sm:$0xff]  }
 0x783   :  { %1839 = vmatprep.subr.bf16.mxu0 %v9634_v31  ;;  %8021 = vmatpush3.bf16.msra.mxu1 %v8570_v29  ;;  %v9915_v29 = vld [vmem:[#allocation7 + $0xe0] ss:$16 sps:$4 sm:$0xff]  }
 0x784   :  { %8026 = vmatprep.subr.bf16.mxu1 %v11016_v0 }
 0x786   :  { %1840 = vmatpush1.bf16.msra.mxu0 %v9638_v32  ;;  %v8571_v32 = vld [vmem:[#allocation8 + $0x8] ss:$12 sps:$4 sm:$0xff]  }
 0x787   :  { %1841 = vmatprep.subr.bf16.mxu0 %v9641_v33 }
 0x78a   :  { %1842 = vmatpush1.bf16.msra.mxu0 %v9644_v35 }
 0x78b   :  { %1843 = vmatprep.subr.bf16.mxu0 %v9647_v36 }
 0x78e   :  { %1844 = vmatpush1.bf16.msra.mxu0 %v9650_v38 }
 0x78f   :  { %1845 = vmatprep.subr.bf16.mxu0 %v9653_v39  ;;  %v8572_v39 = vld [vmem:[#allocation8 + $0x20] ss:$12 sps:$4 sm:$0xff]  }
 0x792   :  { %1846 = vmatpush1.bf16.msra.mxu0 %v9656_v40  ;;  %v8573_v40 = vld [vmem:[#allocation8 + $0x38] ss:$12 sps:$4 sm:$0xff]  }
 0x793   :  { %1847 = vmatprep.subr.bf16.mxu0 %v9659_v41  ;;  %v8574_v41 = vld [vmem:[#allocation8 + $0x50] ss:$12 sps:$4 sm:$0xff]  }
 0x796   :  { %1848 = vmatpush1.bf16.msra.mxu0 %v9662_v42  ;;  %v8575_v42 = vld [vmem:[#allocation8 + $0x68] ss:$12 sps:$4 sm:$0xff]  }
 0x797   :  { %1849 = vmatprep.subr.bf16.mxu0 %v9665_v43  ;;  %v8576_v43 = vld [vmem:[#allocation8 + $0x80] ss:$12 sps:$4 sm:$0xff]  }
 0x79a   :  { %1850 = vmatpush1.bf16.msra.mxu0 %v9668_v44  ;;  %v8577_v44 = vld [vmem:[#allocation8 + $0x98] ss:$12 sps:$4 sm:$0xff]  }
 0x79b   :  { %1851 = vmatprep.subr.bf16.mxu0 %v9684_v19  ;;  %v8578_v19 = vld [vmem:[#allocation8 + $0xb0] ss:$12 sps:$4 sm:$0xff]  }
 0x79e   :  { %1852 = vmatpush1.bf16.msra.mxu0 %v9687_v20 }
 0x79f   :  { %2154 = vmatprep.subr.bf16.mxu0 %v9827_v59 }
 0x854   :  { %v1539_v31 = vpop.f32.mrb[20].mxu0 }
 0x855   :  { %v1545_v33 = vpack.c.bf16 %v1539_v31, %v1539_v31  ;;  %v8004_v35 = vpop.f32.mrb[21].mxu0  ;;  %v9917_v31 = vld [vmem:[#allocation7 + $0xe8] ss:$16 sps:$4 sm:$0xff]  }
 0x856   :  { %v1542_v36 = vpop.f32.mrb[22].mxu0 }
 0x857   :  { %v8005_v38 = vpop.f32.mrb[23].mxu0  ;;  %8023 = vmatmul.mubr.bf16.vlgmr.msra.gmra.mrb[20].mxu1 %v1545_v33  ;;  %v1688_v33 = vld [vmem:[%s11005_s11] sm:$0x7] }
 0x858   :  { %8027 = vmatpush3.bf16.msra.mxu1 %v8571_v32  ;;  %8042 = vmatprep.mubr.msk.bf16.mxu1 %vm9279_vm0, %v11016_v0  ;;  %v1918_v32 = vld [vmem:[%s11003_s9] sm:$0x7]  ;;  %v1825_v36 = vrot.slane %v1688_v33, %v9717_v55 }
 0x859   :  { %8028 = vmatprep.subr.bf16.mxu1 %v11016_v0  ;;  %v1923_v35 = vrot.slane %v1918_v32, %v9717_v55  ;;  %v1927_v38 = vrot.slane %v1918_v32, %v9722_v13 }
 0x85c   :  { %8029 = vmatpush3.bf16.msra.mxu1 %v8572_v39  ;;  %v1829_v39 = vrot.slane %v1688_v33, %v9722_v13 }
 0x85d   :  { %8030 = vmatprep.subr.bf16.mxu1 %v11016_v0 }
 0x860   :  { %8031 = vmatpush3.bf16.msra.mxu1 %v8573_v40 }
 0x861   :  { %8032 = vmatprep.subr.bf16.mxu1 %v11016_v0 }
 0x864   :  { %8033 = vmatpush3.bf16.msra.mxu1 %v8574_v41 }
 0x865   :  { %8034 = vmatprep.subr.bf16.mxu1 %v11016_v0 }
 0x868   :  { %8035 = vmatpush3.bf16.msra.mxu1 %v8575_v42  ;;  %v1935_v42 = vadd.f32 %v1923_v35, %v9752_v56  ;;  %v1931_v35 = vrot.slane %v1918_v32, %v9733_v37 }
 0x869   :  { %8036 = vmatprep.subr.bf16.mxu1 %v11016_v0 }
 0x86c   :  { %8037 = vmatpush3.bf16.msra.mxu1 %v8576_v43 }
 0x86d   :  { %8038 = vmatprep.subr.bf16.mxu1 %v11016_v0 }
 0x870   :  { %8039 = vmatpush3.bf16.msra.mxu1 %v8577_v44 }
 0x871   :  { %8040 = vmatprep.subr.bf16.mxu1 %v11016_v0 }
 0x874   :  { %8041 = vmatpush3.bf16.msra.mxu1 %v8578_v19 }
 0x875   :  { %2195 = vmatprep.subr.bf16.mxu1 %v9829_v60 }
 0x92a   :  { %v1644_v20 = vpop.f32.mrb[20].mxu1 }
 0x92b   :  { %v1651_v7 = vrot.slane %v1644_v20, 7  ;;  %v8024_v8 = vpop.f32.mrb[21].mxu1  ;;  %v1936_v20 = vadd.f32 %v1927_v38, %v9750_v14  ;;  %v1937_v38 = vadd.f32 %v1931_v35, %v9754_v57  ;;  %v11041_v57 = vmov 0.0   ;;  %v8628_v35 = vld [vmem:[%s10996_s2 + $0x8] sm:$0xff]  }
 0x92c   :  { %v1647_v9 = vpop.f32.mrb[22].mxu1 }
 0x92d   :  { %v1653_v10 = vadd.f32 %v1651_v7, %v9695_v24  ;;  %v8025_v50 = vpop.f32.mrb[23].mxu1 }
 0x92f   :  { %v1654_v12 = vmax.f32 %v1653_v10, 0.0 }
 0x931   :  { %v1655_v16 = vpack.c.bf16 %v1654_v12, %v1654_v12 }
 0x933   :  { %v1690_v58 = vshrl.u32 %v1655_v16, 16 }
 0x935   :  { %1870 = vmatmul.mubr.bf16.vlgmr.msra.gmra.mrb[24].mxu0 %v1690_v58  ;;  %8043 = vmatmul.mubr.bf16.vlgmr.msra.gmra.mrb[24].mxu1 %v1690_v58 }
 0x936   :  { %2186 = vmatprep.mubr.bf16.mxu0 %v11014_v15  ;;  %2227 = vmatprep.mubr.bf16.mxu1 %v11014_v15 }
 0x937   :  { %2155 = vmatpush1.bf16.msra.mxu0 %v9831_v61  ;;  %2196 = vmatpush1.bf16.msra.mxu1 %v9833_v2 }
 0x938   :  { %2156 = vmatprep.subr.bf16.mxu0 %v9839_v17  ;;  %2197 = vmatprep.subr.bf16.mxu1 %v9841_v18 }
 0x93b   :  { %2157 = vmatpush1.bf16.msra.mxu0 %v9843_v21  ;;  %2198 = vmatpush1.bf16.msra.mxu1 %v9845_v22 }
 0x93c   :  { %2158 = vmatprep.subr.bf16.mxu0 %v9851_v23  ;;  %2199 = vmatprep.subr.bf16.mxu1 %v9853_v25 }
 0x93f   :  { %2159 = vmatpush1.bf16.msra.mxu0 %v9855_v26  ;;  %2200 = vmatpush1.bf16.msra.mxu1 %v9857_v27 }
 0x940   :  { %2160 = vmatprep.subr.bf16.mxu0 %v9863_v28  ;;  %2201 = vmatprep.subr.bf16.mxu1 %v9865_v46 }
 0x943   :  { %2161 = vmatpush1.bf16.msra.mxu0 %v9867_v47  ;;  %2202 = vmatpush1.bf16.msra.mxu1 %v9869_v48 }
 0x944   :  { %2162 = vmatprep.subr.bf16.mxu0 %v9875_v51  ;;  %2203 = vmatprep.subr.bf16.mxu1 %v9877_v62 }
 0x947   :  { %2163 = vmatpush1.bf16.msra.mxu0 %v9879_v45  ;;  %2204 = vmatpush1.bf16.msra.mxu1 %v9881_v52 }
 0x948   :  { %2164 = vmatprep.subr.bf16.mxu0 %v9885_v49  ;;  %2205 = vmatprep.subr.bf16.mxu1 %v9887_v53 }
 0x94b   :  { %2165 = vmatpush1.bf16.msra.mxu0 %v9891_v63  ;;  %2206 = vmatpush1.bf16.msra.mxu1 %v9893_v1 }
 0x94c   :  { %2166 = vmatprep.subr.bf16.mxu0 %v9897_v30  ;;  %2207 = vmatprep.subr.bf16.mxu1 %v9899_v54 }
 0x94f   :  { %2167 = vmatpush1.bf16.msra.mxu0 %v9903_v3  ;;  %2208 = vmatpush1.bf16.msra.mxu1 %v9905_v4 }
 0x950   :  { %2168 = vmatprep.subr.bf16.mxu0 %v9909_v5  ;;  %2209 = vmatprep.subr.bf16.mxu1 %v9911_v6 }
 0x953   :  { %2169 = vmatpush1.bf16.msra.mxu0 %v9915_v29  ;;  %2210 = vmatpush1.bf16.msra.mxu1 %v9917_v31 }
 0x954   :  { %8046 = vmatprep.subr.bf16.mxu0 %v11016_v0  ;;  %8066 = vmatprep.subr.bf16.mxu1 %v11016_v0 }
 0xa08   :  { %v1871_v40 = vpop.f32.mrb[24].mxu0  ;;  %v1912_v41 = vpop.f32.mrb[24].mxu1 }
 0xa09   :  { %v1872_v43 = vadd.f32 %v1871_v40, %v1825_v36  ;;  %v1873_v44 = vpop.f32.mrb[25].mxu0  ;;  %v8044_v19 = vpop.f32.mrb[25].mxu1  ;;  %v1833_v36 = vrot.slane %v1688_v33, %v9733_v37 }
 0xa0a   :  { %v1874_v7 = vadd.f32 %v1873_v44, %v1829_v39  ;;  %v1875_v8 = vpop.f32.mrb[26].mxu0  ;;  %v1915_v9 = vpop.f32.mrb[26].mxu1 }
 0xa0b   :  { %v1938_v10 = vadd.f32 %v1935_v42, %v1872_v43  ;;  %v1876_v50 = vpop.f32.mrb[27].mxu0  ;;  %v8045_v12 = vpop.f32.mrb[27].mxu1  ;;  %v1913_v40 = vadd.f32 %v1912_v41, %v1833_v36  ;;  %v8629_v36 = vld [vmem:[%s10996_s2 + $0x10] sm:$0xff]  }
 0xa0c   :  { %v1945_v16 = vadd.f32 %v1936_v20, %v1874_v7 }
 0xa0d   :  { %v7188_v58 = vmul.f32 -1.442695, %v1938_v10 }
 0xa0e   :  { %v7189_v15 = vmul.f32 -1.442695, %v1945_v16 }
 0xa0f   :  { %8965 = vpow2.f32 %v7188_v58 }
 0xa10   :  { %8967 = vpow2.f32 %v7189_v15 }
 0xa19   :  { %v8966_v0 = vpop.eup %8965 }
 0xa1a   :  { %v1942_v13 = vadd.f32 1.0, %v8966_v0  ;;  %v8968_v56 = vpop.eup %8967 }
 0xa1b   :  { %v1949_v14 = vadd.f32 1.0, %v8968_v56  ;;  %v8627_v56 = vld [vmem:[%s10996_s2] sm:$0xff]  }
 0xa1c   :  { %8969 = vrcp.f32 %v1942_v13 }
 0xa1d   :  { %8971 = vrcp.f32 %v1949_v14  ;;  %v8630_v14 = vld [vmem:[%s10996_s2 + $0x18] sm:$0xff]  }
 0xa26   :  { %v8970_v39 = vpop.eup %8969 }
 0xa27   :  { %v1952_v42 = vmul.f32 %v8970_v39, %v1937_v38  ;;  %v8972_v44 = vpop.eup %8971 }
 0xa28   :  { %v1955_v19 = vsub.f32 1.0, %v8972_v44  ;;  %v1957_v0 = vmul.f32 %v8972_v44, %v9741_v11  ;;  %v8631_v44 = vld [vmem:[%s10996_s2 + $0x20] sm:$0xff]  }
 0xa29   :  { %v1953_v43 = vadd.f32 %v1952_v42, %v1913_v40 }
 0xa2b   :  { %8973 = vtanh.f32 %v1953_v43 }
 0xa35   :  { %v8974_v15 = vpop.eup %8973 }
 0xa36   :  { %v1956_v20 = vmul.f32 %v8974_v15, %v1955_v19  ;;  %v8632_v19 = vld [vmem:[%s10996_s2 + $0x28] sm:$0xff]   ;;  %v8633_v15 = vld [vmem:[%s10996_s2 + $0x30] sm:$0xff]  }
 0xa38   :  { %v9941_v13 = vadd.f32 %v1957_v0, %v1956_v20  ;;  %v8634_v20 = vld [vmem:[%s10996_s2 + $0x38] sm:$0xff]   ;;  %v8635_v0 = vld [vmem:[#allocation5] sm:$0xff]  }
 0xa3a   :  { %1959 = vst [vmem:[#allocation12 + $0x1] sm:$0x1] %v9941_v13  ;;  %v1961_v32 = vpack.c.bf16 %v9941_v13, %v9941_v13 }
 0xa3c   :  { %2187 = vmatmul.mubr.bf16.vlgmr.msra.gmra.mrb[28].mxu0 %v1961_v32  ;;  %2228 = vmatmul.mubr.bf16.vlgmr.msra.gmra.mrb[28].mxu1 %v1961_v32  ;;  %v8636_v32 = vld [vmem:[#allocation5 + $0x8] sm:$0xff]  }
 0xa3d   :  { %8062 = vmatprep.mubr.msk.bf16.mxu0 %vm9279_vm0, %v11041_v57  ;;  %8082 = vmatprep.mubr.msk.bf16.mxu1 %vm9279_vm0, %v11041_v57 }
 0xa3e   :  { %8047 = vmatpush3.bf16.msra.mxu0 %v8627_v56  ;;  %8067 = vmatpush3.bf16.msra.mxu1 %v8635_v0  ;;  %v10025_v0 = vld [vmem:[#allocation8 + $0x60] ss:$12 sps:$4 sm:$0xff]  }
 0xa3f   :  { %8048 = vmatprep.subr.bf16.mxu0 %v11041_v57  ;;  %8068 = vmatprep.subr.bf16.mxu1 %v11041_v57 }
 0xa42   :  { %8049 = vmatpush3.bf16.msra.mxu0 %v8628_v35  ;;  %8069 = vmatpush3.bf16.msra.mxu1 %v8636_v32  ;;  %v10028_v32 = vld [vmem:[#allocation8 + $0x7c] ss:$12 sps:$4 sm:$0xff]  }
 0xa43   :  { %8050 = vmatprep.subr.bf16.mxu0 %v11041_v57  ;;  %8070 = vmatprep.subr.bf16.mxu1 %v11041_v57  ;;  %11043 = vst [vmem:[#allocation22_spill] sm:$0xff] %v10028_v32 }
 0xa46   :  { %8051 = vmatpush3.bf16.msra.mxu0 %v8629_v36  ;;  %v11042_v36 = vmov 0  }
 0xa47   :  { %8052 = vmatprep.subr.bf16.mxu0 %v11041_v57 }
 0xa4a   :  { %8053 = vmatpush3.bf16.msra.mxu0 %v8630_v14  ;;  %v8642_v14 = vld [vmem:[#allocation5 + $0x38] sm:$0xff]  }
 0xa4b   :  { %8054 = vmatprep.subr.bf16.mxu0 %v11041_v57 }
 0xa4e   :  { %8055 = vmatpush3.bf16.msra.mxu0 %v8631_v44  ;;  %v10013_v44 = vld [vmem:[#allocation8 + $0x30] ss:$12 sps:$4 sm:$0xff]  }
 0xa4f   :  { %8056 = vmatprep.subr.bf16.mxu0 %v11041_v57 }
 0xa52   :  { %8057 = vmatpush3.bf16.msra.mxu0 %v8632_v19  ;;  %v10016_v19 = vld [vmem:[#allocation8 + $0x4c] ss:$12 sps:$4 sm:$0xff]  }
 0xa53   :  { %8058 = vmatprep.subr.bf16.mxu0 %v11041_v57 }
 0xa56   :  { %8059 = vmatpush3.bf16.msra.mxu0 %v8633_v15  ;;  %v10019_v15 = vld [vmem:[#allocation8 + $0x48] ss:$12 sps:$4 sm:$0xff]  }
 0xa57   :  { %8060 = vmatprep.subr.bf16.mxu0 %v11041_v57 }
 0xa5a   :  { %8061 = vmatpush3.bf16.msra.mxu0 %v8634_v20  ;;  %v10022_v20 = vld [vmem:[#allocation8 + $0x64] ss:$12 sps:$4 sm:$0xff]  }
 0xb0f   :  { %v2188_v33 = vpop.f32.mrb[28].mxu0  ;;  %v9950_v41 = vpop.f32.mrb[28].mxu1 }
 0xb10   :  { %v2237_v7 = vrot.slane %v2188_v33, 6  ;;  %v9952_v11 = vpop.f32.mrb[29].mxu0  ;;  %v9954_v8 = vpop.f32.mrb[29].mxu1  ;;  %v8637_v33 = vld [vmem:[#allocation5 + $0x10] sm:$0xff]  }
 0xb11   :  { %v2192_v9 = vpop.f32.mrb[30].mxu0  ;;  %v2233_v10 = vpop.f32.mrb[30].mxu1  ;;  %8071 = vmatpush3.bf16.msra.mxu1 %v8637_v33  ;;  %v10031_v33 = vld [vmem:[#allocation8 + $0x78] ss:$12 sps:$4 sm:$0xff]  }
 0xb12   :  { %v2193_v50 = vpop.f32.mrb[31].mxu0  ;;  %v2234_v12 = vpop.f32.mrb[31].mxu1  ;;  %v2239_v16 = vadd.f32 %v2237_v7, %v9492_v34  ;;  %v8638_v7 = vld [vmem:[#allocation5 + $0x18] sm:$0xff]   ;;  %8072 = vmatprep.subr.bf16.mxu1 %v11041_v57  ;;  %v8639_v9 = vld [vmem:[#allocation5 + $0x20] sm:$0xff]   ;;  %v8640_v10 = vld [vmem:[#allocation5 + $0x28] sm:$0xff]   ;;  %11044 = vst [vmem:[#allocation23_spill] sm:$0xff] %v10031_v33 }
 0xb13   :  { %v8641_v50 = vld [vmem:[#allocation5 + $0x30] sm:$0xff]  }
 0xb14   :  { %v2241_v58 = vsel %vm2240_vm3, %v2239_v16, -inf }
 0xb15   :  { %2242 = vmax.xlane.f32.xlu0 %v2241_v58  ;;  %8073 = vmatpush3.bf16.msra.mxu1 %v8638_v7 }
 0xb16   :  { %8074 = vmatprep.subr.bf16.mxu1 %v11041_v57 }
 0xb19   :  { %8075 = vmatpush3.bf16.msra.mxu1 %v8639_v9  ;;  %v8646_v9 = vld [vmem:[#allocation8 + $0x8] ss:$12 sps:$4 sm:$0xff]  }
 0xb1a   :  { %8076 = vmatprep.subr.bf16.mxu1 %v11041_v57 }
 0xb1d   :  { %8077 = vmatpush3.bf16.msra.mxu1 %v8640_v10 }
 0xb1e   :  { %8078 = vmatprep.subr.bf16.mxu1 %v11041_v57 }
 0xb21   :  { %8079 = vmatpush3.bf16.msra.mxu1 %v8641_v50 }
 0xb22   :  { %8080 = vmatprep.subr.bf16.mxu1 %v11041_v57 }
 0xb25   :  { %8081 = vmatpush3.bf16.msra.mxu1 %v8642_v14  ;;  %v8662_v14 = vld [vmem:[#allocation8 + $0x68] ss:$12 sps:$4 sm:$0xff]  }
 0xb26   :  { %8086 = vmatprep.subr.bf16.mxu1 %v11041_v57 }
 0xba2   :  { %v2243_v38 = vpop.xlane.xlu0 %2242 }
 0xba3   :  { %v2244_v39 = vsub.f32 %v2239_v16, %v2243_v38  ;;  %v9999_v38 = vld [vmem:[#allocation8] ss:$12 sps:$4 sm:$0xff]  }
 0xba5   :  { %v2245_v40 = vmul.f32 1.442695, %v2244_v39  ;;  %v10001_v39 = vld [vmem:[#allocation8 + $0x4] ss:$12 sps:$4 sm:$0xff]  }
 0xba6   :  { %2651 = vmatprep.subr.bf16.mxu0 %v10001_v39 }
 0xba7   :  { %8975 = vpow2.f32 %v2245_v40  ;;  %v10003_v40 = vld [vmem:[#allocation8 + $0x1c] ss:$12 sps:$4 sm:$0xff]  }
 0xbb1   :  { %v8976_v42 = vpop.eup %8975 }
 0xbb2   :  { %v2247_v43 = vsel %vm2240_vm3, %v8976_v42, 0.0 }
 0xbb3   :  { %2248 = vadd.xlane.f32.xlu1 %v2247_v43  ;;  %v10010_v43 = vld [vmem:[#allocation8 + $0x34] ss:$12 sps:$4 sm:$0xff]  }
 0xc40   :  { %v2249_v12 = vpop.xlane.xlu1 %2248 }
 0xc41   :  { %8977 = vrcp.f32 %v2249_v12 }
 0xc4b   :  { %v8978_v16 = vpop.eup %8977 }
 0xc4c   :  { %v2251_v58 = vmul.f32 %v8978_v16, %v8976_v42  ;;  %v10007_v42 = vld [vmem:[#allocation8 + $0x18] ss:$12 sps:$4 sm:$0xff]  }
 0xc4e   :  { %v2252_v56 = vpack.c.bf16 %v2251_v58, %v2251_v58  ;;  %2774 = vst [vmem:[#allocation14] sm:$0x4] %v2251_v58  ;;  %v8650_v58 = vld [vmem:[#allocation8 + $0x20] ss:$12 sps:$4 sm:$0xff]  }
 0xc50   :  { %v2270_v35 = vrot.slane %v2252_v56, 1  ;;  %v8654_v56 = vld [vmem:[#allocation8 + $0x38] ss:$12 sps:$4 sm:$0xff]  }
 0xc52   :  { %8063 = vmatmul.mubr.bf16.vlgmr.msra.gmra.mrb[32].mxu0 %v2270_v35  ;;  %v8658_v35 = vld [vmem:[#allocation8 + $0x50] ss:$12 sps:$4 sm:$0xff]  }
 0xc53   :  { %2683 = vmatprep.mubr.bf16.mxu0 %v11042_v36  ;;  %2652 = vmatpush1.bf16.msra.mxu0 %v9999_v38 }
 0xc54   :  { %2653 = vmatprep.subr.bf16.mxu0 %v10003_v40 }
 0xc57   :  { %2654 = vmatpush1.bf16.msra.mxu0 %v10007_v42 }
 0xc58   :  { %2655 = vmatprep.subr.bf16.mxu0 %v10010_v43 }
 0xc5b   :  { %2656 = vmatpush1.bf16.msra.mxu0 %v10013_v44 }
 0xc5c   :  { %2657 = vmatprep.subr.bf16.mxu0 %v10016_v19 }
 0xc5f   :  { %2658 = vmatpush1.bf16.msra.mxu0 %v10019_v15 }
 0xc60   :  { %2659 = vmatprep.subr.bf16.mxu0 %v10022_v20 }
 0xc63   :  { %2660 = vmatpush1.bf16.msra.mxu0 %v10025_v0 }
 0xc64   :  { %2661 = vmatprep.subr.bf16.mxu0 %v10028_v32 }
 0xc67   :  { %2662 = vmatpush1.bf16.msra.mxu0 %v10031_v33 }
 0xd25   :  { %v2354_v7 = vpop.f32.mrb[32].mxu0 }
 0xd26   :  { %v2360_v10 = vpack.c.bf16 %v2354_v7, %v2354_v7  ;;  %v8064_v50 = vpop.f32.mrb[33].mxu0  ;;  %v8666_v7 = vld [vmem:[#allocation8 + $0x80] ss:$12 sps:$4 sm:$0xff]  }
 0xd27   :  { %v2357_v12 = vpop.f32.mrb[34].mxu0  ;;  %v8670_v50 = vld [vmem:[#allocation8 + $0x98] ss:$12 sps:$4 sm:$0xff]  }
 0xd28   :  { %v8065_v16 = vpop.f32.mrb[35].mxu0  ;;  %8083 = vmatmul.mubr.bf16.vlgmr.msra.gmra.mrb[32].mxu1 %v2360_v10  ;;  %v10045_v10 = vld [vmem:[#allocation8 + $0x90] ss:$12 sps:$4 sm:$0xff]   ;;  %v10049_v12 = vld [vmem:[#allocation8 + $0xac] ss:$12 sps:$4 sm:$0xff]  }
 0xd29   :  { %8087 = vmatpush3.bf16.msra.mxu1 %v8646_v9  ;;  %8102 = vmatprep.mubr.msk.bf16.mxu1 %vm9279_vm0, %v11041_v57  ;;  %v10042_v9 = vld [vmem:[#allocation8 + $0x94] ss:$12 sps:$4 sm:$0xff]   ;;  %11046 = vst [vmem:[#allocation25_spill] sm:$0xff] %v10045_v10 }
 0xd2a   :  { %8088 = vmatprep.subr.bf16.mxu1 %v11041_v57  ;;  %11045 = vst [vmem:[#allocation24_spill] sm:$0xff] %v10042_v9  ;;  %2663 = vmatprep.subr.bf16.mxu0 %v10042_v9  ;;  %v10052_v16 = vld [vmem:[#allocation8 + $0xa8] ss:$12 sps:$4 sm:$0xff]  }
 0xd2b   :  { %2664 = vmatpush1.bf16.msra.mxu0 %v10045_v10 }
 0xd2c   :  { %2665 = vmatprep.subr.bf16.mxu0 %v10049_v12 }
 0xd2d   :  { %8089 = vmatpush3.bf16.msra.mxu1 %v8650_v58  ;;  %v8674_v58 = vld [vmem:[#allocation8 + $0xb0] ss:$12 sps:$4 sm:$0xff]  }
 0xd2e   :  { %8090 = vmatprep.subr.bf16.mxu1 %v11041_v57 }
 0xd2f   :  { %2666 = vmatpush1.bf16.msra.mxu0 %v10052_v16 }
 0xd30   :  { %2968 = vmatprep.subr.bf16.mxu0 %v9827_v59  ;;  %v2732_v59 = vld [vmem:[%s11003_s9] sm:$0x7] }
 0xd31   :  { %8091 = vmatpush3.bf16.msra.mxu1 %v8654_v56 }
 0xd32   :  { %8092 = vmatprep.subr.bf16.mxu1 %v11041_v57 }
 0xd35   :  { %8093 = vmatpush3.bf16.msra.mxu1 %v8658_v35 }
 0xd36   :  { %8094 = vmatprep.subr.bf16.mxu1 %v11041_v57 }
 0xd39   :  { %8095 = vmatpush3.bf16.msra.mxu1 %v8662_v14 }
 0xd3a   :  { %8096 = vmatprep.subr.bf16.mxu1 %v11041_v57 }
 0xd3d   :  { %8097 = vmatpush3.bf16.msra.mxu1 %v8666_v7 }
 0xd3e   :  { %8098 = vmatprep.subr.bf16.mxu1 %v11041_v57 }
 0xd41   :  { %8099 = vmatpush3.bf16.msra.mxu1 %v8670_v50 }
 0xd42   :  { %8100 = vmatprep.subr.bf16.mxu1 %v11041_v57 }
 0xd45   :  { %8101 = vmatpush3.bf16.msra.mxu1 %v8674_v58 }
 0xd46   :  { %3009 = vmatprep.subr.bf16.mxu1 %v9829_v60  ;;  %v2503_v60 = vld [vmem:[%s11005_s11] sm:$0x7] }
 0xdfb   :  { %v2459_v56 = vpop.f32.mrb[32].mxu1 }
 0xdfc   :  { %v2466_v35 = vrot.slane %v2459_v56, 6  ;;  %v8084_v14 = vpop.f32.mrb[33].mxu1 }
 0xdfd   :  { %v2462_v7 = vpop.f32.mrb[34].mxu1 }
 0xdfe   :  { %v2468_v50 = vadd.f32 %v2466_v35, %v9695_v24  ;;  %v8085_v10 = vpop.f32.mrb[35].mxu1 }
 0xe00   :  { %v2469_v9 = vmax.f32 %v2468_v50, 0.0 }
 0xe02   :  { %v2470_v33 = vpack.c.bf16 %v2469_v9, %v2469_v9 }
 0xe04   :  { %v2505_v32 = vrot.slane %v2470_v33, 1 }
 0xe06   :  { %2684 = vmatmul.mubr.bf16.vlgmr.msra.gmra.mrb[36].mxu0 %v2505_v32  ;;  %8103 = vmatmul.mubr.bf16.vlgmr.msra.gmra.mrb[36].mxu1 %v2505_v32 }
 0xe07   :  { %2969 = vmatpush1.bf16.msra.mxu0 %v9831_v61  ;;  %3010 = vmatpush1.bf16.msra.mxu1 %v9833_v2  ;;  %v2737_v61 = vrot.slane %v2732_v59, %v9717_v55  ;;  %v2639_v2 = vrot.slane %v2503_v60, %v9717_v55 }
 0xe08   :  { %2970 = vmatprep.subr.bf16.mxu0 %v9839_v17  ;;  %3011 = vmatprep.subr.bf16.mxu1 %v9841_v18  ;;  %v11047_v17 = vld [vmem:[#allocation21_spill] sm:$0xff] }
 0xe09   :  { %3000 = vmatprep.mubr.bf16.mxu0 %v11042_v36  ;;  %3041 = vmatprep.mubr.bf16.mxu1 %v11042_v36  ;;  %v2741_v18 = vrot.slane %v2732_v59, %v11047_v17 }
 0xe0b   :  { %2971 = vmatpush1.bf16.msra.mxu0 %v9843_v21  ;;  %3012 = vmatpush1.bf16.msra.mxu1 %v9845_v22  ;;  %v2643_v21 = vrot.slane %v2503_v60, %v11047_v17 }
 0xe0c   :  { %2972 = vmatprep.subr.bf16.mxu0 %v9851_v23  ;;  %3013 = vmatprep.subr.bf16.mxu1 %v9853_v25  ;;  %v2749_v25 = vadd.f32 %v2737_v61, %v9952_v11 }
 0xe0f   :  { %2973 = vmatpush1.bf16.msra.mxu0 %v9855_v26  ;;  %3014 = vmatpush1.bf16.msra.mxu1 %v9857_v27 }
 0xe10   :  { %2974 = vmatprep.subr.bf16.mxu0 %v9863_v28  ;;  %3015 = vmatprep.subr.bf16.mxu1 %v9865_v46  ;;  %v2750_v46 = vadd.f32 %v2741_v18, %v9950_v41 }
 0xe13   :  { %2975 = vmatpush1.bf16.msra.mxu0 %v9867_v47  ;;  %3016 = vmatpush1.bf16.msra.mxu1 %v9869_v48 }
 0xe14   :  { %2976 = vmatprep.subr.bf16.mxu0 %v9875_v51  ;;  %3017 = vmatprep.subr.bf16.mxu1 %v9877_v62 }
 0xe17   :  { %2977 = vmatpush1.bf16.msra.mxu0 %v9879_v45  ;;  %3018 = vmatpush1.bf16.msra.mxu1 %v9881_v52 }
 0xe18   :  { %2978 = vmatprep.subr.bf16.mxu0 %v9885_v49  ;;  %3019 = vmatprep.subr.bf16.mxu1 %v9887_v53 }
 0xe1b   :  { %2979 = vmatpush1.bf16.msra.mxu0 %v9891_v63  ;;  %3020 = vmatpush1.bf16.msra.mxu1 %v9893_v1 }
 0xe1c   :  { %2980 = vmatprep.subr.bf16.mxu0 %v9897_v30  ;;  %3021 = vmatprep.subr.bf16.mxu1 %v9899_v54 }
 0xe1f   :  { %2981 = vmatpush1.bf16.msra.mxu0 %v9903_v3  ;;  %3022 = vmatpush1.bf16.msra.mxu1 %v9905_v4  ;;  %v2745_v3 = vrot.slane %v2732_v59, %v9733_v37  ;;  %v2647_v4 = vrot.slane %v2503_v60, %v9733_v37 }
 0xe20   :  { %2982 = vmatprep.subr.bf16.mxu0 %v9909_v5  ;;  %3023 = vmatprep.subr.bf16.mxu1 %v9911_v6 }
 0xe21   :  { %v2751_v6 = vadd.f32 %v2745_v3, %v9954_v8 }
 0xe23   :  { %2983 = vmatpush1.bf16.msra.mxu0 %v9915_v29  ;;  %3024 = vmatpush1.bf16.msra.mxu1 %v9917_v31 }
 0xe24   :  { %8106 = vmatprep.subr.bf16.mxu0 %v11041_v57  ;;  %8126 = vmatprep.subr.bf16.mxu1 %v11041_v57 }
 0xed9   :  { %v2685_v22 = vpop.f32.mrb[36].mxu0  ;;  %v2726_v23 = vpop.f32.mrb[36].mxu1 }
 0xeda   :  { %v2686_v26 = vadd.f32 %v2685_v22, %v2639_v2  ;;  %v2687_v27 = vpop.f32.mrb[37].mxu0  ;;  %v8104_v28 = vpop.f32.mrb[37].mxu1  ;;  %v2727_v31 = vadd.f32 %v2726_v23, %v2647_v4  ;;  %v8675_v22 = vld [vmem:[%s10996_s2] sm:$0xff]   ;;  %v8676_v23 = vld [vmem:[%s10996_s2 + $0x8] sm:$0xff]  }
 0xedb   :  { %v2688_v47 = vadd.f32 %v2687_v27, %v2643_v21  ;;  %v2689_v48 = vpop.f32.mrb[38].mxu0  ;;  %v2729_v51 = vpop.f32.mrb[38].mxu1 }
 0xedc   :  { %v2752_v62 = vadd.f32 %v2749_v25, %v2686_v26  ;;  %v2690_v45 = vpop.f32.mrb[39].mxu0  ;;  %v8105_v52 = vpop.f32.mrb[39].mxu1  ;;  %v8677_v25 = vld [vmem:[%s10996_s2 + $0x10] sm:$0xff]   ;;  %v8678_v48 = vld [vmem:[%s10996_s2 + $0x18] sm:$0xff]   ;;  %v8679_v51 = vld [vmem:[%s10996_s2 + $0x20] sm:$0xff]  }
 0xedd   :  { %v2759_v49 = vadd.f32 %v2750_v46, %v2688_v47  ;;  %v8681_v45 = vld [vmem:[%s10996_s2 + $0x30] sm:$0xff]   ;;  %v8682_v52 = vld [vmem:[%s10996_s2 + $0x38] sm:$0xff]  }
 0xede   :  { %v7262_v53 = vmul.f32 -1.442695, %v2752_v62  ;;  %v8680_v62 = vld [vmem:[%s10996_s2 + $0x28] sm:$0xff]  }
 0xedf   :  { %v7263_v63 = vmul.f32 -1.442695, %v2759_v49  ;;  %v8683_v49 = vld [vmem:[#allocation5] sm:$0xff]  }
 0xee0   :  { %8979 = vpow2.f32 %v7262_v53  ;;  %v8684_v53 = vld [vmem:[#allocation5 + $0x8] sm:$0xff]  }
 0xee1   :  { %8981 = vpow2.f32 %v7263_v63  ;;  %v8685_v63 = vld [vmem:[#allocation5 + $0x10] sm:$0xff]  }
 0xeea   :  { %v8980_v1 = vpop.eup %8979 }
 0xeeb   :  { %v2756_v30 = vadd.f32 1.0, %v8980_v1  ;;  %v8982_v54 = vpop.eup %8981  ;;  %v8686_v1 = vld [vmem:[#allocation5 + $0x18] sm:$0xff]  }
 0xeec   :  { %v2763_v5 = vadd.f32 1.0, %v8982_v54  ;;  %v8688_v54 = vld [vmem:[#allocation5 + $0x28] sm:$0xff]  }
 0xeed   :  { %8983 = vrcp.f32 %v2756_v30  ;;  %v8687_v30 = vld [vmem:[#allocation5 + $0x20] sm:$0xff]  }
 0xeee   :  { %8985 = vrcp.f32 %v2763_v5 }
 0xef7   :  { %v8984_v29 = vpop.eup %8983 }
 0xef8   :  { %v2766_v41 = vmul.f32 %v8984_v29, %v2751_v6  ;;  %v8986_v32 = vpop.eup %8985 }
 0xef9   :  { %v2769_v33 = vsub.f32 1.0, %v8986_v32  ;;  %v2771_v58 = vmul.f32 %v8986_v32, %v9941_v13  ;;  %v8692_v32 = vld [vmem:[#allocation8 + $0x20] ss:$12 sps:$4 sm:$0xff]  }
 0xefa   :  { %v2767_v11 = vadd.f32 %v2766_v41, %v2727_v31  ;;  %v11048_v41 = vld [vmem:[#allocation22_spill] sm:$0xff] }
 0xefc   :  { %8987 = vtanh.f32 %v2767_v11  ;;  %v11050_v11 = vld [vmem:[#allocation24_spill] sm:$0xff] }
 0xf06   :  { %v8988_v9 = vpop.eup %8987 }
 0xf07   :  { %v2770_v10 = vmul.f32 %v8988_v9, %v2769_v33  ;;  %v8695_v33 = vld [vmem:[#allocation8 + $0x68] ss:$12 sps:$4 sm:$0xff]   ;;  %v8696_v9 = vld [vmem:[#allocation8 + $0x80] ss:$12 sps:$4 sm:$0xff]  }
 0xf09   :  { %v10109_v56 = vadd.f32 %v2771_v58, %v2770_v10  ;;  %v8697_v10 = vld [vmem:[#allocation8 + $0x98] ss:$12 sps:$4 sm:$0xff]   ;;  %v8698_v58 = vld [vmem:[#allocation8 + $0xb0] ss:$12 sps:$4 sm:$0xff]  }
 0xf0b   :  { %2773 = vst [vmem:[#allocation12 + $0x2] sm:$0x1] %v10109_v56  ;;  %v2775_v35 = vpack.c.bf16 %v10109_v56, %v10109_v56 }
 0xf0d   :  { %3001 = vmatmul.mubr.bf16.vlgmr.msra.gmra.mrb[40].mxu0 %v2775_v35  ;;  %3042 = vmatmul.mubr.bf16.vlgmr.msra.gmra.mrb[40].mxu1 %v2775_v35 }
 0xf0e   :  { %8122 = vmatprep.mubr.msk.bf16.mxu0 %vm9279_vm0, %v11041_v57  ;;  %8142 = vmatprep.mubr.msk.bf16.mxu1 %vm9279_vm0, %v11041_v57 }
 0xf0f   :  { %8107 = vmatpush3.bf16.msra.mxu0 %v8675_v22  ;;  %8127 = vmatpush3.bf16.msra.mxu1 %v8683_v49  ;;  %v10231_v49 = vld [vmem:[#allocation7 + $0x64] ss:$16 sps:$4 sm:$0xff]  }
 0xf10   :  { %8108 = vmatprep.subr.bf16.mxu0 %v11041_v57  ;;  %8128 = vmatprep.subr.bf16.mxu1 %v11041_v57 }
 0xf13   :  { %8109 = vmatpush3.bf16.msra.mxu0 %v8676_v23  ;;  %8129 = vmatpush3.bf16.msra.mxu1 %v8684_v53  ;;  %v10195_v23 = vld [vmem:[#allocation7 + $0x4] ss:$16 sps:$4 sm:$0xff]   ;;  %v10233_v53 = vld [vmem:[#allocation7 + $0x6c] ss:$16 sps:$4 sm:$0xff]  }
 0xf14   :  { %8110 = vmatprep.subr.bf16.mxu0 %v11041_v57  ;;  %8130 = vmatprep.subr.bf16.mxu1 %v11041_v57 }
 0xf17   :  { %8111 = vmatpush3.bf16.msra.mxu0 %v8677_v25  ;;  %8131 = vmatpush3.bf16.msra.mxu1 %v8685_v63  ;;  %v10197_v25 = vld [vmem:[#allocation7 + $0xc] ss:$16 sps:$4 sm:$0xff]   ;;  %v10235_v63 = vld [vmem:[#allocation7 + $0x60] ss:$16 sps:$4 sm:$0xff]  }
 0xf18   :  { %8112 = vmatprep.subr.bf16.mxu0 %v11041_v57  ;;  %8132 = vmatprep.subr.bf16.mxu1 %v11041_v57 }
 0xf1b   :  { %8113 = vmatpush3.bf16.msra.mxu0 %v8678_v48  ;;  %8133 = vmatpush3.bf16.msra.mxu1 %v8686_v1  ;;  %v10213_v48 = vld [vmem:[#allocation7 + $0x28] ss:$16 sps:$4 sm:$0xff]  }
 0xf1c   :  { %8114 = vmatprep.subr.bf16.mxu0 %v11041_v57  ;;  %8134 = vmatprep.subr.bf16.mxu1 %v11041_v57  ;;  %v10237_v1 = vld [vmem:[#allocation7 + $0x68] ss:$16 sps:$4 sm:$0xff]  }
 0xf1f   :  { %8115 = vmatpush3.bf16.msra.mxu0 %v8679_v51  ;;  %8135 = vmatpush3.bf16.msra.mxu1 %v8687_v30  ;;  %v10219_v51 = vld [vmem:[#allocation7 + $0x44] ss:$16 sps:$4 sm:$0xff]  }
 0xf20   :  { %8116 = vmatprep.subr.bf16.mxu0 %v11041_v57  ;;  %8136 = vmatprep.subr.bf16.mxu1 %v11041_v57  ;;  %v10243_v30 = vld [vmem:[#allocation7 + $0x84] ss:$16 sps:$4 sm:$0xff]  }
 0xf23   :  { %8117 = vmatpush3.bf16.msra.mxu0 %v8680_v62  ;;  %8137 = vmatpush3.bf16.msra.mxu1 %v8688_v54  ;;  %v10221_v62 = vld [vmem:[#allocation7 + $0x4c] ss:$16 sps:$4 sm:$0xff]  }
 0xf24   :  { %8118 = vmatprep.subr.bf16.mxu0 %v11041_v57  ;;  %8138 = vmatprep.subr.bf16.mxu1 %v11041_v57  ;;  %v10245_v54 = vld [vmem:[#allocation7 + $0x8c] ss:$16 sps:$4 sm:$0xff]  }
 0xf27   :  { %8119 = vmatpush3.bf16.msra.mxu0 %v8681_v45  ;;  %v10223_v45 = vld [vmem:[#allocation7 + $0x40] ss:$16 sps:$4 sm:$0xff]  }
 0xf28   :  { %8120 = vmatprep.subr.bf16.mxu0 %v11041_v57 }
 0xf2b   :  { %8121 = vmatpush3.bf16.msra.mxu0 %v8682_v52  ;;  %v10225_v52 = vld [vmem:[#allocation7 + $0x48] ss:$16 sps:$4 sm:$0xff]  }
 0xf2c   :  { %3469 = vmatprep.subr.bf16.mxu0 %v10001_v39  ;;  %v8689_v39 = vld [vmem:[#allocation5 + $0x30] sm:$0xff]  }
 0xf2d   :  { %8139 = vmatpush3.bf16.msra.mxu1 %v8689_v39  ;;  %v10247_v39 = vld [vmem:[#allocation7 + $0x80] ss:$16 sps:$4 sm:$0xff]  }
 0xf2e   :  { %8140 = vmatprep.subr.bf16.mxu1 %v11041_v57 }
 0xfe0   :  { %v3002_v8 = vpop.f32.mrb[40].mxu0  ;;  %v10118_v14 = vpop.f32.mrb[40].mxu1 }
 0xfe1   :  { %v3051_v7 = vrot.slane %v3002_v8, 5  ;;  %v10120_v13 = vpop.f32.mrb[41].mxu0  ;;  %v10122_v50 = vpop.f32.mrb[41].mxu1 }
 0xfe2   :  { %v3006_v59 = vpop.f32.mrb[42].mxu0  ;;  %v3047_v60 = vpop.f32.mrb[42].mxu1 }
 0xfe3   :  { %v3007_v61 = vpop.f32.mrb[43].mxu0  ;;  %v3048_v2 = vpop.f32.mrb[43].mxu1  ;;  %v3053_v18 = vadd.f32 %v3051_v7, %v9492_v34 }
 0xfe5   :  { %v3055_v21 = vsel %vm3054_vm4, %v3053_v18, -inf }
 0xfe6   :  { %3056 = vmax.xlane.f32.xlu0 %v3055_v21 }
0x1073   :  { %v3057_v26 = vpop.xlane.xlu0 %3056 }
0x1074   :  { %v3058_v27 = vsub.f32 %v3053_v18, %v3057_v26  ;;  %v10199_v26 = vld [vmem:[#allocation7] ss:$16 sps:$4 sm:$0xff]  }
0x1076   :  { %v3059_v28 = vmul.f32 1.442695, %v3058_v27  ;;  %v10201_v27 = vld [vmem:[#allocation7 + $0x8] ss:$16 sps:$4 sm:$0xff]  }
0x1078   :  { %8989 = vpow2.f32 %v3059_v28  ;;  %v10207_v28 = vld [vmem:[#allocation7 + $0x24] ss:$16 sps:$4 sm:$0xff]  }
0x1082   :  { %v8990_v46 = vpop.eup %8989 }
0x1083   :  { %v3061_v47 = vsel %vm3054_vm4, %v8990_v46, 0.0 }
0x1084   :  { %3062 = vadd.xlane.f32.xlu1 %v3061_v47  ;;  %v10211_v47 = vld [vmem:[#allocation7 + $0x20] ss:$16 sps:$4 sm:$0xff]  }
0x1111   :  { %v3063_v3 = vpop.xlane.xlu1 %3062 }
0x1112   :  { %8991 = vrcp.f32 %v3063_v3  ;;  %v10249_v3 = vld [vmem:[#allocation7 + $0x88] ss:$16 sps:$4 sm:$0xff]  }
0x111c   :  { %v8992_v4 = vpop.eup %8991 }
0x111d   :  { %v3065_v5 = vmul.f32 %v8992_v4, %v8990_v46  ;;  %v10209_v46 = vld [vmem:[#allocation7 + $0x2c] ss:$16 sps:$4 sm:$0xff]   ;;  %v10253_v4 = vld [vmem:[#allocation7 + $0xa4] ss:$16 sps:$4 sm:$0xff]  }
0x111f   :  { %v3066_v6 = vpack.c.bf16 %v3065_v5, %v3065_v5  ;;  %3592 = vst [vmem:[#allocation14] sm:$0x8] %v3065_v5  ;;  %v10255_v5 = vld [vmem:[#allocation7 + $0xac] ss:$16 sps:$4 sm:$0xff]  }
0x1121   :  { %v3084_v29 = vshrl.u32 %v3066_v6, 16  ;;  %v10259_v6 = vld [vmem:[#allocation7 + $0xa0] ss:$16 sps:$4 sm:$0xff]  }
0x1123   :  { %v3086_v31 = vrot.slane %v3084_v29, 1  ;;  %v10261_v29 = vld [vmem:[#allocation7 + $0xa8] ss:$16 sps:$4 sm:$0xff]  }
0x1125   :  { %8123 = vmatmul.mubr.bf16.vlgmr.msra.gmra.mrb[44].mxu0 %v3086_v31  ;;  %v10265_v31 = vld [vmem:[#allocation7 + $0xc4] ss:$16 sps:$4 sm:$0xff]  }
0x1126   :  { %3470 = vmatpush1.bf16.msra.mxu0 %v9999_v38  ;;  %3501 = vmatprep.mubr.bf16.mxu0 %v11042_v36  ;;  %v11049_v38 = vld [vmem:[#allocation23_spill] sm:$0xff] }
0x1127   :  { %3471 = vmatprep.subr.bf16.mxu0 %v10003_v40  ;;  %v11051_v40 = vld [vmem:[#allocation25_spill] sm:$0xff] }
0x112a   :  { %3472 = vmatpush1.bf16.msra.mxu0 %v10007_v42  ;;  %v8690_v42 = vld [vmem:[#allocation5 + $0x38] sm:$0xff]  }
0x112b   :  { %3473 = vmatprep.subr.bf16.mxu0 %v10010_v43  ;;  %8141 = vmatpush3.bf16.msra.mxu1 %v8690_v42  ;;  %v10279_v42 = vld [vmem:[#allocation7 + $0xec] ss:$16 sps:$4 sm:$0xff]  }
0x112c   :  { %8146 = vmatprep.subr.bf16.mxu1 %v11041_v57 }
0x112e   :  { %3474 = vmatpush1.bf16.msra.mxu0 %v10013_v44  ;;  %v8691_v44 = vld [vmem:[#allocation8 + $0x8] ss:$12 sps:$4 sm:$0xff]  }
0x112f   :  { %3475 = vmatprep.subr.bf16.mxu0 %v10016_v19 }
0x1132   :  { %3476 = vmatpush1.bf16.msra.mxu0 %v10019_v15 }
0x1133   :  { %3477 = vmatprep.subr.bf16.mxu0 %v10022_v20 }
0x1136   :  { %3478 = vmatpush1.bf16.msra.mxu0 %v10025_v0 }
0x1137   :  { %3479 = vmatprep.subr.bf16.mxu0 %v11048_v41  ;;  %v10267_v41 = vld [vmem:[#allocation7 + $0xcc] ss:$16 sps:$4 sm:$0xff]  }
0x113a   :  { %3480 = vmatpush1.bf16.msra.mxu0 %v11049_v38  ;;  %v10271_v38 = vld [vmem:[#allocation7 + $0xc0] ss:$16 sps:$4 sm:$0xff]  }
0x113b   :  { %3481 = vmatprep.subr.bf16.mxu0 %v11050_v11  ;;  %v10273_v11 = vld [vmem:[#allocation7 + $0xc8] ss:$16 sps:$4 sm:$0xff]  }
0x113e   :  { %3482 = vmatpush1.bf16.msra.mxu0 %v11051_v40  ;;  %v10277_v40 = vld [vmem:[#allocation7 + $0xe4] ss:$16 sps:$4 sm:$0xff]  }
0x113f   :  { %3483 = vmatprep.subr.bf16.mxu0 %v10049_v12  ;;  %v8693_v12 = vld [vmem:[#allocation8 + $0x38] ss:$12 sps:$4 sm:$0xff]  }
0x1142   :  { %3484 = vmatpush1.bf16.msra.mxu0 %v10052_v16  ;;  %v8694_v16 = vld [vmem:[#allocation8 + $0x50] ss:$12 sps:$4 sm:$0xff]  }
0x1143   :  { %3786 = vmatprep.subr.bf16.mxu0 %v10195_v23 }
0x11f8   :  { %v3170_v43 = vpop.f32.mrb[44].mxu0 }
0x11f9   :  { %v3176_v19 = vpack.c.bf16 %v3170_v43, %v3170_v43  ;;  %v8124_v15 = vpop.f32.mrb[45].mxu0  ;;  %v10283_v43 = vld [vmem:[#allocation7 + $0xe0] ss:$16 sps:$4 sm:$0xff]  }
0x11fa   :  { %v3173_v20 = vpop.f32.mrb[46].mxu0  ;;  %v3319_v15 = vld [vmem:[%s11005_s11] sm:$0x7] }
0x11fb   :  { %v8125_v0 = vpop.f32.mrb[47].mxu0  ;;  %8143 = vmatmul.mubr.bf16.vlgmr.msra.gmra.mrb[44].mxu1 %v3176_v19  ;;  %v3550_v19 = vld [vmem:[%s11003_s9] sm:$0x7] }
0x11fc   :  { %8147 = vmatpush3.bf16.msra.mxu1 %v8691_v44  ;;  %8162 = vmatprep.mubr.msk.bf16.mxu1 %vm9279_vm0, %v11041_v57  ;;  %v10285_v44 = vld [vmem:[#allocation7 + $0xe8] ss:$16 sps:$4 sm:$0xff]   ;;  %v3555_v20 = vrot.slane %v3550_v19, %v9717_v55  ;;  %v3457_v0 = vrot.slane %v3319_v15, %v9717_v55 }
0x11fd   :  { %8148 = vmatprep.subr.bf16.mxu1 %v11041_v57  ;;  %11052 = vst [vmem:[#allocation22_spill] sm:$0xff] %v10285_v44 }
0x1200   :  { %8149 = vmatpush3.bf16.msra.mxu1 %v8692_v32  ;;  %v3559_v32 = vrot.slane %v3550_v19, %v11047_v17 }
0x1201   :  { %8150 = vmatprep.subr.bf16.mxu1 %v11041_v57 }
0x1204   :  { %8151 = vmatpush3.bf16.msra.mxu1 %v8693_v12  ;;  %v3461_v12 = vrot.slane %v3319_v15, %v11047_v17 }
0x1205   :  { %8152 = vmatprep.subr.bf16.mxu1 %v11041_v57 }
0x1208   :  { %8153 = vmatpush3.bf16.msra.mxu1 %v8694_v16 }
0x1209   :  { %8154 = vmatprep.subr.bf16.mxu1 %v11041_v57 }
0x120c   :  { %8155 = vmatpush3.bf16.msra.mxu1 %v8695_v33 }
0x120d   :  { %8156 = vmatprep.subr.bf16.mxu1 %v11041_v57 }
0x1210   :  { %8157 = vmatpush3.bf16.msra.mxu1 %v8696_v9  ;;  %v3567_v9 = vadd.f32 %v3555_v20, %v10120_v13  ;;  %v3563_v20 = vrot.slane %v3550_v19, %v9733_v37 }
0x1211   :  { %8158 = vmatprep.subr.bf16.mxu1 %v11041_v57 }
0x1214   :  { %8159 = vmatpush3.bf16.msra.mxu1 %v8697_v10 }
0x1215   :  { %8160 = vmatprep.subr.bf16.mxu1 %v11041_v57 }
0x1218   :  { %8161 = vmatpush3.bf16.msra.mxu1 %v8698_v58 }
0x1219   :  { %3827 = vmatprep.subr.bf16.mxu1 %v10197_v25 }
0x12ce   :  { %v3275_v35 = vpop.f32.mrb[44].mxu1 }
0x12cf   :  { %v3282_v8 = vrot.slane %v3275_v35, 5  ;;  %v8144_v7 = vpop.f32.mrb[45].mxu1 }
0x12d0   :  { %v3278_v59 = vpop.f32.mrb[46].mxu1 }
0x12d1   :  { %v3284_v60 = vadd.f32 %v3282_v8, %v9695_v24  ;;  %v8145_v61 = vpop.f32.mrb[47].mxu1  ;;  %v3568_v8 = vadd.f32 %v3559_v32, %v10118_v14  ;;  %v3569_v32 = vadd.f32 %v3563_v20, %v10122_v50  ;;  %v8749_v20 = vld [vmem:[%s10996_s2 + $0x10] sm:$0xff]  }
0x12d3   :  { %v3285_v2 = vmax.f32 %v3284_v60, 0.0 }
0x12d5   :  { %v3286_v18 = vpack.c.bf16 %v3285_v2, %v3285_v2 }
0x12d7   :  { %v3321_v21 = vshrl.u32 %v3286_v18, 16 }
0x12d9   :  { %v3323_v22 = vrot.slane %v3321_v21, 1 }
0x12db   :  { %3502 = vmatmul.mubr.bf16.vlgmr.msra.gmra.mrb[48].mxu0 %v3323_v22  ;;  %8163 = vmatmul.mubr.bf16.vlgmr.msra.gmra.mrb[48].mxu1 %v3323_v22 }
0x12dc   :  { %3818 = vmatprep.mubr.bf16.mxu0 %v11042_v36  ;;  %3859 = vmatprep.mubr.bf16.mxu1 %v11042_v36 }
0x12dd   :  { %3787 = vmatpush1.bf16.msra.mxu0 %v10199_v26  ;;  %3828 = vmatpush1.bf16.msra.mxu1 %v10201_v27 }
0x12de   :  { %3788 = vmatprep.subr.bf16.mxu0 %v10207_v28  ;;  %3829 = vmatprep.subr.bf16.mxu1 %v10209_v46 }
0x12e1   :  { %3789 = vmatpush1.bf16.msra.mxu0 %v10211_v47  ;;  %3830 = vmatpush1.bf16.msra.mxu1 %v10213_v48 }
0x12e2   :  { %3790 = vmatprep.subr.bf16.mxu0 %v10219_v51  ;;  %3831 = vmatprep.subr.bf16.mxu1 %v10221_v62 }
0x12e5   :  { %3791 = vmatpush1.bf16.msra.mxu0 %v10223_v45  ;;  %3832 = vmatpush1.bf16.msra.mxu1 %v10225_v52 }
0x12e6   :  { %3792 = vmatprep.subr.bf16.mxu0 %v10231_v49  ;;  %3833 = vmatprep.subr.bf16.mxu1 %v10233_v53 }
0x12e9   :  { %3793 = vmatpush1.bf16.msra.mxu0 %v10235_v63  ;;  %3834 = vmatpush1.bf16.msra.mxu1 %v10237_v1 }
0x12ea   :  { %3794 = vmatprep.subr.bf16.mxu0 %v10243_v30  ;;  %3835 = vmatprep.subr.bf16.mxu1 %v10245_v54 }
0x12ed   :  { %3795 = vmatpush1.bf16.msra.mxu0 %v10247_v39  ;;  %3836 = vmatpush1.bf16.msra.mxu1 %v10249_v3 }
0x12ee   :  { %3796 = vmatprep.subr.bf16.mxu0 %v10253_v4  ;;  %3837 = vmatprep.subr.bf16.mxu1 %v10255_v5 }
0x12f1   :  { %3797 = vmatpush1.bf16.msra.mxu0 %v10259_v6  ;;  %3838 = vmatpush1.bf16.msra.mxu1 %v10261_v29 }
0x12f2   :  { %3798 = vmatprep.subr.bf16.mxu0 %v10265_v31  ;;  %3839 = vmatprep.subr.bf16.mxu1 %v10267_v41 }
0x12f5   :  { %3799 = vmatpush1.bf16.msra.mxu0 %v10271_v38  ;;  %3840 = vmatpush1.bf16.msra.mxu1 %v10273_v11 }
0x12f6   :  { %3800 = vmatprep.subr.bf16.mxu0 %v10277_v40  ;;  %3841 = vmatprep.subr.bf16.mxu1 %v10279_v42 }
0x12f9   :  { %3801 = vmatpush1.bf16.msra.mxu0 %v10283_v43  ;;  %3842 = vmatpush1.bf16.msra.mxu1 %v10285_v44 }
0x12fa   :  { %8166 = vmatprep.subr.bf16.mxu0 %v11041_v57  ;;  %8186 = vmatprep.subr.bf16.mxu1 %v11041_v57 }
0x13ae   :  { %v3503_v16 = vpop.f32.mrb[48].mxu0  ;;  %v3544_v33 = vpop.f32.mrb[48].mxu1 }
0x13af   :  { %v3504_v10 = vadd.f32 %v3503_v16, %v3457_v0  ;;  %v3505_v58 = vpop.f32.mrb[49].mxu0  ;;  %v8164_v35 = vpop.f32.mrb[49].mxu1  ;;  %v3465_v0 = vrot.slane %v3319_v15, %v9733_v37 }
0x13b0   :  { %v3506_v7 = vadd.f32 %v3505_v58, %v3461_v12  ;;  %v3507_v59 = vpop.f32.mrb[50].mxu0  ;;  %v3547_v60 = vpop.f32.mrb[50].mxu1 }
0x13b1   :  { %v3570_v61 = vadd.f32 %v3567_v9, %v3504_v10  ;;  %v3508_v2 = vpop.f32.mrb[51].mxu0  ;;  %v8165_v18 = vpop.f32.mrb[51].mxu1  ;;  %v3545_v16 = vadd.f32 %v3544_v33, %v3465_v0  ;;  %v8750_v0 = vld [vmem:[%s10996_s2 + $0x18] sm:$0xff]  }
0x13b2   :  { %v3577_v21 = vadd.f32 %v3568_v8, %v3506_v7 }
0x13b3   :  { %v7336_v22 = vmul.f32 -1.442695, %v3570_v61 }
0x13b4   :  { %v7337_v55 = vmul.f32 -1.442695, %v3577_v21 }
0x13b5   :  { %8993 = vpow2.f32 %v7336_v22  ;;  %v8747_v22 = vld [vmem:[%s10996_s2] sm:$0xff]  }
0x13b6   :  { %8995 = vpow2.f32 %v7337_v55 }
0x13bf   :  { %v8994_v17 = vpop.eup %8993 }
0x13c0   :  { %v3574_v44 = vadd.f32 1.0, %v8994_v17  ;;  %v8996_v13 = vpop.eup %8995 }
0x13c1   :  { %v3581_v14 = vadd.f32 1.0, %v8996_v13  ;;  %v8748_v13 = vld [vmem:[%s10996_s2 + $0x8] sm:$0xff]  }
0x13c2   :  { %8997 = vrcp.f32 %v3574_v44 }
0x13c3   :  { %8999 = vrcp.f32 %v3581_v14 }
0x13cc   :  { %v8998_v12 = vpop.eup %8997 }
0x13cd   :  { %v3584_v9 = vmul.f32 %v8998_v12, %v3569_v32  ;;  %v9000_v58 = vpop.eup %8999 }
0x13ce   :  { %v3587_v35 = vsub.f32 1.0, %v9000_v58  ;;  %v3589_v17 = vmul.f32 %v9000_v58, %v10109_v56  ;;  %v8752_v58 = vld [vmem:[%s10996_s2 + $0x28] sm:$0xff]  }
0x13cf   :  { %v3585_v10 = vadd.f32 %v3584_v9, %v3545_v16 }
0x13d1   :  { %9001 = vtanh.f32 %v3585_v10  ;;  %v8751_v10 = vld [vmem:[%s10996_s2 + $0x20] sm:$0xff]  }
0x13db   :  { %v9002_v55 = vpop.eup %9001 }
0x13dc   :  { %v3588_v8 = vmul.f32 %v9002_v55, %v3587_v35  ;;  %v8753_v35 = vld [vmem:[%s10996_s2 + $0x30] sm:$0xff]   ;;  %v8754_v55 = vld [vmem:[%s10996_s2 + $0x38] sm:$0xff]  }
0x13de   :  { %v10309_v44 = vadd.f32 %v3589_v17, %v3588_v8  ;;  %v8755_v8 = vld [vmem:[#allocation5] sm:$0xff]   ;;  %v8756_v17 = vld [vmem:[#allocation5 + $0x8] sm:$0xff]  }
0x13e0   :  { %3591 = vst [vmem:[#allocation12 + $0x3] sm:$0x1] %v10309_v44  ;;  %v3593_v19 = vpack.c.bf16 %v10309_v44, %v10309_v44 }
0x13e2   :  { %3819 = vmatmul.mubr.bf16.vlgmr.msra.gmra.mrb[52].mxu0 %v3593_v19  ;;  %3860 = vmatmul.mubr.bf16.vlgmr.msra.gmra.mrb[52].mxu1 %v3593_v19  ;;  %v8757_v19 = vld [vmem:[#allocation5 + $0x10] sm:$0xff]  }
0x13e3   :  { %8182 = vmatprep.mubr.msk.bf16.mxu0 %vm9279_vm0, %v11041_v57  ;;  %8202 = vmatprep.mubr.msk.bf16.mxu1 %vm9279_vm0, %v11041_v57 }
0x13e4   :  { %8167 = vmatpush3.bf16.msra.mxu0 %v8747_v22  ;;  %8187 = vmatpush3.bf16.msra.mxu1 %v8755_v8  ;;  %v10399_v8 = vld [vmem:[#allocation8 + $0x78] ss:$12 sps:$4 sm:$0xff]  }
0x13e5   :  { %8168 = vmatprep.subr.bf16.mxu0 %v11041_v57  ;;  %8188 = vmatprep.subr.bf16.mxu1 %v11041_v57 }
0x13e8   :  { %8169 = vmatpush3.bf16.msra.mxu0 %v8748_v13  ;;  %8189 = vmatpush3.bf16.msra.mxu1 %v8756_v17  ;;  %v8762_v13 = vld [vmem:[#allocation5 + $0x38] sm:$0xff]  }
0x13e9   :  { %8170 = vmatprep.subr.bf16.mxu0 %v11041_v57  ;;  %8190 = vmatprep.subr.bf16.mxu1 %v11041_v57 }
0x13ec   :  { %8171 = vmatpush3.bf16.msra.mxu0 %v8749_v20  ;;  %8191 = vmatpush3.bf16.msra.mxu1 %v8757_v19  ;;  %v10367_v20 = vld [vmem:[#allocation8] ss:$12 sps:$4 sm:$0xff]   ;;  %v8766_v19 = vld [vmem:[#allocation8 + $0x8] ss:$12 sps:$4 sm:$0xff]  }
0x13ed   :  { %8172 = vmatprep.subr.bf16.mxu0 %v11041_v57  ;;  %8192 = vmatprep.subr.bf16.mxu1 %v11041_v57 }
0x13f0   :  { %8173 = vmatpush3.bf16.msra.mxu0 %v8750_v0  ;;  %v10369_v0 = vld [vmem:[#allocation8 + $0x4] ss:$12 sps:$4 sm:$0xff]  }
0x13f1   :  { %8174 = vmatprep.subr.bf16.mxu0 %v11041_v57 }
0x13f4   :  { %8175 = vmatpush3.bf16.msra.mxu0 %v8751_v10  ;;  %v10387_v10 = vld [vmem:[#allocation8 + $0x48] ss:$12 sps:$4 sm:$0xff]  }
0x13f5   :  { %8176 = vmatprep.subr.bf16.mxu0 %v11041_v57 }
0x13f8   :  { %8177 = vmatpush3.bf16.msra.mxu0 %v8752_v58  ;;  %v10390_v58 = vld [vmem:[#allocation8 + $0x64] ss:$12 sps:$4 sm:$0xff]  }
0x13f9   :  { %8178 = vmatprep.subr.bf16.mxu0 %v11041_v57 }
0x13fc   :  { %8179 = vmatpush3.bf16.msra.mxu0 %v8753_v35  ;;  %v10393_v35 = vld [vmem:[#allocation8 + $0x60] ss:$12 sps:$4 sm:$0xff]  }
0x13fd   :  { %8180 = vmatprep.subr.bf16.mxu0 %v11041_v57 }
0x1400   :  { %8181 = vmatpush3.bf16.msra.mxu0 %v8754_v55  ;;  %v10396_v55 = vld [vmem:[#allocation8 + $0x7c] ss:$12 sps:$4 sm:$0xff]  }
0x1401   :  { %4283 = vmatprep.subr.bf16.mxu0 %v10369_v0 }
0x14b5   :  { %v3820_v50 = vpop.f32.mrb[52].mxu0  ;;  %v10318_v15 = vpop.f32.mrb[52].mxu1 }
0x14b6   :  { %v3869_v33 = vrot.slane %v3820_v50, 4  ;;  %v10320_v56 = vpop.f32.mrb[53].mxu0  ;;  %v10322_v7 = vpop.f32.mrb[53].mxu1  ;;  %v8758_v50 = vld [vmem:[#allocation5 + $0x18] sm:$0xff]  }
0x14b7   :  { %v3824_v59 = vpop.f32.mrb[54].mxu0  ;;  %v3865_v60 = vpop.f32.mrb[54].mxu1  ;;  %8193 = vmatpush3.bf16.msra.mxu1 %v8758_v50 }
0x14b8   :  { %v3825_v61 = vpop.f32.mrb[55].mxu0  ;;  %v3866_v2 = vpop.f32.mrb[55].mxu1  ;;  %v3871_v18 = vadd.f32 %v3869_v33, %v9492_v34  ;;  %v8759_v33 = vld [vmem:[#allocation5 + $0x20] sm:$0xff]   ;;  %8194 = vmatprep.subr.bf16.mxu1 %v11041_v57  ;;  %v8760_v59 = vld [vmem:[#allocation5 + $0x28] sm:$0xff]   ;;  %v8761_v60 = vld [vmem:[#allocation5 + $0x30] sm:$0xff]  }
0x14ba   :  { %v3873_v21 = vsel %vm3872_vm5, %v3871_v18, -inf }
0x14bb   :  { %3874 = vmax.xlane.f32.xlu0 %v3873_v21  ;;  %8195 = vmatpush3.bf16.msra.mxu1 %v8759_v33 }
0x14bc   :  { %8196 = vmatprep.subr.bf16.mxu1 %v11041_v57 }
0x14bf   :  { %8197 = vmatpush3.bf16.msra.mxu1 %v8760_v59 }
0x14c0   :  { %8198 = vmatprep.subr.bf16.mxu1 %v11041_v57 }
0x14c3   :  { %8199 = vmatpush3.bf16.msra.mxu1 %v8761_v60 }
0x14c4   :  { %8200 = vmatprep.subr.bf16.mxu1 %v11041_v57 }
0x14c7   :  { %8201 = vmatpush3.bf16.msra.mxu1 %v8762_v13  ;;  %v10410_v13 = vld [vmem:[#allocation8 + $0x94] ss:$12 sps:$4 sm:$0xff]  }
0x14c8   :  { %8206 = vmatprep.subr.bf16.mxu1 %v11041_v57  ;;  %11053 = vst [vmem:[#allocation23_spill] sm:$0xff] %v10410_v13 }
0x1548   :  { %v3875_v14 = vpop.xlane.xlu0 %3874 }
0x1549   :  { %v3876_v32 = vsub.f32 %v3871_v18, %v3875_v14  ;;  %v10371_v14 = vld [vmem:[#allocation8 + $0x1c] ss:$12 sps:$4 sm:$0xff]  }
0x154b   :  { %v3877_v12 = vmul.f32 1.442695, %v3876_v32  ;;  %v10375_v32 = vld [vmem:[#allocation8 + $0x18] ss:$12 sps:$4 sm:$0xff]  }
0x154d   :  { %9003 = vpow2.f32 %v3877_v12  ;;  %v10378_v12 = vld [vmem:[#allocation8 + $0x34] ss:$12 sps:$4 sm:$0xff]  }
0x1557   :  { %v9004_v16 = vpop.eup %9003 }
0x1558   :  { %v3879_v9 = vsel %vm3872_vm5, %v9004_v16, 0.0 }
0x1559   :  { %3880 = vadd.xlane.f32.xlu1 %v3879_v9  ;;  %v10384_v9 = vld [vmem:[#allocation8 + $0x4c] ss:$12 sps:$4 sm:$0xff]  }
0x15e6   :  { %v3881_v61 = vpop.xlane.xlu1 %3880 }
0x15e7   :  { %9005 = vrcp.f32 %v3881_v61  ;;  %v8770_v61 = vld [vmem:[#allocation8 + $0x20] ss:$12 sps:$4 sm:$0xff]  }
0x15f1   :  { %v9006_v2 = vpop.eup %9005 }
0x15f2   :  { %v3883_v18 = vmul.f32 %v9006_v2, %v9004_v16  ;;  %v10381_v16 = vld [vmem:[#allocation8 + $0x30] ss:$12 sps:$4 sm:$0xff]   ;;  %v8774_v2 = vld [vmem:[#allocation8 + $0x38] ss:$12 sps:$4 sm:$0xff]  }
0x15f4   :  { %v3884_v21 = vpack.c.bf16 %v3883_v18, %v3883_v18  ;;  %4406 = vst [vmem:[#allocation14] sm:$0x10] %v3883_v18  ;;  %v8778_v18 = vld [vmem:[#allocation8 + $0x50] ss:$12 sps:$4 sm:$0xff]  }
0x15f6   :  { %v3902_v22 = vrot.slane %v3884_v21, 2  ;;  %v8782_v21 = vld [vmem:[#allocation8 + $0x68] ss:$12 sps:$4 sm:$0xff]  }
0x15f8   :  { %8183 = vmatmul.mubr.bf16.vlgmr.msra.gmra.mrb[56].mxu0 %v3902_v22  ;;  %v8786_v22 = vld [vmem:[#allocation8 + $0x80] ss:$12 sps:$4 sm:$0xff]  }
0x15f9   :  { %4315 = vmatprep.mubr.bf16.mxu0 %v11042_v36  ;;  %4284 = vmatpush1.bf16.msra.mxu0 %v10367_v20 }
0x15fa   :  { %4285 = vmatprep.subr.bf16.mxu0 %v10371_v14 }
0x15fd   :  { %4286 = vmatpush1.bf16.msra.mxu0 %v10375_v32 }
0x15fe   :  { %4287 = vmatprep.subr.bf16.mxu0 %v10378_v12 }
0x1601   :  { %4288 = vmatpush1.bf16.msra.mxu0 %v10381_v16 }
0x1602   :  { %4289 = vmatprep.subr.bf16.mxu0 %v10384_v9 }
0x1605   :  { %4290 = vmatpush1.bf16.msra.mxu0 %v10387_v10 }
0x1606   :  { %4291 = vmatprep.subr.bf16.mxu0 %v10390_v58 }
0x1609   :  { %4292 = vmatpush1.bf16.msra.mxu0 %v10393_v35 }
0x160a   :  { %4293 = vmatprep.subr.bf16.mxu0 %v10396_v55 }
0x160d   :  { %4294 = vmatpush1.bf16.msra.mxu0 %v10399_v8 }
0x160e   :  { %4295 = vmatprep.subr.bf16.mxu0 %v10410_v13 }
0x16cb   :  { %v3986_v17 = vpop.f32.mrb[56].mxu0 }
0x16cc   :  { %v3992_v50 = vpack.c.bf16 %v3986_v17, %v3986_v17  ;;  %v8184_v33 = vpop.f32.mrb[57].mxu0  ;;  %v10413_v17 = vld [vmem:[#allocation8 + $0x90] ss:$12 sps:$4 sm:$0xff]  }
0x16cd   :  { %v3989_v59 = vpop.f32.mrb[58].mxu0  ;;  %11054 = vst [vmem:[#allocation24_spill] sm:$0xff] %v10413_v17  ;;  %4296 = vmatpush1.bf16.msra.mxu0 %v10413_v17  ;;  %v10420_v33 = vld [vmem:[#allocation8 + $0xa8] ss:$12 sps:$4 sm:$0xff]  }
0x16ce   :  { %v8185_v60 = vpop.f32.mrb[59].mxu0  ;;  %8203 = vmatmul.mubr.bf16.vlgmr.msra.gmra.mrb[56].mxu1 %v3992_v50  ;;  %v10417_v50 = vld [vmem:[#allocation8 + $0xac] ss:$12 sps:$4 sm:$0xff]   ;;  %v8794_v59 = vld [vmem:[#allocation8 + $0xb0] ss:$12 sps:$4 sm:$0xff]  }
0x16cf   :  { %8207 = vmatpush3.bf16.msra.mxu1 %v8766_v19  ;;  %8222 = vmatprep.mubr.msk.bf16.mxu1 %vm9279_vm0, %v11041_v57  ;;  %v8790_v19 = vld [vmem:[#allocation8 + $0x98] ss:$12 sps:$4 sm:$0xff]  }
0x16d0   :  { %8208 = vmatprep.subr.bf16.mxu1 %v11041_v57  ;;  %4297 = vmatprep.subr.bf16.mxu0 %v10417_v50 }
0x16d1   :  { %4298 = vmatpush1.bf16.msra.mxu0 %v10420_v33 }
0x16d2   :  { %4600 = vmatprep.subr.bf16.mxu0 %v10195_v23  ;;  %v11055_v23 = vld [vmem:[#allocation22_spill] sm:$0xff] }
0x16d3   :  { %8209 = vmatpush3.bf16.msra.mxu1 %v8770_v61 }
0x16d4   :  { %8210 = vmatprep.subr.bf16.mxu1 %v11041_v57 }
0x16d7   :  { %8211 = vmatpush3.bf16.msra.mxu1 %v8774_v2 }
0x16d8   :  { %8212 = vmatprep.subr.bf16.mxu1 %v11041_v57 }
0x16db   :  { %8213 = vmatpush3.bf16.msra.mxu1 %v8778_v18 }
0x16dc   :  { %8214 = vmatprep.subr.bf16.mxu1 %v11041_v57 }
0x16df   :  { %8215 = vmatpush3.bf16.msra.mxu1 %v8782_v21 }
0x16e0   :  { %8216 = vmatprep.subr.bf16.mxu1 %v11041_v57 }
0x16e3   :  { %8217 = vmatpush3.bf16.msra.mxu1 %v8786_v22 }
0x16e4   :  { %8218 = vmatprep.subr.bf16.mxu1 %v11041_v57 }
0x16e7   :  { %8219 = vmatpush3.bf16.msra.mxu1 %v8790_v19 }
0x16e8   :  { %8220 = vmatprep.subr.bf16.mxu1 %v11041_v57 }
0x16eb   :  { %8221 = vmatpush3.bf16.msra.mxu1 %v8794_v59 }
0x16ec   :  { %4641 = vmatprep.subr.bf16.mxu1 %v10197_v25  ;;  %v4364_v25 = vld [vmem:[%s11003_s9] sm:$0x7] }
0x17a1   :  { %v4091_v60 = vpop.f32.mrb[56].mxu1 }
0x17a2   :  { %v4098_v61 = vrot.slane %v4091_v60, 4  ;;  %v8204_v2 = vpop.f32.mrb[57].mxu1 }
0x17a3   :  { %v4094_v18 = vpop.f32.mrb[58].mxu1 }
0x17a4   :  { %v4100_v21 = vadd.f32 %v4098_v61, %v9695_v24  ;;  %v8205_v22 = vpop.f32.mrb[59].mxu1 }
0x17a6   :  { %v4101_v19 = vmax.f32 %v4100_v21, 0.0 }
0x17a8   :  { %v4102_v17 = vpack.c.bf16 %v4101_v19, %v4101_v19 }
0x17aa   :  { %v4137_v13 = vrot.slane %v4102_v17, 2 }
0x17ac   :  { %4316 = vmatmul.mubr.bf16.vlgmr.msra.gmra.mrb[60].mxu0 %v4137_v13  ;;  %8223 = vmatmul.mubr.bf16.vlgmr.msra.gmra.mrb[60].mxu1 %v4137_v13 }
0x17ad   :  { %4601 = vmatpush1.bf16.msra.mxu0 %v10199_v26  ;;  %4642 = vmatpush1.bf16.msra.mxu1 %v10201_v27  ;;  %v4135_v26 = vld [vmem:[%s11005_s11] sm:$0x7] }
0x17ae   :  { %4602 = vmatprep.subr.bf16.mxu0 %v10207_v28  ;;  %4643 = vmatprep.subr.bf16.mxu1 %v10209_v46  ;;  %v11056_v27 = vld [vmem:[#allocation20_spill] sm:$0xff] }
0x17af   :  { %4632 = vmatprep.mubr.bf16.mxu0 %v11042_v36  ;;  %4673 = vmatprep.mubr.bf16.mxu1 %v11042_v36  ;;  %v4369_v28 = vrot.slane %v4364_v25, %v11056_v27  ;;  %v4271_v46 = vrot.slane %v4135_v26, %v11056_v27 }
0x17b1   :  { %4603 = vmatpush1.bf16.msra.mxu0 %v10211_v47  ;;  %4644 = vmatpush1.bf16.msra.mxu1 %v10213_v48  ;;  %v11057_v47 = vld [vmem:[#allocation21_spill] sm:$0xff] }
0x17b2   :  { %4604 = vmatprep.subr.bf16.mxu0 %v10219_v51  ;;  %4645 = vmatprep.subr.bf16.mxu1 %v10221_v62  ;;  %v4373_v48 = vrot.slane %v4364_v25, %v11057_v47  ;;  %v4275_v51 = vrot.slane %v4135_v26, %v11057_v47 }
0x17b5   :  { %4605 = vmatpush1.bf16.msra.mxu0 %v10223_v45  ;;  %4646 = vmatpush1.bf16.msra.mxu1 %v10225_v52  ;;  %v4381_v52 = vadd.f32 %v4369_v28, %v10320_v56 }
0x17b6   :  { %4606 = vmatprep.subr.bf16.mxu0 %v10231_v49  ;;  %4647 = vmatprep.subr.bf16.mxu1 %v10233_v53 }
0x17b9   :  { %4607 = vmatpush1.bf16.msra.mxu0 %v10235_v63  ;;  %4648 = vmatpush1.bf16.msra.mxu1 %v10237_v1  ;;  %v4382_v1 = vadd.f32 %v4373_v48, %v10318_v15 }
0x17ba   :  { %4608 = vmatprep.subr.bf16.mxu0 %v10243_v30  ;;  %4649 = vmatprep.subr.bf16.mxu1 %v10245_v54 }
0x17bd   :  { %4609 = vmatpush1.bf16.msra.mxu0 %v10247_v39  ;;  %4650 = vmatpush1.bf16.msra.mxu1 %v10249_v3 }
0x17be   :  { %4610 = vmatprep.subr.bf16.mxu0 %v10253_v4  ;;  %4651 = vmatprep.subr.bf16.mxu1 %v10255_v5 }
0x17c1   :  { %4611 = vmatpush1.bf16.msra.mxu0 %v10259_v6  ;;  %4652 = vmatpush1.bf16.msra.mxu1 %v10261_v29 }
0x17c2   :  { %4612 = vmatprep.subr.bf16.mxu0 %v10265_v31  ;;  %4653 = vmatprep.subr.bf16.mxu1 %v10267_v41 }
0x17c5   :  { %4613 = vmatpush1.bf16.msra.mxu0 %v10271_v38  ;;  %4654 = vmatpush1.bf16.msra.mxu1 %v10273_v11 }
0x17c6   :  { %4614 = vmatprep.subr.bf16.mxu0 %v10277_v40  ;;  %4655 = vmatprep.subr.bf16.mxu1 %v10279_v42  ;;  %v4377_v40 = vrot.slane %v4364_v25, %v9733_v37  ;;  %v4279_v42 = vrot.slane %v4135_v26, %v9733_v37 }
0x17c8   :  { %v4383_v15 = vadd.f32 %v4377_v40, %v10322_v7  ;;  %v8807_v40 = vld [vmem:[#allocation5 + $0x20] sm:$0xff]  }
0x17c9   :  { %4615 = vmatpush1.bf16.msra.mxu0 %v10283_v43  ;;  %4656 = vmatpush1.bf16.msra.mxu1 %v11055_v23 }
0x17ca   :  { %8226 = vmatprep.subr.bf16.mxu0 %v11041_v57  ;;  %8246 = vmatprep.subr.bf16.mxu1 %v11041_v57 }
0x187f   :  { %v4317_v62 = vpop.f32.mrb[60].mxu0  ;;  %v4358_v45 = vpop.f32.mrb[60].mxu1 }
0x1880   :  { %v4318_v49 = vadd.f32 %v4317_v62, %v4271_v46  ;;  %v4319_v53 = vpop.f32.mrb[61].mxu0  ;;  %v8224_v63 = vpop.f32.mrb[61].mxu1  ;;  %v4359_v13 = vadd.f32 %v4358_v45, %v4279_v42  ;;  %v8808_v42 = vld [vmem:[#allocation5 + $0x28] sm:$0xff]  }
0x1881   :  { %v4320_v30 = vadd.f32 %v4319_v53, %v4275_v51  ;;  %v4321_v54 = vpop.f32.mrb[62].mxu0  ;;  %v4361_v39 = vpop.f32.mrb[62].mxu1  ;;  %v8797_v53 = vld [vmem:[%s10996_s2 + $0x10] sm:$0xff]  }
0x1882   :  { %v4384_v3 = vadd.f32 %v4381_v52, %v4318_v49  ;;  %v4322_v4 = vpop.f32.mrb[63].mxu0  ;;  %v8225_v5 = vpop.f32.mrb[63].mxu1  ;;  %v8795_v52 = vld [vmem:[%s10996_s2] sm:$0xff]   ;;  %v8796_v49 = vld [vmem:[%s10996_s2 + $0x8] sm:$0xff]  }
0x1883   :  { %v4391_v6 = vadd.f32 %v4382_v1, %v4320_v30  ;;  %v8799_v4 = vld [vmem:[%s10996_s2 + $0x20] sm:$0xff]   ;;  %v8800_v5 = vld [vmem:[%s10996_s2 + $0x28] sm:$0xff]  }
0x1884   :  { %v7410_v29 = vmul.f32 -1.442695, %v4384_v3  ;;  %v8798_v3 = vld [vmem:[%s10996_s2 + $0x18] sm:$0xff]  }
0x1885   :  { %v7411_v31 = vmul.f32 -1.442695, %v4391_v6  ;;  %v8801_v6 = vld [vmem:[%s10996_s2 + $0x30] sm:$0xff]  }
0x1886   :  { %9007 = vpow2.f32 %v7410_v29  ;;  %v8802_v29 = vld [vmem:[%s10996_s2 + $0x38] sm:$0xff]  }
0x1887   :  { %9009 = vpow2.f32 %v7411_v31  ;;  %v8803_v31 = vld [vmem:[#allocation5] sm:$0xff]  }
0x1890   :  { %v9008_v41 = vpop.eup %9007 }
0x1891   :  { %v4388_v38 = vadd.f32 1.0, %v9008_v41  ;;  %v9010_v11 = vpop.eup %9009  ;;  %v8804_v41 = vld [vmem:[#allocation5 + $0x8] sm:$0xff]  }
0x1892   :  { %v4395_v43 = vadd.f32 1.0, %v9010_v11  ;;  %v8806_v11 = vld [vmem:[#allocation5 + $0x18] sm:$0xff]  }
0x1893   :  { %9011 = vrcp.f32 %v4388_v38  ;;  %v8805_v38 = vld [vmem:[#allocation5 + $0x10] sm:$0xff]  }
0x1894   :  { %9013 = vrcp.f32 %v4395_v43 }
0x189d   :  { %v9012_v56 = vpop.eup %9011 }
0x189e   :  { %v4398_v17 = vmul.f32 %v9012_v56, %v4383_v15  ;;  %v9014_v60 = vpop.eup %9013 }
0x189f   :  { %v4401_v61 = vsub.f32 1.0, %v9014_v60  ;;  %v4403_v21 = vmul.f32 %v9014_v60, %v10309_v44  ;;  %v8816_v60 = vld [vmem:[#allocation8 + $0x80] ss:$12 sps:$4 sm:$0xff]  }
0x18a0   :  { %v4399_v59 = vadd.f32 %v4398_v17, %v4359_v13 }
0x18a2   :  { %9015 = vtanh.f32 %v4399_v59 }
0x18ac   :  { %v9016_v2 = vpop.eup %9015 }
0x18ad   :  { %v4402_v18 = vmul.f32 %v9016_v2, %v4401_v61  ;;  %v8817_v61 = vld [vmem:[#allocation8 + $0x98] ss:$12 sps:$4 sm:$0xff]   ;;  %v8818_v2 = vld [vmem:[#allocation8 + $0xb0] ss:$12 sps:$4 sm:$0xff]  }
0x18af   :  { %v10477_v22 = vadd.f32 %v4403_v21, %v4402_v18 }
0x18b1   :  { %4405 = vst [vmem:[#allocation12 + $0x4] sm:$0x1] %v10477_v22  ;;  %v4407_v19 = vpack.c.bf16 %v10477_v22, %v10477_v22 }
0x18b3   :  { %4633 = vmatmul.mubr.bf16.vlgmr.msra.gmra.mrb[64].mxu0 %v4407_v19  ;;  %4674 = vmatmul.mubr.bf16.vlgmr.msra.gmra.mrb[64].mxu1 %v4407_v19 }
0x18b4   :  { %8242 = vmatprep.mubr.msk.bf16.mxu0 %vm9279_vm0, %v11041_v57  ;;  %8262 = vmatprep.mubr.msk.bf16.mxu1 %vm9279_vm0, %v11041_v57 }
0x18b5   :  { %8227 = vmatpush3.bf16.msra.mxu0 %v8795_v52  ;;  %8247 = vmatpush3.bf16.msra.mxu1 %v8803_v31  ;;  %v10565_v52 = vld [vmem:[#allocation7 + $0xc] ss:$16 sps:$4 sm:$0xff]   ;;  %v10603_v31 = vld [vmem:[#allocation7 + $0x60] ss:$16 sps:$4 sm:$0xff]  }
0x18b6   :  { %8228 = vmatprep.subr.bf16.mxu0 %v11041_v57  ;;  %8248 = vmatprep.subr.bf16.mxu1 %v11041_v57 }
0x18b9   :  { %8229 = vmatpush3.bf16.msra.mxu0 %v8796_v49  ;;  %8249 = vmatpush3.bf16.msra.mxu1 %v8804_v41  ;;  %v10567_v49 = vld [vmem:[#allocation7] ss:$16 sps:$4 sm:$0xff]   ;;  %v10605_v41 = vld [vmem:[#allocation7 + $0x68] ss:$16 sps:$4 sm:$0xff]  }
0x18ba   :  { %8230 = vmatprep.subr.bf16.mxu0 %v11041_v57  ;;  %8250 = vmatprep.subr.bf16.mxu1 %v11041_v57 }
0x18bd   :  { %8231 = vmatpush3.bf16.msra.mxu0 %v8797_v53  ;;  %8251 = vmatpush3.bf16.msra.mxu1 %v8805_v38  ;;  %v10569_v53 = vld [vmem:[#allocation7 + $0x8] ss:$16 sps:$4 sm:$0xff]   ;;  %v10611_v38 = vld [vmem:[#allocation7 + $0x84] ss:$16 sps:$4 sm:$0xff]  }
0x18be   :  { %8232 = vmatprep.subr.bf16.mxu0 %v11041_v57  ;;  %8252 = vmatprep.subr.bf16.mxu1 %v11041_v57 }
0x18c1   :  { %8233 = vmatpush3.bf16.msra.mxu0 %v8798_v3  ;;  %8253 = vmatpush3.bf16.msra.mxu1 %v8806_v11  ;;  %v10589_v3 = vld [vmem:[#allocation7 + $0x4c] ss:$16 sps:$4 sm:$0xff]  }
0x18c2   :  { %8234 = vmatprep.subr.bf16.mxu0 %v11041_v57  ;;  %8254 = vmatprep.subr.bf16.mxu1 %v11041_v57  ;;  %v10613_v11 = vld [vmem:[#allocation7 + $0x8c] ss:$16 sps:$4 sm:$0xff]  }
0x18c5   :  { %8235 = vmatpush3.bf16.msra.mxu0 %v8799_v4  ;;  %8255 = vmatpush3.bf16.msra.mxu1 %v8807_v40  ;;  %v10591_v4 = vld [vmem:[#allocation7 + $0x40] ss:$16 sps:$4 sm:$0xff]  }
0x18c6   :  { %8236 = vmatprep.subr.bf16.mxu0 %v11041_v57  ;;  %8256 = vmatprep.subr.bf16.mxu1 %v11041_v57  ;;  %v10615_v40 = vld [vmem:[#allocation7 + $0x80] ss:$16 sps:$4 sm:$0xff]  }
0x18c9   :  { %8237 = vmatpush3.bf16.msra.mxu0 %v8800_v5  ;;  %8257 = vmatpush3.bf16.msra.mxu1 %v8808_v42  ;;  %v10593_v5 = vld [vmem:[#allocation7 + $0x48] ss:$16 sps:$4 sm:$0xff]  }
0x18ca   :  { %8238 = vmatprep.subr.bf16.mxu0 %v11041_v57  ;;  %8258 = vmatprep.subr.bf16.mxu1 %v11041_v57  ;;  %v10617_v42 = vld [vmem:[#allocation7 + $0x88] ss:$16 sps:$4 sm:$0xff]  }
0x18cd   :  { %8239 = vmatpush3.bf16.msra.mxu0 %v8801_v6  ;;  %v10599_v6 = vld [vmem:[#allocation7 + $0x64] ss:$16 sps:$4 sm:$0xff]  }
0x18ce   :  { %8240 = vmatprep.subr.bf16.mxu0 %v11041_v57 }
0x18d1   :  { %8241 = vmatpush3.bf16.msra.mxu0 %v8802_v29  ;;  %v10601_v29 = vld [vmem:[#allocation7 + $0x6c] ss:$16 sps:$4 sm:$0xff]  }
0x18d2   :  { %5101 = vmatprep.subr.bf16.mxu0 %v10369_v0  ;;  %v8809_v0 = vld [vmem:[#allocation5 + $0x30] sm:$0xff]  }
0x18d3   :  { %8259 = vmatpush3.bf16.msra.mxu1 %v8809_v0  ;;  %v10621_v0 = vld [vmem:[#allocation7 + $0xa4] ss:$16 sps:$4 sm:$0xff]  }
0x18d4   :  { %8260 = vmatprep.subr.bf16.mxu1 %v11041_v57 }
0x1986   :  { %v4634_v7 = vpop.f32.mrb[64].mxu0  ;;  %v10486_v23 = vpop.f32.mrb[64].mxu1 }
0x1987   :  { %v4683_v25 = vrot.slane %v4634_v7, 3  ;;  %v10488_v44 = vpop.f32.mrb[65].mxu0  ;;  %v10490_v26 = vpop.f32.mrb[65].mxu1 }
0x1988   :  { %v4638_v28 = vpop.f32.mrb[66].mxu0  ;;  %v4679_v46 = vpop.f32.mrb[66].mxu1 }
0x1989   :  { %v4639_v48 = vpop.f32.mrb[67].mxu0  ;;  %v4680_v51 = vpop.f32.mrb[67].mxu1  ;;  %v4685_v62 = vadd.f32 %v4683_v25, %v9492_v34 }
0x198b   :  { %v4687_v45 = vsel %vm4686_vm6, %v4685_v62, -inf }
0x198c   :  { %4688 = vmax.xlane.f32.xlu0 %v4687_v45  ;;  %v10563_v45 = vld [vmem:[#allocation7 + $0x4] ss:$16 sps:$4 sm:$0xff]  }
0x1a19   :  { %v4689_v63 = vpop.xlane.xlu0 %4688 }
0x1a1a   :  { %v4690_v1 = vsub.f32 %v4685_v62, %v4689_v63  ;;  %v10575_v63 = vld [vmem:[#allocation7 + $0x24] ss:$16 sps:$4 sm:$0xff]  }
0x1a1c   :  { %v4691_v30 = vmul.f32 1.442695, %v4690_v1  ;;  %v10577_v1 = vld [vmem:[#allocation7 + $0x2c] ss:$16 sps:$4 sm:$0xff]  }
0x1a1e   :  { %9017 = vpow2.f32 %v4691_v30  ;;  %v10579_v30 = vld [vmem:[#allocation7 + $0x20] ss:$16 sps:$4 sm:$0xff]  }
0x1a28   :  { %v9018_v54 = vpop.eup %9017 }
0x1a29   :  { %v4693_v39 = vsel %vm4686_vm6, %v9018_v54, 0.0 }
0x1a2a   :  { %4694 = vadd.xlane.f32.xlu1 %v4693_v39  ;;  %v10587_v39 = vld [vmem:[#allocation7 + $0x44] ss:$16 sps:$4 sm:$0xff]  }
0x1ab7   :  { %v4695_v43 = vpop.xlane.xlu1 %4694 }
0x1ab8   :  { %9019 = vrcp.f32 %v4695_v43  ;;  %v10623_v43 = vld [vmem:[#allocation7 + $0xac] ss:$16 sps:$4 sm:$0xff]  }
0x1ac2   :  { %v9020_v15 = vpop.eup %9019 }
0x1ac3   :  { %v4697_v56 = vmul.f32 %v9020_v15, %v9018_v54  ;;  %v10581_v54 = vld [vmem:[#allocation7 + $0x28] ss:$16 sps:$4 sm:$0xff]   ;;  %v10627_v15 = vld [vmem:[#allocation7 + $0xa0] ss:$16 sps:$4 sm:$0xff]  }
0x1ac5   :  { %v4698_v13 = vpack.c.bf16 %v4697_v56, %v4697_v56  ;;  %5224 = vst [vmem:[#allocation14] sm:$0x20] %v4697_v56  ;;  %v10629_v56 = vld [vmem:[#allocation7 + $0xa8] ss:$16 sps:$4 sm:$0xff]  }
0x1ac7   :  { %v4716_v17 = vshrl.u32 %v4698_v13, 16  ;;  %v10633_v13 = vld [vmem:[#allocation7 + $0xc4] ss:$16 sps:$4 sm:$0xff]  }
0x1ac9   :  { %v4718_v59 = vrot.slane %v4716_v17, 2  ;;  %v10635_v17 = vld [vmem:[#allocation7 + $0xcc] ss:$16 sps:$4 sm:$0xff]  }
0x1acb   :  { %8243 = vmatmul.mubr.bf16.vlgmr.msra.gmra.mrb[68].mxu0 %v4718_v59  ;;  %v10639_v59 = vld [vmem:[#allocation7 + $0xc0] ss:$16 sps:$4 sm:$0xff]  }
0x1acc   :  { %5102 = vmatpush1.bf16.msra.mxu0 %v10367_v20  ;;  %5133 = vmatprep.mubr.bf16.mxu0 %v11042_v36  ;;  %v11058_v20 = vld [vmem:[#allocation23_spill] sm:$0xff] }
0x1acd   :  { %5103 = vmatprep.subr.bf16.mxu0 %v10371_v14  ;;  %v11059_v14 = vld [vmem:[#allocation24_spill] sm:$0xff] }
0x1ad0   :  { %5104 = vmatpush1.bf16.msra.mxu0 %v10375_v32  ;;  %v8810_v32 = vld [vmem:[#allocation5 + $0x38] sm:$0xff]  }
0x1ad1   :  { %5105 = vmatprep.subr.bf16.mxu0 %v10378_v12  ;;  %8261 = vmatpush3.bf16.msra.mxu1 %v8810_v32  ;;  %v10647_v32 = vld [vmem:[#allocation7 + $0xec] ss:$16 sps:$4 sm:$0xff]  }
0x1ad2   :  { %8266 = vmatprep.subr.bf16.mxu1 %v11041_v57 }
0x1ad4   :  { %5106 = vmatpush1.bf16.msra.mxu0 %v10381_v16  ;;  %v8811_v16 = vld [vmem:[#allocation8 + $0x8] ss:$12 sps:$4 sm:$0xff]  }
0x1ad5   :  { %5107 = vmatprep.subr.bf16.mxu0 %v10384_v9 }
0x1ad8   :  { %5108 = vmatpush1.bf16.msra.mxu0 %v10387_v10 }
0x1ad9   :  { %5109 = vmatprep.subr.bf16.mxu0 %v10390_v58 }
0x1adc   :  { %5110 = vmatpush1.bf16.msra.mxu0 %v10393_v35 }
0x1add   :  { %5111 = vmatprep.subr.bf16.mxu0 %v10396_v55  ;;  %v8812_v55 = vld [vmem:[#allocation8 + $0x20] ss:$12 sps:$4 sm:$0xff]  }
0x1ae0   :  { %5112 = vmatpush1.bf16.msra.mxu0 %v10399_v8  ;;  %v8813_v8 = vld [vmem:[#allocation8 + $0x38] ss:$12 sps:$4 sm:$0xff]  }
0x1ae1   :  { %5113 = vmatprep.subr.bf16.mxu0 %v11058_v20  ;;  %v10641_v20 = vld [vmem:[#allocation7 + $0xc8] ss:$16 sps:$4 sm:$0xff]  }
0x1ae4   :  { %5114 = vmatpush1.bf16.msra.mxu0 %v11059_v14  ;;  %v10645_v14 = vld [vmem:[#allocation7 + $0xe4] ss:$16 sps:$4 sm:$0xff]  }
0x1ae5   :  { %5115 = vmatprep.subr.bf16.mxu0 %v10417_v50  ;;  %v8814_v50 = vld [vmem:[#allocation8 + $0x50] ss:$12 sps:$4 sm:$0xff]  }
0x1ae8   :  { %5116 = vmatpush1.bf16.msra.mxu0 %v10420_v33  ;;  %v8815_v33 = vld [vmem:[#allocation8 + $0x68] ss:$12 sps:$4 sm:$0xff]  }
0x1ae9   :  { %5418 = vmatprep.subr.bf16.mxu0 %v10563_v45 }
0x1b9e   :  { %v4802_v12 = vpop.f32.mrb[68].mxu0 }
0x1b9f   :  { %v4808_v9 = vpack.c.bf16 %v4802_v12, %v4802_v12  ;;  %v8244_v10 = vpop.f32.mrb[69].mxu0  ;;  %v10651_v12 = vld [vmem:[#allocation7 + $0xe0] ss:$16 sps:$4 sm:$0xff]  }
0x1ba0   :  { %v4805_v58 = vpop.f32.mrb[70].mxu0  ;;  %v4951_v10 = vld [vmem:[%s11005_s11] sm:$0x7] }
0x1ba1   :  { %v8245_v35 = vpop.f32.mrb[71].mxu0  ;;  %8263 = vmatmul.mubr.bf16.vlgmr.msra.gmra.mrb[68].mxu1 %v4808_v9  ;;  %v5182_v9 = vld [vmem:[%s11003_s9] sm:$0x7] }
0x1ba2   :  { %8267 = vmatpush3.bf16.msra.mxu1 %v8811_v16  ;;  %8282 = vmatprep.mubr.msk.bf16.mxu1 %vm9279_vm0, %v11041_v57  ;;  %v10653_v16 = vld [vmem:[#allocation7 + $0xe8] ss:$16 sps:$4 sm:$0xff]   ;;  %v5187_v58 = vrot.slane %v5182_v9, %v11056_v27  ;;  %v5089_v35 = vrot.slane %v4951_v10, %v11056_v27 }
0x1ba3   :  { %8268 = vmatprep.subr.bf16.mxu1 %v11041_v57  ;;  %11060 = vst [vmem:[#allocation25_spill] sm:$0xff] %v10653_v16 }
0x1ba6   :  { %8269 = vmatpush3.bf16.msra.mxu1 %v8812_v55  ;;  %v5191_v55 = vrot.slane %v5182_v9, %v11057_v47 }
0x1ba7   :  { %8270 = vmatprep.subr.bf16.mxu1 %v11041_v57 }
0x1baa   :  { %8271 = vmatpush3.bf16.msra.mxu1 %v8813_v8  ;;  %v5093_v8 = vrot.slane %v4951_v10, %v11057_v47 }
0x1bab   :  { %8272 = vmatprep.subr.bf16.mxu1 %v11041_v57 }
0x1bae   :  { %8273 = vmatpush3.bf16.msra.mxu1 %v8814_v50 }
0x1baf   :  { %8274 = vmatprep.subr.bf16.mxu1 %v11041_v57 }
0x1bb2   :  { %8275 = vmatpush3.bf16.msra.mxu1 %v8815_v33 }
0x1bb3   :  { %8276 = vmatprep.subr.bf16.mxu1 %v11041_v57 }
0x1bb6   :  { %8277 = vmatpush3.bf16.msra.mxu1 %v8816_v60  ;;  %v5199_v60 = vadd.f32 %v5187_v58, %v10488_v44  ;;  %v5195_v58 = vrot.slane %v5182_v9, %v9733_v37 }
0x1bb7   :  { %8278 = vmatprep.subr.bf16.mxu1 %v11041_v57 }
0x1bba   :  { %8279 = vmatpush3.bf16.msra.mxu1 %v8817_v61 }
0x1bbb   :  { %8280 = vmatprep.subr.bf16.mxu1 %v11041_v57 }
0x1bbe   :  { %8281 = vmatpush3.bf16.msra.mxu1 %v8818_v2 }
0x1bbf   :  { %5459 = vmatprep.subr.bf16.mxu1 %v10565_v52 }
0x1c74   :  { %v4907_v18 = vpop.f32.mrb[68].mxu1 }
0x1c75   :  { %v4914_v21 = vrot.slane %v4907_v18, 3  ;;  %v8264_v19 = vpop.f32.mrb[69].mxu1 }
0x1c76   :  { %v4910_v7 = vpop.f32.mrb[70].mxu1 }
0x1c77   :  { %v4916_v25 = vadd.f32 %v4914_v21, %v9695_v24  ;;  %v8265_v28 = vpop.f32.mrb[71].mxu1  ;;  %v5200_v21 = vadd.f32 %v5191_v55, %v10486_v23  ;;  %v5201_v55 = vadd.f32 %v5195_v58, %v10490_v26  ;;  %v8869_v58 = vld [vmem:[%s10996_s2 + $0x10] sm:$0xff]  }
0x1c79   :  { %v4917_v46 = vmax.f32 %v4916_v25, 0.0 }
0x1c7b   :  { %v4918_v48 = vpack.c.bf16 %v4917_v46, %v4917_v46 }
0x1c7d   :  { %v4953_v51 = vshrl.u32 %v4918_v48, 16 }
0x1c7f   :  { %v4955_v62 = vrot.slane %v4953_v51, 2 }
0x1c81   :  { %5134 = vmatmul.mubr.bf16.vlgmr.msra.gmra.mrb[72].mxu0 %v4955_v62  ;;  %8283 = vmatmul.mubr.bf16.vlgmr.msra.gmra.mrb[72].mxu1 %v4955_v62 }
0x1c82   :  { %5450 = vmatprep.mubr.bf16.mxu0 %v11042_v36  ;;  %5491 = vmatprep.mubr.bf16.mxu1 %v11042_v36 }
0x1c83   :  { %5419 = vmatpush1.bf16.msra.mxu0 %v10567_v49  ;;  %5460 = vmatpush1.bf16.msra.mxu1 %v10569_v53 }
0x1c84   :  { %5420 = vmatprep.subr.bf16.mxu0 %v10575_v63  ;;  %5461 = vmatprep.subr.bf16.mxu1 %v10577_v1 }
0x1c87   :  { %5421 = vmatpush1.bf16.msra.mxu0 %v10579_v30  ;;  %5462 = vmatpush1.bf16.msra.mxu1 %v10581_v54 }
0x1c88   :  { %5422 = vmatprep.subr.bf16.mxu0 %v10587_v39  ;;  %5463 = vmatprep.subr.bf16.mxu1 %v10589_v3 }
0x1c8b   :  { %5423 = vmatpush1.bf16.msra.mxu0 %v10591_v4  ;;  %5464 = vmatpush1.bf16.msra.mxu1 %v10593_v5 }
0x1c8c   :  { %5424 = vmatprep.subr.bf16.mxu0 %v10599_v6  ;;  %5465 = vmatprep.subr.bf16.mxu1 %v10601_v29 }
0x1c8f   :  { %5425 = vmatpush1.bf16.msra.mxu0 %v10603_v31  ;;  %5466 = vmatpush1.bf16.msra.mxu1 %v10605_v41 }
0x1c90   :  { %5426 = vmatprep.subr.bf16.mxu0 %v10611_v38  ;;  %5467 = vmatprep.subr.bf16.mxu1 %v10613_v11 }
0x1c93   :  { %5427 = vmatpush1.bf16.msra.mxu0 %v10615_v40  ;;  %5468 = vmatpush1.bf16.msra.mxu1 %v10617_v42 }
0x1c94   :  { %5428 = vmatprep.subr.bf16.mxu0 %v10621_v0  ;;  %5469 = vmatprep.subr.bf16.mxu1 %v10623_v43 }
0x1c97   :  { %5429 = vmatpush1.bf16.msra.mxu0 %v10627_v15  ;;  %5470 = vmatpush1.bf16.msra.mxu1 %v10629_v56 }
0x1c98   :  { %5430 = vmatprep.subr.bf16.mxu0 %v10633_v13  ;;  %5471 = vmatprep.subr.bf16.mxu1 %v10635_v17 }
0x1c9b   :  { %5431 = vmatpush1.bf16.msra.mxu0 %v10639_v59  ;;  %5472 = vmatpush1.bf16.msra.mxu1 %v10641_v20 }
0x1c9c   :  { %5432 = vmatprep.subr.bf16.mxu0 %v10645_v14  ;;  %5473 = vmatprep.subr.bf16.mxu1 %v10647_v32 }
0x1c9f   :  { %5433 = vmatpush1.bf16.msra.mxu0 %v10651_v12  ;;  %5474 = vmatpush1.bf16.msra.mxu1 %v10653_v16 }
0x1ca0   :  { %8286 = vmatprep.subr.bf16.mxu0 %v11041_v57  ;;  %8306 = vmatprep.subr.bf16.mxu1 %v11041_v57 }
0x1d54   :  { %v5135_v50 = vpop.f32.mrb[72].mxu0  ;;  %v5176_v33 = vpop.f32.mrb[72].mxu1 }
0x1d55   :  { %v5136_v61 = vadd.f32 %v5135_v50, %v5089_v35  ;;  %v5137_v2 = vpop.f32.mrb[73].mxu0  ;;  %v8284_v18 = vpop.f32.mrb[73].mxu1  ;;  %v5097_v35 = vrot.slane %v4951_v10, %v9733_v37 }
0x1d56   :  { %v5138_v19 = vadd.f32 %v5137_v2, %v5093_v8  ;;  %v5139_v7 = vpop.f32.mrb[74].mxu0  ;;  %v5179_v25 = vpop.f32.mrb[74].mxu1 }
0x1d57   :  { %v5202_v28 = vadd.f32 %v5199_v60, %v5136_v61  ;;  %v5140_v46 = vpop.f32.mrb[75].mxu0  ;;  %v8285_v48 = vpop.f32.mrb[75].mxu1  ;;  %v5177_v50 = vadd.f32 %v5176_v33, %v5097_v35  ;;  %v8870_v35 = vld [vmem:[%s10996_s2 + $0x18] sm:$0xff]  }
0x1d58   :  { %v5209_v51 = vadd.f32 %v5200_v21, %v5138_v19 }
0x1d59   :  { %v7484_v62 = vmul.f32 -1.442695, %v5202_v28 }
0x1d5a   :  { %v7485_v27 = vmul.f32 -1.442695, %v5209_v51 }
0x1d5b   :  { %9021 = vpow2.f32 %v7484_v62  ;;  %v8867_v62 = vld [vmem:[%s10996_s2] sm:$0xff]  }
0x1d5c   :  { %9023 = vpow2.f32 %v7485_v27 }
0x1d65   :  { %v9022_v47 = vpop.eup %9021 }
0x1d66   :  { %v5206_v16 = vadd.f32 1.0, %v9022_v47  ;;  %v9024_v44 = vpop.eup %9023 }
0x1d67   :  { %v5213_v23 = vadd.f32 1.0, %v9024_v44  ;;  %v8868_v44 = vld [vmem:[%s10996_s2 + $0x8] sm:$0xff]  }
0x1d68   :  { %9025 = vrcp.f32 %v5206_v16 }
0x1d69   :  { %9027 = vrcp.f32 %v5213_v23 }
0x1d72   :  { %v9026_v8 = vpop.eup %9025 }
0x1d73   :  { %v5216_v60 = vmul.f32 %v9026_v8, %v5201_v55  ;;  %v9028_v2 = vpop.eup %9027 }
0x1d74   :  { %v5219_v18 = vsub.f32 1.0, %v9028_v2  ;;  %v5221_v47 = vmul.f32 %v9028_v2, %v10477_v22  ;;  %v8872_v2 = vld [vmem:[%s10996_s2 + $0x28] sm:$0xff]  }
0x1d75   :  { %v5217_v61 = vadd.f32 %v5216_v60, %v5177_v50 }
0x1d77   :  { %9029 = vtanh.f32 %v5217_v61  ;;  %v8871_v61 = vld [vmem:[%s10996_s2 + $0x20] sm:$0xff]  }
0x1d81   :  { %v9030_v27 = vpop.eup %9029 }
0x1d82   :  { %v5220_v21 = vmul.f32 %v9030_v27, %v5219_v18  ;;  %v8873_v18 = vld [vmem:[%s10996_s2 + $0x30] sm:$0xff]   ;;  %v8874_v27 = vld [vmem:[%s10996_s2 + $0x38] sm:$0xff]  }
0x1d84   :  { %v10677_v16 = vadd.f32 %v5221_v47, %v5220_v21  ;;  %v8875_v21 = vld [vmem:[#allocation5] sm:$0xff]   ;;  %v8876_v47 = vld [vmem:[#allocation5 + $0x8] sm:$0xff]  }
0x1d86   :  { %5223 = vst [vmem:[#allocation12 + $0x5] sm:$0x1] %v10677_v16  ;;  %v5225_v9 = vpack.c.bf16 %v10677_v16, %v10677_v16 }
0x1d88   :  { %5451 = vmatmul.mubr.bf16.vlgmr.msra.gmra.mrb[76].mxu0 %v5225_v9  ;;  %5492 = vmatmul.mubr.bf16.vlgmr.msra.gmra.mrb[76].mxu1 %v5225_v9  ;;  %v8877_v9 = vld [vmem:[#allocation5 + $0x10] sm:$0xff]  }
0x1d89   :  { %8302 = vmatprep.mubr.msk.bf16.mxu0 %vm9279_vm0, %v11041_v57  ;;  %8322 = vmatprep.mubr.msk.bf16.mxu1 %vm9279_vm0, %v11041_v57 }
0x1d8a   :  { %8287 = vmatpush3.bf16.msra.mxu0 %v8867_v62  ;;  %8307 = vmatpush3.bf16.msra.mxu1 %v8875_v21  ;;  %v10767_v21 = vld [vmem:[#allocation8 + $0x78] ss:$12 sps:$4 sm:$0xff]  }
0x1d8b   :  { %8288 = vmatprep.subr.bf16.mxu0 %v11041_v57  ;;  %8308 = vmatprep.subr.bf16.mxu1 %v11041_v57 }
0x1d8e   :  { %8289 = vmatpush3.bf16.msra.mxu0 %v8868_v44  ;;  %8309 = vmatpush3.bf16.msra.mxu1 %v8876_v47  ;;  %v8882_v44 = vld [vmem:[#allocation5 + $0x38] sm:$0xff]  }
0x1d8f   :  { %8290 = vmatprep.subr.bf16.mxu0 %v11041_v57  ;;  %8310 = vmatprep.subr.bf16.mxu1 %v11041_v57 }
0x1d92   :  { %8291 = vmatpush3.bf16.msra.mxu0 %v8869_v58  ;;  %8311 = vmatpush3.bf16.msra.mxu1 %v8877_v9  ;;  %v10735_v58 = vld [vmem:[#allocation8] ss:$12 sps:$4 sm:$0xff]   ;;  %v8886_v9 = vld [vmem:[#allocation8 + $0x8] ss:$12 sps:$4 sm:$0xff]  }
0x1d93   :  { %8292 = vmatprep.subr.bf16.mxu0 %v11041_v57  ;;  %8312 = vmatprep.subr.bf16.mxu1 %v11041_v57 }
0x1d96   :  { %8293 = vmatpush3.bf16.msra.mxu0 %v8870_v35  ;;  %v10737_v35 = vld [vmem:[#allocation8 + $0x4] ss:$12 sps:$4 sm:$0xff]  }
0x1d97   :  { %8294 = vmatprep.subr.bf16.mxu0 %v11041_v57 }
0x1d9a   :  { %8295 = vmatpush3.bf16.msra.mxu0 %v8871_v61  ;;  %v10755_v61 = vld [vmem:[#allocation8 + $0x48] ss:$12 sps:$4 sm:$0xff]  }
0x1d9b   :  { %8296 = vmatprep.subr.bf16.mxu0 %v11041_v57 }
0x1d9e   :  { %8297 = vmatpush3.bf16.msra.mxu0 %v8872_v2  ;;  %v10758_v2 = vld [vmem:[#allocation8 + $0x64] ss:$12 sps:$4 sm:$0xff]  }
0x1d9f   :  { %8298 = vmatprep.subr.bf16.mxu0 %v11041_v57 }
0x1da2   :  { %8299 = vmatpush3.bf16.msra.mxu0 %v8873_v18  ;;  %v10761_v18 = vld [vmem:[#allocation8 + $0x60] ss:$12 sps:$4 sm:$0xff]  }
0x1da3   :  { %8300 = vmatprep.subr.bf16.mxu0 %v11041_v57 }
0x1da6   :  { %8301 = vmatpush3.bf16.msra.mxu0 %v8874_v27  ;;  %v10764_v27 = vld [vmem:[#allocation8 + $0x7c] ss:$12 sps:$4 sm:$0xff]  }
0x1da7   :  { %5915 = vmatprep.subr.bf16.mxu0 %v10737_v35 }
0x1e5b   :  { %v5452_v26 = vpop.f32.mrb[76].mxu0  ;;  %v10686_v10 = vpop.f32.mrb[76].mxu1 }
0x1e5c   :  { %v5501_v33 = vrot.slane %v5452_v26, 2  ;;  %v10688_v22 = vpop.f32.mrb[77].mxu0  ;;  %v10690_v19 = vpop.f32.mrb[77].mxu1  ;;  %v8878_v26 = vld [vmem:[#allocation5 + $0x18] sm:$0xff]  }
0x1e5d   :  { %v5456_v7 = vpop.f32.mrb[78].mxu0  ;;  %v5497_v25 = vpop.f32.mrb[78].mxu1  ;;  %8313 = vmatpush3.bf16.msra.mxu1 %v8878_v26 }
0x1e5e   :  { %v5457_v28 = vpop.f32.mrb[79].mxu0  ;;  %v5498_v46 = vpop.f32.mrb[79].mxu1  ;;  %v5503_v48 = vadd.f32 %v5501_v33, %v9492_v34  ;;  %v8879_v33 = vld [vmem:[#allocation5 + $0x20] sm:$0xff]   ;;  %8314 = vmatprep.subr.bf16.mxu1 %v11041_v57  ;;  %v8880_v7 = vld [vmem:[#allocation5 + $0x28] sm:$0xff]   ;;  %v8881_v25 = vld [vmem:[#allocation5 + $0x30] sm:$0xff]  }
0x1e60   :  { %v5505_v51 = vsel %vm5504_vm7, %v5503_v48, -inf }
0x1e61   :  { %5506 = vmax.xlane.f32.xlu0 %v5505_v51  ;;  %8315 = vmatpush3.bf16.msra.mxu1 %v8879_v33 }
0x1e62   :  { %8316 = vmatprep.subr.bf16.mxu1 %v11041_v57 }
0x1e65   :  { %8317 = vmatpush3.bf16.msra.mxu1 %v8880_v7 }
0x1e66   :  { %8318 = vmatprep.subr.bf16.mxu1 %v11041_v57 }
0x1e69   :  { %8319 = vmatpush3.bf16.msra.mxu1 %v8881_v25 }
0x1e6a   :  { %8320 = vmatprep.subr.bf16.mxu1 %v11041_v57 }
0x1e6d   :  { %8321 = vmatpush3.bf16.msra.mxu1 %v8882_v44  ;;  %v10778_v44 = vld [vmem:[#allocation8 + $0x94] ss:$12 sps:$4 sm:$0xff]  }
0x1e6e   :  { %8326 = vmatprep.subr.bf16.mxu1 %v11041_v57  ;;  %11061 = vst [vmem:[#allocation22_spill] sm:$0xff] %v10778_v44 }
0x1eee   :  { %v5507_v23 = vpop.xlane.xlu0 %5506 }
0x1eef   :  { %v5508_v55 = vsub.f32 %v5503_v48, %v5507_v23  ;;  %v10739_v23 = vld [vmem:[#allocation8 + $0x1c] ss:$12 sps:$4 sm:$0xff]  }
0x1ef1   :  { %v5509_v8 = vmul.f32 1.442695, %v5508_v55  ;;  %v10743_v55 = vld [vmem:[#allocation8 + $0x18] ss:$12 sps:$4 sm:$0xff]  }
0x1ef3   :  { %9031 = vpow2.f32 %v5509_v8  ;;  %v10746_v8 = vld [vmem:[#allocation8 + $0x34] ss:$12 sps:$4 sm:$0xff]  }
0x1efd   :  { %v9032_v50 = vpop.eup %9031 }
0x1efe   :  { %v5511_v60 = vsel %vm5504_vm7, %v9032_v50, 0.0 }
0x1eff   :  { %5512 = vadd.xlane.f32.xlu1 %v5511_v60  ;;  %v10752_v60 = vld [vmem:[#allocation8 + $0x4c] ss:$12 sps:$4 sm:$0xff]  }
0x1f8c   :  { %v5513_v28 = vpop.xlane.xlu1 %5512 }
0x1f8d   :  { %9033 = vrcp.f32 %v5513_v28  ;;  %v8890_v28 = vld [vmem:[#allocation8 + $0x20] ss:$12 sps:$4 sm:$0xff]  }
0x1f97   :  { %v9034_v46 = vpop.eup %9033 }
0x1f98   :  { %v5515_v48 = vmul.f32 %v9034_v46, %v9032_v50  ;;  %v10749_v50 = vld [vmem:[#allocation8 + $0x30] ss:$12 sps:$4 sm:$0xff]   ;;  %v8894_v46 = vld [vmem:[#allocation8 + $0x38] ss:$12 sps:$4 sm:$0xff]  }
0x1f9a   :  { %v5516_v51 = vpack.c.bf16 %v5515_v48, %v5515_v48  ;;  %6038 = vst [vmem:[#allocation14] sm:$0x40] %v5515_v48  ;;  %v8898_v48 = vld [vmem:[#allocation8 + $0x50] ss:$12 sps:$4 sm:$0xff]  }
0x1f9c   :  { %v5534_v62 = vrot.slane %v5516_v51, 3  ;;  %v8902_v51 = vld [vmem:[#allocation8 + $0x68] ss:$12 sps:$4 sm:$0xff]  }
0x1f9e   :  { %8303 = vmatmul.mubr.bf16.vlgmr.msra.gmra.mrb[80].mxu0 %v5534_v62  ;;  %v8906_v62 = vld [vmem:[#allocation8 + $0x80] ss:$12 sps:$4 sm:$0xff]  }
0x1f9f   :  { %5947 = vmatprep.mubr.bf16.mxu0 %v11042_v36  ;;  %5916 = vmatpush1.bf16.msra.mxu0 %v10735_v58 }
0x1fa0   :  { %5917 = vmatprep.subr.bf16.mxu0 %v10739_v23 }
0x1fa3   :  { %5918 = vmatpush1.bf16.msra.mxu0 %v10743_v55 }
0x1fa4   :  { %5919 = vmatprep.subr.bf16.mxu0 %v10746_v8 }
0x1fa7   :  { %5920 = vmatpush1.bf16.msra.mxu0 %v10749_v50 }
0x1fa8   :  { %5921 = vmatprep.subr.bf16.mxu0 %v10752_v60 }
0x1fab   :  { %5922 = vmatpush1.bf16.msra.mxu0 %v10755_v61 }
0x1fac   :  { %5923 = vmatprep.subr.bf16.mxu0 %v10758_v2 }
0x1faf   :  { %5924 = vmatpush1.bf16.msra.mxu0 %v10761_v18 }
0x1fb0   :  { %5925 = vmatprep.subr.bf16.mxu0 %v10764_v27 }
0x1fb3   :  { %5926 = vmatpush1.bf16.msra.mxu0 %v10767_v21 }
0x1fb4   :  { %5927 = vmatprep.subr.bf16.mxu0 %v10778_v44 }
0x2071   :  { %v5618_v47 = vpop.f32.mrb[80].mxu0 }
0x2072   :  { %v5624_v26 = vpack.c.bf16 %v5618_v47, %v5618_v47  ;;  %v8304_v33 = vpop.f32.mrb[81].mxu0  ;;  %v10781_v47 = vld [vmem:[#allocation8 + $0x90] ss:$12 sps:$4 sm:$0xff]  }
0x2073   :  { %v5621_v7 = vpop.f32.mrb[82].mxu0  ;;  %11062 = vst [vmem:[#allocation23_spill] sm:$0xff] %v10781_v47  ;;  %5928 = vmatpush1.bf16.msra.mxu0 %v10781_v47  ;;  %v10788_v33 = vld [vmem:[#allocation8 + $0xa8] ss:$12 sps:$4 sm:$0xff]  }
0x2074   :  { %v8305_v25 = vpop.f32.mrb[83].mxu0  ;;  %8323 = vmatmul.mubr.bf16.vlgmr.msra.gmra.mrb[80].mxu1 %v5624_v26  ;;  %v10785_v26 = vld [vmem:[#allocation8 + $0xac] ss:$12 sps:$4 sm:$0xff]   ;;  %v8914_v7 = vld [vmem:[#allocation8 + $0xb0] ss:$12 sps:$4 sm:$0xff]  }
0x2075   :  { %8327 = vmatpush3.bf16.msra.mxu1 %v8886_v9  ;;  %8342 = vmatprep.mubr.msk.bf16.mxu1 %vm9279_vm0, %v11041_v57  ;;  %v8910_v9 = vld [vmem:[#allocation8 + $0x98] ss:$12 sps:$4 sm:$0xff]  }
0x2076   :  { %8328 = vmatprep.subr.bf16.mxu1 %v11041_v57  ;;  %5929 = vmatprep.subr.bf16.mxu0 %v10785_v26 }
0x2077   :  { %5930 = vmatpush1.bf16.msra.mxu0 %v10788_v33 }
0x2078   :  { %6232 = vmatprep.subr.bf16.mxu0 %v10563_v45  ;;  %v11063_v45 = vld [vmem:[#allocation25_spill] sm:$0xff] }
0x2079   :  { %8329 = vmatpush3.bf16.msra.mxu1 %v8890_v28 }
0x207a   :  { %8330 = vmatprep.subr.bf16.mxu1 %v11041_v57 }
0x207d   :  { %8331 = vmatpush3.bf16.msra.mxu1 %v8894_v46 }
0x207e   :  { %8332 = vmatprep.subr.bf16.mxu1 %v11041_v57 }
0x2081   :  { %8333 = vmatpush3.bf16.msra.mxu1 %v8898_v48 }
0x2082   :  { %8334 = vmatprep.subr.bf16.mxu1 %v11041_v57 }
0x2085   :  { %8335 = vmatpush3.bf16.msra.mxu1 %v8902_v51 }
0x2086   :  { %8336 = vmatprep.subr.bf16.mxu1 %v11041_v57 }
0x2089   :  { %8337 = vmatpush3.bf16.msra.mxu1 %v8906_v62 }
0x208a   :  { %8338 = vmatprep.subr.bf16.mxu1 %v11041_v57 }
0x208d   :  { %8339 = vmatpush3.bf16.msra.mxu1 %v8910_v9 }
0x208e   :  { %8340 = vmatprep.subr.bf16.mxu1 %v11041_v57 }
0x2091   :  { %8341 = vmatpush3.bf16.msra.mxu1 %v8914_v7 }
0x2092   :  { %6273 = vmatprep.subr.bf16.mxu1 %v10565_v52  ;;  %v5996_v52 = vld [vmem:[%s11003_s9] sm:$0x7] }
0x2147   :  { %v5723_v25 = vpop.f32.mrb[80].mxu1 }
0x2148   :  { %v5730_v28 = vrot.slane %v5723_v25, 2  ;;  %v8324_v46 = vpop.f32.mrb[81].mxu1 }
0x2149   :  { %v5726_v48 = vpop.f32.mrb[82].mxu1 }
0x214a   :  { %v5732_v51 = vadd.f32 %v5730_v28, %v9695_v24  ;;  %v8325_v62 = vpop.f32.mrb[83].mxu1 }
0x214c   :  { %v5733_v9 = vmax.f32 %v5732_v51, 0.0 }
0x214e   :  { %v5734_v47 = vpack.c.bf16 %v5733_v9, %v5733_v9 }
0x2150   :  { %v5769_v44 = vrot.slane %v5734_v47, 3 }
0x2152   :  { %5948 = vmatmul.mubr.bf16.vlgmr.msra.gmra.mrb[84].mxu0 %v5769_v44  ;;  %8343 = vmatmul.mubr.bf16.vlgmr.msra.gmra.mrb[84].mxu1 %v5769_v44 }
0x2153   :  { %6233 = vmatpush1.bf16.msra.mxu0 %v10567_v49  ;;  %6274 = vmatpush1.bf16.msra.mxu1 %v10569_v53  ;;  %v5767_v49 = vld [vmem:[%s11005_s11] sm:$0x7] }
0x2154   :  { %6234 = vmatprep.subr.bf16.mxu0 %v10575_v63  ;;  %6275 = vmatprep.subr.bf16.mxu1 %v10577_v1  ;;  %v11064_v53 = vld [vmem:[#allocation20_spill] sm:$0xff] }
0x2155   :  { %6264 = vmatprep.mubr.bf16.mxu0 %v11042_v36  ;;  %6305 = vmatprep.mubr.bf16.mxu1 %v11042_v36  ;;  %v6001_v63 = vrot.slane %v5996_v52, %v11064_v53  ;;  %v5903_v1 = vrot.slane %v5767_v49, %v11064_v53 }
0x2157   :  { %6235 = vmatpush1.bf16.msra.mxu0 %v10579_v30  ;;  %6276 = vmatpush1.bf16.msra.mxu1 %v10581_v54  ;;  %v11065_v30 = vld [vmem:[#allocation21_spill] sm:$0xff] }
0x2158   :  { %6236 = vmatprep.subr.bf16.mxu0 %v10587_v39  ;;  %6277 = vmatprep.subr.bf16.mxu1 %v10589_v3  ;;  %v6005_v54 = vrot.slane %v5996_v52, %v11065_v30  ;;  %v5907_v39 = vrot.slane %v5767_v49, %v11065_v30 }
0x215b   :  { %6237 = vmatpush1.bf16.msra.mxu0 %v10591_v4  ;;  %6278 = vmatpush1.bf16.msra.mxu1 %v10593_v5  ;;  %v6013_v5 = vadd.f32 %v6001_v63, %v10688_v22 }
0x215c   :  { %6238 = vmatprep.subr.bf16.mxu0 %v10599_v6  ;;  %6279 = vmatprep.subr.bf16.mxu1 %v10601_v29 }
0x215f   :  { %6239 = vmatpush1.bf16.msra.mxu0 %v10603_v31  ;;  %6280 = vmatpush1.bf16.msra.mxu1 %v10605_v41  ;;  %v6014_v41 = vadd.f32 %v6005_v54, %v10686_v10 }
0x2160   :  { %6240 = vmatprep.subr.bf16.mxu0 %v10611_v38  ;;  %6281 = vmatprep.subr.bf16.mxu1 %v10613_v11 }
0x2163   :  { %6241 = vmatpush1.bf16.msra.mxu0 %v10615_v40  ;;  %6282 = vmatpush1.bf16.msra.mxu1 %v10617_v42 }
0x2164   :  { %6242 = vmatprep.subr.bf16.mxu0 %v10621_v0  ;;  %6283 = vmatprep.subr.bf16.mxu1 %v10623_v43 }
0x2167   :  { %6243 = vmatpush1.bf16.msra.mxu0 %v10627_v15  ;;  %6284 = vmatpush1.bf16.msra.mxu1 %v10629_v56 }
0x2168   :  { %6244 = vmatprep.subr.bf16.mxu0 %v10633_v13  ;;  %6285 = vmatprep.subr.bf16.mxu1 %v10635_v17 }
0x216b   :  { %6245 = vmatpush1.bf16.msra.mxu0 %v10639_v59  ;;  %6286 = vmatpush1.bf16.msra.mxu1 %v10641_v20 }
0x216c   :  { %6246 = vmatprep.subr.bf16.mxu0 %v10645_v14  ;;  %6287 = vmatprep.subr.bf16.mxu1 %v10647_v32  ;;  %v6009_v14 = vrot.slane %v5996_v52, %v9733_v37  ;;  %v5911_v32 = vrot.slane %v5767_v49, %v9733_v37 }
0x216e   :  { %v6015_v10 = vadd.f32 %v6009_v14, %v10690_v19  ;;  %v8928_v14 = vld [vmem:[#allocation5 + $0x28] sm:$0xff]  }
0x216f   :  { %6247 = vmatpush1.bf16.msra.mxu0 %v10651_v12  ;;  %6288 = vmatpush1.bf16.msra.mxu1 %v11063_v45 }
0x2170   :  { %8346 = vmatprep.subr.bf16.mxu0 %v11041_v57  ;;  %8366 = vmatprep.subr.bf16.mxu1 %v11041_v57 }
0x2225   :  { %v5949_v3 = vpop.f32.mrb[84].mxu0  ;;  %v5990_v4 = vpop.f32.mrb[84].mxu1 }
0x2226   :  { %v5950_v6 = vadd.f32 %v5949_v3, %v5903_v1  ;;  %v5951_v29 = vpop.f32.mrb[85].mxu0  ;;  %v8344_v31 = vpop.f32.mrb[85].mxu1  ;;  %v5991_v44 = vadd.f32 %v5990_v4, %v5911_v32 }
0x2227   :  { %v5952_v38 = vadd.f32 %v5951_v29, %v5907_v39  ;;  %v5953_v11 = vpop.f32.mrb[86].mxu0  ;;  %v5993_v40 = vpop.f32.mrb[86].mxu1  ;;  %v8917_v29 = vld [vmem:[%s10996_s2 + $0x10] sm:$0xff]  }
0x2228   :  { %v6016_v42 = vadd.f32 %v6013_v5, %v5950_v6  ;;  %v5954_v0 = vpop.f32.mrb[87].mxu0  ;;  %v8345_v43 = vpop.f32.mrb[87].mxu1  ;;  %v8915_v5 = vld [vmem:[%s10996_s2] sm:$0xff]   ;;  %v8916_v6 = vld [vmem:[%s10996_s2 + $0x8] sm:$0xff]   ;;  %v8918_v40 = vld [vmem:[%s10996_s2 + $0x18] sm:$0xff]  }
0x2229   :  { %v6023_v15 = vadd.f32 %v6014_v41, %v5952_v38  ;;  %v8920_v0 = vld [vmem:[%s10996_s2 + $0x28] sm:$0xff]   ;;  %v8921_v43 = vld [vmem:[%s10996_s2 + $0x30] sm:$0xff]  }
0x222a   :  { %v7558_v56 = vmul.f32 -1.442695, %v6016_v42  ;;  %v8919_v42 = vld [vmem:[%s10996_s2 + $0x20] sm:$0xff]  }
0x222b   :  { %v7559_v13 = vmul.f32 -1.442695, %v6023_v15  ;;  %v8922_v15 = vld [vmem:[%s10996_s2 + $0x38] sm:$0xff]  }
0x222c   :  { %9035 = vpow2.f32 %v7558_v56  ;;  %v8923_v56 = vld [vmem:[#allocation5] sm:$0xff]  }
0x222d   :  { %9037 = vpow2.f32 %v7559_v13  ;;  %v8924_v13 = vld [vmem:[#allocation5 + $0x8] sm:$0xff]  }
0x2236   :  { %v9036_v17 = vpop.eup %9035 }
0x2237   :  { %v6020_v59 = vadd.f32 1.0, %v9036_v17  ;;  %v9038_v20 = vpop.eup %9037  ;;  %v8925_v17 = vld [vmem:[#allocation5 + $0x10] sm:$0xff]  }
0x2238   :  { %v6027_v12 = vadd.f32 1.0, %v9038_v20  ;;  %v8927_v20 = vld [vmem:[#allocation5 + $0x20] sm:$0xff]  }
0x2239   :  { %9039 = vrcp.f32 %v6020_v59  ;;  %v8926_v59 = vld [vmem:[#allocation5 + $0x18] sm:$0xff]  }
0x223a   :  { %9041 = vrcp.f32 %v6027_v12 }
0x2243   :  { %v9040_v22 = vpop.eup %9039 }
0x2244   :  { %v6030_v47 = vmul.f32 %v9040_v22, %v6015_v10  ;;  %v9042_v25 = vpop.eup %9041 }
0x2245   :  { %v6033_v28 = vsub.f32 1.0, %v9042_v25  ;;  %v6035_v51 = vmul.f32 %v9042_v25, %v10677_v16  ;;  %v8938_v25 = vld [vmem:[#allocation8 + $0xb0] ss:$12 sps:$4 sm:$0xff]  }
0x2246   :  { %v6031_v7 = vadd.f32 %v6030_v47, %v5991_v44 }
0x2248   :  { %9043 = vtanh.f32 %v6031_v7  ;;  %v8937_v7 = vld [vmem:[#allocation8 + $0x98] ss:$12 sps:$4 sm:$0xff]  }
0x2252   :  { %v9044_v46 = vpop.eup %9043 }
0x2253   :  { %v6034_v48 = vmul.f32 %v9044_v46, %v6033_v28 }
0x2255   :  { %v10845_v62 = vadd.f32 %v6035_v51, %v6034_v48 }
0x2257   :  { %6037 = vst [vmem:[#allocation12 + $0x6] sm:$0x1] %v10845_v62  ;;  %v6039_v9 = vpack.c.bf16 %v10845_v62, %v10845_v62 }
0x2259   :  { %6265 = vmatmul.mubr.bf16.vlgmr.msra.gmra.mrb[88].mxu0 %v6039_v9  ;;  %6306 = vmatmul.mubr.bf16.vlgmr.msra.gmra.mrb[88].mxu1 %v6039_v9 }
0x225a   :  { %8362 = vmatprep.mubr.msk.bf16.mxu0 %vm9279_vm0, %v11041_v57  ;;  %8382 = vmatprep.mubr.msk.bf16.mxu1 %vm9279_vm0, %v11041_v57 }
0x225b   :  { %8347 = vmatpush3.bf16.msra.mxu0 %v8915_v5  ;;  %8367 = vmatpush3.bf16.msra.mxu1 %v8923_v56  ;;  %v8943_v5 = vld [vmem:[#allocation10 + $0x20] sm:$0xff]  }
0x225c   :  { %8348 = vmatprep.subr.bf16.mxu0 %v11041_v57  ;;  %8368 = vmatprep.subr.bf16.mxu1 %v11041_v57 }
0x225f   :  { %8349 = vmatpush3.bf16.msra.mxu0 %v8916_v6  ;;  %8369 = vmatpush3.bf16.msra.mxu1 %v8924_v13  ;;  %v8944_v6 = vld [vmem:[#allocation10 + $0x28] sm:$0xff]  }
0x2260   :  { %8350 = vmatprep.subr.bf16.mxu0 %v11041_v57  ;;  %8370 = vmatprep.subr.bf16.mxu1 %v11041_v57 }
0x2263   :  { %8351 = vmatpush3.bf16.msra.mxu0 %v8917_v29  ;;  %8371 = vmatpush3.bf16.msra.mxu1 %v8925_v17  ;;  %v8945_v29 = vld [vmem:[#allocation10 + $0x30] sm:$0xff]  }
0x2264   :  { %8352 = vmatprep.subr.bf16.mxu0 %v11041_v57  ;;  %8372 = vmatprep.subr.bf16.mxu1 %v11041_v57 }
0x2267   :  { %8353 = vmatpush3.bf16.msra.mxu0 %v8918_v40  ;;  %8373 = vmatpush3.bf16.msra.mxu1 %v8926_v59 }
0x2268   :  { %8354 = vmatprep.subr.bf16.mxu0 %v11041_v57  ;;  %8374 = vmatprep.subr.bf16.mxu1 %v11041_v57 }
0x226b   :  { %8355 = vmatpush3.bf16.msra.mxu0 %v8919_v42  ;;  %8375 = vmatpush3.bf16.msra.mxu1 %v8927_v20 }
0x226c   :  { %8356 = vmatprep.subr.bf16.mxu0 %v11041_v57  ;;  %8376 = vmatprep.subr.bf16.mxu1 %v11041_v57 }
0x226f   :  { %8357 = vmatpush3.bf16.msra.mxu0 %v8920_v0  ;;  %8377 = vmatpush3.bf16.msra.mxu1 %v8928_v14 }
0x2270   :  { %8358 = vmatprep.subr.bf16.mxu0 %v11041_v57  ;;  %8378 = vmatprep.subr.bf16.mxu1 %v11041_v57 }
0x2273   :  { %8359 = vmatpush3.bf16.msra.mxu0 %v8921_v43 }
0x2274   :  { %8360 = vmatprep.subr.bf16.mxu0 %v11041_v57 }
0x2277   :  { %8361 = vmatpush3.bf16.msra.mxu0 %v8922_v15 }
0x2278   :  { %6733 = vmatprep.subr.bf16.mxu0 %v10737_v35  ;;  %v8929_v35 = vld [vmem:[#allocation5 + $0x30] sm:$0xff]  }
0x2279   :  { %8379 = vmatpush3.bf16.msra.mxu1 %v8929_v35 }
0x227a   :  { %8380 = vmatprep.subr.bf16.mxu1 %v11041_v57 }
0x232c   :  { %v6266_v19 = vpop.f32.mrb[88].mxu0  ;;  %v10854_v45 = vpop.f32.mrb[88].mxu1 }
0x232d   :  { %v6315_v52 = vrot.slane %v6266_v19, 1  ;;  %v10856_v16 = vpop.f32.mrb[89].mxu0  ;;  %v10858_v49 = vpop.f32.mrb[89].mxu1 }
0x232e   :  { %v6270_v63 = vpop.f32.mrb[90].mxu0  ;;  %v6311_v1 = vpop.f32.mrb[90].mxu1 }
0x232f   :  { %v6271_v54 = vpop.f32.mrb[91].mxu0  ;;  %v6312_v39 = vpop.f32.mrb[91].mxu1  ;;  %v6317_v3 = vadd.f32 %v6315_v52, %v9492_v34 }
0x2330   :  { %v8939_v39 = vld [vmem:[#allocation10] sm:$0xff]  }
0x2331   :  { %v6319_v4 = vsel %vm6318_vm8, %v6317_v3, -inf }
0x2332   :  { %6320 = vmax.xlane.f32.xlu0 %v6319_v4  ;;  %v8941_v4 = vld [vmem:[#allocation10 + $0x10] sm:$0xff]  }
0x23bf   :  { %v6321_v34 = vpop.xlane.xlu0 %6320 }
0x23c0   :  { %v6322_v31 = vsub.f32 %v6317_v3, %v6321_v34  ;;  %v8940_v3 = vld [vmem:[#allocation10 + $0x8] sm:$0xff]   ;;  %v8946_v34 = vld [vmem:[#allocation10 + $0x38] sm:$0xff]  }
0x23c2   :  { %v6323_v41 = vmul.f32 1.442695, %v6322_v31  ;;  %v6814_v31 = vld [vmem:[%s11003_s9] sm:$0x7] }
0x23c3   :  { %v6823_v40 = vrot.slane %v6814_v31, %v11065_v30 }
0x23c4   :  { %9045 = vpow2.f32 %v6323_v41  ;;  %v6583_v41 = vld [vmem:[%s11005_s11] sm:$0x7] }
0x23c5   :  { %v6725_v42 = vrot.slane %v6583_v41, %v11065_v30  ;;  %v6832_v17 = vadd.f32 %v6823_v40, %v10854_v45 }
0x23ce   :  { %v9046_v38 = vpop.eup %9045 }
0x23cf   :  { %v6325_v11 = vsel %vm6318_vm8, %v9046_v38, 0.0 }
0x23d0   :  { %6326 = vadd.xlane.f32.xlu1 %v6325_v11  ;;  %v6721_v11 = vrot.slane %v6583_v41, %v11064_v53 }
0x245d   :  { %v6327_v32 = vpop.xlane.xlu1 %6326 }
0x245e   :  { %9047 = vrcp.f32 %v6327_v32 }
0x2468   :  { %v9048_v12 = vpop.eup %9047 }
0x2469   :  { %v6329_v10 = vmul.f32 %v9048_v12, %v9046_v38  ;;  %v6819_v38 = vrot.slane %v6814_v31, %v11064_v53 }
0x246b   :  { %v6330_v22 = vpack.c.bf16 %v6329_v10, %v6329_v10  ;;  %6856 = vst [vmem:[#allocation14] sm:$0x80] %v6329_v10 }
0x246d   :  { %v6348_v44 = vshrl.u32 %v6330_v22, 16 }
0x246f   :  { %v6350_v47 = vrot.slane %v6348_v44, 3 }
0x2471   :  { %8363 = vmatmul.mubr.bf16.vlgmr.msra.gmra.mrb[92].mxu0 %v6350_v47  ;;  %v6827_v47 = vrot.slane %v6814_v31, %v9733_v37 }
0x2472   :  { %6734 = vmatpush1.bf16.msra.mxu0 %v10735_v58  ;;  %6765 = vmatprep.mubr.bf16.mxu0 %v11042_v36  ;;  %v11066_v36 = vld [vmem:[#allocation22_spill] sm:$0xff]  ;;  %v11067_v58 = vld [vmem:[#allocation23_spill] sm:$0xff] }
0x2473   :  { %6735 = vmatprep.subr.bf16.mxu0 %v10739_v23  ;;  %v8930_v23 = vld [vmem:[#allocation5 + $0x38] sm:$0xff]  }
0x2474   :  { %8381 = vmatpush3.bf16.msra.mxu1 %v8930_v23 }
0x2475   :  { %8386 = vmatprep.subr.bf16.mxu1 %v11041_v57 }
0x2476   :  { %6736 = vmatpush1.bf16.msra.mxu0 %v10743_v55 }
0x2477   :  { %6737 = vmatprep.subr.bf16.mxu0 %v10746_v8  ;;  %v8931_v8 = vld [vmem:[#allocation8 + $0x8] ss:$12 sps:$4 sm:$0xff]  }
0x247a   :  { %6738 = vmatpush1.bf16.msra.mxu0 %v10749_v50 }
0x247b   :  { %6739 = vmatprep.subr.bf16.mxu0 %v10752_v60 }
0x247e   :  { %6740 = vmatpush1.bf16.msra.mxu0 %v10755_v61 }
0x247f   :  { %6741 = vmatprep.subr.bf16.mxu0 %v10758_v2 }
0x2482   :  { %6742 = vmatpush1.bf16.msra.mxu0 %v10761_v18  ;;  %v8932_v18 = vld [vmem:[#allocation8 + $0x20] ss:$12 sps:$4 sm:$0xff]  }
0x2483   :  { %6743 = vmatprep.subr.bf16.mxu0 %v10764_v27  ;;  %v8933_v27 = vld [vmem:[#allocation8 + $0x38] ss:$12 sps:$4 sm:$0xff]  }
0x2486   :  { %6744 = vmatpush1.bf16.msra.mxu0 %v10767_v21  ;;  %v8934_v21 = vld [vmem:[#allocation8 + $0x50] ss:$12 sps:$4 sm:$0xff]  }
0x2487   :  { %6745 = vmatprep.subr.bf16.mxu0 %v11066_v36  ;;  %v6729_v36 = vrot.slane %v6583_v41, %v9733_v37  ;;  %v7634_v37 = vld [vmem:[%s11007_s13] ss:$0 sm:$0xff] }
0x248a   :  { %6746 = vmatpush1.bf16.msra.mxu0 %v11067_v58  ;;  %v6833_v58 = vadd.f32 %v6827_v47, %v10858_v49 }
0x248b   :  { %6747 = vmatprep.subr.bf16.mxu0 %v10785_v26  ;;  %v8935_v26 = vld [vmem:[#allocation8 + $0x68] ss:$12 sps:$4 sm:$0xff]  }
0x248e   :  { %6748 = vmatpush1.bf16.msra.mxu0 %v10788_v33  ;;  %v8936_v33 = vld [vmem:[#allocation8 + $0x80] ss:$12 sps:$4 sm:$0xff]  }
0x248f   :  { %8406 = vmatprep.subr.bf16.mxu0 %v11041_v57 }
0x2544   :  { %v6434_v55 = vpop.f32.mrb[92].mxu0 }
0x2545   :  { %v6440_v50 = vpack.c.bf16 %v6434_v55, %v6434_v55  ;;  %v8364_v60 = vpop.f32.mrb[93].mxu0 }
0x2546   :  { %v6437_v61 = vpop.f32.mrb[94].mxu0 }
0x2547   :  { %v8365_v2 = vpop.f32.mrb[95].mxu0  ;;  %8383 = vmatmul.mubr.bf16.vlgmr.msra.gmra.mrb[92].mxu1 %v6440_v50 }
0x2548   :  { %8387 = vmatpush3.bf16.msra.mxu1 %v8931_v8  ;;  %8402 = vmatprep.mubr.msk.bf16.mxu1 %vm9279_vm0, %v11041_v57 }
0x2549   :  { %8388 = vmatprep.subr.bf16.mxu1 %v11041_v57 }
0x254c   :  { %8389 = vmatpush3.bf16.msra.mxu1 %v8932_v18 }
0x254d   :  { %8390 = vmatprep.subr.bf16.mxu1 %v11041_v57 }
0x2550   :  { %8391 = vmatpush3.bf16.msra.mxu1 %v8933_v27 }
0x2551   :  { %8392 = vmatprep.subr.bf16.mxu1 %v11041_v57 }
0x2554   :  { %8393 = vmatpush3.bf16.msra.mxu1 %v8934_v21 }
0x2555   :  { %8394 = vmatprep.subr.bf16.mxu1 %v11041_v57 }
0x2558   :  { %8395 = vmatpush3.bf16.msra.mxu1 %v8935_v26 }
0x2559   :  { %8396 = vmatprep.subr.bf16.mxu1 %v11041_v57 }
0x255c   :  { %8397 = vmatpush3.bf16.msra.mxu1 %v8936_v33 }
0x255d   :  { %8398 = vmatprep.subr.bf16.mxu1 %v11041_v57 }
0x2560   :  { %8399 = vmatpush3.bf16.msra.mxu1 %v8937_v7 }
0x2561   :  { %8400 = vmatprep.subr.bf16.mxu1 %v11041_v57 }
0x2564   :  { %8401 = vmatpush3.bf16.msra.mxu1 %v8938_v25 }
0x261a   :  { %v6539_v28 = vpop.f32.mrb[92].mxu1 }
0x261b   :  { %v6546_v46 = vrot.slane %v6539_v28, 1  ;;  %v8384_v48 = vpop.f32.mrb[93].mxu1 }
0x261c   :  { %v6542_v51 = vpop.f32.mrb[94].mxu1 }
0x261d   :  { %v6548_v9 = vadd.f32 %v6546_v46, %v9695_v24  ;;  %v8385_v19 = vpop.f32.mrb[95].mxu1  ;;  %v8942_v24 = vld [vmem:[#allocation10 + $0x18] sm:$0xff]  }
0x261f   :  { %v6549_v52 = vmax.f32 %v6548_v9, 0.0 }
0x2621   :  { %v6550_v63 = vpack.c.bf16 %v6549_v52, %v6549_v52 }
0x2623   :  { %v6585_v1 = vshrl.u32 %v6550_v63, 16 }
0x2625   :  { %v6587_v54 = vrot.slane %v6585_v1, 3 }
0x2627   :  { %6766 = vmatmul.mubr.bf16.vlgmr.msra.gmra.mrb[96].mxu0 %v6587_v54  ;;  %8403 = vmatmul.mubr.bf16.vlgmr.msra.gmra.mrb[96].mxu1 %v6587_v54 }
0x2628   :  { %8422 = vmatprep.mubr.msk.bf16.mxu0 %vm9279_vm0, %v11041_v57  ;;  %8407 = vmatpush3.bf16.msra.mxu0 %v8939_v39 }
0x2629   :  { %8408 = vmatprep.subr.bf16.mxu0 %v11041_v57 }
0x262c   :  { %8409 = vmatpush3.bf16.msra.mxu0 %v8940_v3 }
0x262d   :  { %8410 = vmatprep.subr.bf16.mxu0 %v11041_v57 }
0x2630   :  { %8411 = vmatpush3.bf16.msra.mxu0 %v8941_v4 }
0x2631   :  { %8412 = vmatprep.subr.bf16.mxu0 %v11041_v57 }
0x2634   :  { %8413 = vmatpush3.bf16.msra.mxu0 %v8942_v24 }
0x2635   :  { %8414 = vmatprep.subr.bf16.mxu0 %v11041_v57 }
0x2638   :  { %8415 = vmatpush3.bf16.msra.mxu0 %v8943_v5 }
0x2639   :  { %8416 = vmatprep.subr.bf16.mxu0 %v11041_v57 }
0x263c   :  { %8417 = vmatpush3.bf16.msra.mxu0 %v8944_v6 }
0x263d   :  { %8418 = vmatprep.subr.bf16.mxu0 %v11041_v57 }
0x2640   :  { %8419 = vmatpush3.bf16.msra.mxu0 %v8945_v29 }
0x2641   :  { %8420 = vmatprep.subr.bf16.mxu0 %v11041_v57  ;;  %v6831_v57 = vadd.f32 %v6819_v38, %v10856_v16 }
0x2644   :  { %8421 = vmatpush3.bf16.msra.mxu0 %v8946_v34 }
0x26fa   :  { %v6767_v0 = vpop.f32.mrb[96].mxu0  ;;  %v6808_v43 = vpop.f32.mrb[96].mxu1 }
0x26fb   :  { %v6768_v15 = vadd.f32 %v6767_v0, %v6721_v11  ;;  %v6769_v56 = vpop.f32.mrb[97].mxu0  ;;  %v8404_v13 = vpop.f32.mrb[97].mxu1  ;;  %v6809_v55 = vadd.f32 %v6808_v43, %v6729_v36 }
0x26fc   :  { %v6770_v59 = vadd.f32 %v6769_v56, %v6725_v42  ;;  %v6771_v20 = vpop.f32.mrb[98].mxu0  ;;  %v6811_v14 = vpop.f32.mrb[98].mxu1 }
0x26fd   :  { %v6834_v35 = vadd.f32 %v6831_v57, %v6768_v15  ;;  %v6772_v32 = vpop.f32.mrb[99].mxu0  ;;  %v8405_v12 = vpop.f32.mrb[99].mxu1 }
0x26fe   :  { %v6841_v53 = vadd.f32 %v6832_v17, %v6770_v59 }
0x26ff   :  { %v7632_v10 = vmul.f32 -1.442695, %v6834_v35 }
0x2700   :  { %v7633_v22 = vmul.f32 -1.442695, %v6841_v53 }
0x2701   :  { %9049 = vpow2.f32 %v7632_v10 }
0x2702   :  { %9051 = vpow2.f32 %v7633_v22 }
0x270b   :  { %v9050_v30 = vpop.eup %9049 }
0x270c   :  { %v6838_v44 = vadd.f32 1.0, %v9050_v30  ;;  %v9052_v16 = vpop.eup %9051 }
0x270d   :  { %v6845_v45 = vadd.f32 1.0, %v9052_v16 }
0x270e   :  { %9053 = vrcp.f32 %v6838_v44 }
0x270f   :  { %9055 = vrcp.f32 %v6845_v45 }
0x2718   :  { %v9054_v23 = vpop.eup %9053 }
0x2719   :  { %v6848_v8 = vmul.f32 %v9054_v23, %v6833_v58  ;;  %v9056_v60 = vpop.eup %9055 }
0x271a   :  { %v6851_v61 = vsub.f32 1.0, %v9056_v60  ;;  %v6853_v27 = vmul.f32 %v9056_v60, %v10845_v62 }
0x271b   :  { %v6849_v50 = vadd.f32 %v6848_v8, %v6809_v55 }
0x271d   :  { %9057 = vtanh.f32 %v6849_v50 }
0x2727   :  { %v9058_v2 = vpop.eup %9057 }
0x2728   :  { %v6852_v18 = vmul.f32 %v9058_v2, %v6851_v61 }
0x272a   :  { %v6854_v21 = vadd.f32 %v6853_v27, %v6852_v18 }
0x272c   :  { %6855 = vst [vmem:[#allocation12 + $0x7] sm:$0x1] %v6854_v21 }
0x2733   :  { %v6857_v26 = vld [vmem:[#allocation12] sm:$0xff] }
0x2734   :  { %v6858_v33 = vpack.c.bf16 %v6857_v26, %v6857_v26 }
0x2736   :  { %8423 = vmatmul.mubr.bf16.vlgmr.msra.gmra.mrb[100].mxu0 %v6858_v33 }
0x2809   :  { %v6964_v49 = vpop.f32.mrb[100].mxu0 }
0x280a   :  { %v6965_v7 = vadd.f32 %v7634_v37, %v6964_v49  ;;  %v8424_v25 = vpop.f32.mrb[101].mxu0 }
0x280b   :  { %v6967_v28 = vpop.f32.mrb[102].mxu0 }
0x280c   :  { %6970 = vmax.xlane.f32.xlu0 %v6965_v7  ;;  %v8425_v46 = vpop.f32.mrb[103].mxu0 }
0x2899   :  { %v6971_v48 = vpop.xlane.xlu0 %6970 }
0x289a   :  { %v6972_v51 = vsub.f32 %v6965_v7, %v6971_v48 }
0x289c   :  { %v6973_v9 = vmul.f32 1.442695, %v6972_v51 }
0x289e   :  { %9059 = vpow2.f32 %v6973_v9 }
0x28a8   :  { %v9060_v62 = vpop.eup %9059 }
0x28a9   :  { %6975 = vadd.xlane.f32.xlu1 %v9060_v62 }
0x28aa   :  { %9202 = shalt.err (!%p9199_p2)
}
0x28ab   :  { %s9203_s3 = scalar_lea.hbm %s11009_s15, 128 }
0x28ac   :  { %p9204_p3 = scmp.ne.s32.totalorder %s11009_s15, %s9203_s3  ;;  %p9207_p4 = scmp.lt.u32.totalorder %s9203_s3, %s11009_s15 }
0x28ae   :  { %p9209_p5 = pnand %p9207_p4, %p9204_p3 }
0x28b0   :  { %9212 = shalt.err (!%p9209_p5)
}
0x28b1   :  { %6999 = dma.vmem_to_hbm [thread:$0]  %s6997_s17, 128, %s11009_s15, [#allocation13]  }
0x28b2   :  { %s9282_s28 = smov [#allocation14]  }
0x28b3   :  { %s7006_s29 = sshll.u32 %s9282_s28, 4  ;;  %s7007_s29 = int_to_ptr.vmem [resolvable:$true] %s7006_s29 }
0x28b4   :  { %s9213_s30 = scalar_lea.vmem %s7007_s29, 128  ;;  %p9218_p7 = scmp.lt.s32.totalorder %s7007_s29, %s7007_s29 }
0x28b5   :  { %p9214_p6 = scmp.ne.s32.totalorder %s7007_s29, %s9213_s30  ;;  %p9219_p8 = scmp.lt.s32.totalorder %s9213_s30, %s9213_s30 }
0x28b7   :  { %p9220_p9 = por %p9219_p8, %p9218_p7 }
0x28b9   :  { %p9221_p10 = pnand %p9220_p9, %p9214_p6 }
0x28bb   :  { %9224 = shalt.err (!%p9221_p10)
}
0x28bc   :  { %s9225_s7 = scalar_lea.hbm %s11010_s16, 128 }
0x28bd   :  { %p9226_p11 = scmp.ne.s32.totalorder %s11010_s16, %s9225_s7  ;;  %p9229_p12 = scmp.lt.u32.totalorder %s9225_s7, %s11010_s16 }
0x28bf   :  { %p9231_p13 = pnand %p9229_p12, %p9226_p11 }
0x28c1   :  { %9234 = shalt.err (!%p9231_p13)
}
0x28c2   :  { %7009 = dma.vmem_to_hbm [thread:$0]  %s7007_s29, 128, %s11010_s16, [#allocation13]  }
0x28c3   :  { %s9283_s5 = smov [#allocation11]  }
0x28c4   :  { %s6986_s24 = sshll.u32 %s9283_s5, 4  ;;  %s6987_s24 = int_to_ptr.vmem [resolvable:$true] %s6986_s24 }
0x28c5   :  { %s9235_s6 = scalar_lea.vmem %s6987_s24, 128  ;;  %p9240_p1 = scmp.lt.s32.totalorder %s6987_s24, %s6987_s24 }
0x28c6   :  { %p9236_p0 = scmp.ne.s32.totalorder %s6987_s24, %s9235_s6  ;;  %p9241_p2 = scmp.lt.s32.totalorder %s9235_s6, %s9235_s6 }
0x28c8   :  { %p9242_p3 = por %p9241_p2, %p9240_p1 }
0x28ca   :  { %p9243_p4 = pnand %p9242_p3, %p9236_p0 }
0x2936   :  { %v6976_v19 = vpop.xlane.xlu1 %6975 }
0x2937   :  { %9061 = vrcp.f32 %v6976_v19 }
0x2941   :  { %v9062_v52 = vpop.eup %9061 }
0x2942   :  { %v6978_v63 = vmul.f32 %v9062_v52, %v9060_v62 }
0x2944   :  { %6979 = vst [vmem:[#allocation11] sm:$0xff] %v6978_v63 }
0x2945   :  { %9246 = shalt.err (!%p9243_p4)
}
0x2946   :  { %s9247_s0 = scalar_lea.hbm %s11008_s14, 128 }
0x2947   :  { %p9248_p5 = scmp.ne.s32.totalorder %s11008_s14, %s9247_s0  ;;  %p9251_p6 = scmp.lt.u32.totalorder %s9247_s0, %s11008_s14 }
0x2949   :  { %p9253_p7 = pnand %p9251_p6, %p9248_p5 }
0x294b   :  { %9256 = shalt.err (!%p9253_p7)
}
0x294c   :  { %6989 = dma.vmem_to_hbm [thread:$0]  %s6987_s24, 128, %s11008_s14, [#allocation4]  }
0x294d   :  { %9263 = dma.done.wait [#allocation4], 128  }
0x294e   :  { %9264 = vsyncadd [#allocation4], 4294967168 }
0x294f   :  { %9265 = dma.done.wait [#allocation13], 256  }
0x2950   :  { %9266 = vsyncadd [#allocation13], 4294967040 }
0x2951   :  { %7019 = vsyncpa [#allocation3], 1 }
0x2952   :  { %7020 = vsyncpa [#allocation6], 1 }
0x2953   :  { %7021 = vsyncpa [#allocation9], 1 }
0x2954   :  { %7022 = vsyncpa [#allocation4], 1 }
0x2955   :  { %7023 = vsyncpa [#allocation13], 1 }

</bundles_post_ra>
